<compile_context>
chip_gen: v7x
topology: tpu7x:2x2x1
jax: 0.10.0
libtpu: 0.0.40
codegen_flags: <defaults>
</compile_context>

<pallas_src>
import functools

import jax
import jax.numpy as jnp
from jax.experimental import pallas as pl
from jax.experimental.pallas import tpu as pltpu


# --------------------------------------------------------------- fused discriminator kernel
def _disc_kernel(x_ref, wih_ref, whh_ref, b_ref,
                 w0_ref, w1_ref, bc_ref, bias_ref,
                 wd_ref, bd_ref, wl_ref, bl_ref, emo_ref,
                 out_ref, logits_ref, *, T, S, B, H):
    f32 = jnp.float32
    bf16 = jnp.bfloat16
    NB = S * B          # rows per timestep: neg | pos | fdb
    NP = 2 * B          # rows the classifier / GP consume: neg | pos

    # ---- LSTM input projection, hoisted out of the recurrence (one MXU pass, bf16) ------
    gx = (jnp.dot(x_ref[...], wih_ref[...], preferred_element_type=f32)
          + b_ref[...])                                    # (T*NB, 4H) f32
    # Per-gate splits (PyTorch order i, f, g, o) — all off the h dependency chain.
    gx_i = gx[:, 0 * H:1 * H]
    gx_f = gx[:, 1 * H:2 * H]
    gx_g = gx[:, 2 * H:3 * H]
    gx_o = gx[:, 3 * H:4 * H]

    whh = whh_ref[...]                                     # (H, 4H) bf16
    whh_i = whh[:, 0 * H:1 * H]
    whh_f = whh[:, 1 * H:2 * H]
    whh_g = whh[:, 2 * H:3 * H]
    whh_o = whh[:, 3 * H:4 * H]

    # ---- recurrence: fully unrolled, h/c live in vregs; only h @ W_hh is per-step MXU ----
    h = jnp.zeros((NB, H), f32)
    c = jnp.zeros((NB, H), f32)
    hp = []                                                # per-step (2B, H) neg|pos hidden
    for t in range(T):
        r = slice(t * NB, (t + 1) * NB)
        hb = h.astype(bf16)
        i = jax.nn.sigmoid(gx_i[r] + jnp.dot(hb, whh_i, preferred_element_type=f32))
        f = jax.nn.sigmoid(gx_f[r] + jnp.dot(hb, whh_f, preferred_element_type=f32))
        g = jnp.tanh(gx_g[r] + jnp.dot(hb, whh_g, preferred_element_type=f32))
        o = jax.nn.sigmoid(gx_o[r] + jnp.dot(hb, whh_o, preferred_element_type=f32))
        c = f * c + i * g
        h = o * jnp.tanh(c)
        h_np = h[:NP]                                      # neg|pos rows only
        hp.append(h_np)
        out_ref[t] = h_np                                  # clean (2B, H) tile store
    c_fdb = c[NP:NB]                                       # (B, H) final fdb cell state

    # ---- EmotionClassify for BOTH slabs fused (shared conv matmuls, per-slab BN) --------
    w0 = w0_ref[...]
    w1 = w1_ref[...]
    bc = bc_ref[...]
    # kernel-size-2 conv over time on the shared neg|pos rows (no x_a/x_b duplication,
    # no row reshapes): conv_t = out_t @ W0 + out_{t+1} @ W1 + b, each (2B, H).
    convs = [jnp.dot(hp[t], w0, preferred_element_type=f32)
             + jnp.dot(hp[t + 1], w1, preferred_element_type=f32) + bc
             for t in range(T - 1)]

    feed = emo_ref[...] + c_fdb + bias_ref[...]            # emotion_context + c_fdb + bias
    wd = wd_ref[...]
    bd = bd_ref[...]
    wl = wl_ref[...]
    bl = bl_ref[...]
    inv_n = 1.0 / float((T - 1) * B)

    def head(rows):
        """Classify one slab (neg or pos rows) with its own train-mode BatchNorm stats."""
        cs = [cv[rows] for cv in convs]                    # (T-1) tensors of (B, H)
        # fresh BatchNorm2d: per-channel stats over (time, batch), gamma=1, beta=0
        total = cs[0]
        for v in cs[1:]:
            total = total + v
        mu = jnp.sum(total, axis=0, keepdims=True) * inv_n                     # (1, H)
        sq = None
        for v in cs:
            d = v - mu
            sq = d * d if sq is None else sq + d * d
        inv_std = jax.lax.rsqrt(jnp.sum(sq, axis=0, keepdims=True) * inv_n + 1e-5)
        # ReLU + max-pool over the full time window, fused into one running max
        pooled = None
        for v in cs:
            rel = jnp.maximum((v - mu) * inv_std, 0.0)
            pooled = rel if pooled is None else jnp.maximum(pooled, rel)       # (B, H)
        fused = jnp.maximum(pooled + feed, 0.0)
        dense = jnp.maximum(jnp.dot(fused, wd, preferred_element_type=f32) + bd, 0.0)
        mu = jnp.mean(dense, axis=0, keepdims=True)        # fresh BatchNorm over the batch
        var = jnp.mean(jnp.square(dense - mu), axis=0, keepdims=True)
        dense = (dense - mu) * jax.lax.rsqrt(var + 1e-5)
        # N=1 logits head as a VPU multiply + row-sum (no MXU pass / padded writeback)
        return jnp.sum(dense * wl, axis=1, keepdims=True) + bl                 # (B, 1)

    logits_ref[0] = head(slice(0, B))                      # neg slab (its own BN stats)
    logits_ref[1] = head(slice(B, 2 * B))                  # pos slab (its own BN stats)


def discriminator_fused_pallas(x2, emotion_context, p, *, T, S, B, H):
    """x2: (T*S*B, E) time-major stacked {neg, pos, fdb} embeddings (bf16).
    Returns (out_negpos, logits): (T, 2B, H) hidden states for slabs 0/1, (2, B, 1) logits."""
    kernel = functools.partial(_disc_kernel, T=T, S=S, B=B, H=H)
    vmem = pl.BlockSpec(memory_space=pltpu.MemorySpace.VMEM)
    return pl.pallas_call(
        kernel,
        out_shape=(jax.ShapeDtypeStruct((T, 2 * B, H), jnp.float32),
                   jax.ShapeDtypeStruct((2, B, 1), jnp.float32)),
        in_specs=[vmem] * 13,
        out_specs=(vmem, vmem),
    )(x2,
      p['lstm_wih_t'].astype(jnp.bfloat16),
      p['lstm_whh_t'].astype(jnp.bfloat16),
      p['lstm_b'],
      p['conv_w0'], p['conv_w1'], p['conv_b'], p['disc_bias'],
      p['dense_w'], p['dense_b'], p['logits_w'], p['logits_b'],
      emotion_context)


# ------------------------------------------------ plain-JAX mirror (only for the GP grad)
def emotion_classify_ref_tm(x_tbh, feedback, emo, p, batch_norm=False):
    conv = (jnp.einsum('tbh,ho->tbo', x_tbh[:-1], p['conv_w0'])
            + jnp.einsum('tbh,ho->tbo', x_tbh[1:], p['conv_w1'])
            + p['conv_b'])
    if batch_norm:
        mu = jnp.mean(conv, axis=(0, 1), keepdims=True)
        var = jnp.mean(jnp.square(conv - mu), axis=(0, 1), keepdims=True)
        conv = (conv - mu) * jax.lax.rsqrt(var + 1e-5)
    conv = jax.nn.relu(conv)
    pooled = jnp.max(conv, axis=0)                                   # (B, H)
    fused = jax.nn.relu(pooled + emo + feedback + p['disc_bias'])
    dense = jax.nn.relu(fused @ p['dense_w'] + p['dense_b'])
    if batch_norm:
        mu = jnp.mean(dense, axis=0, keepdims=True)
        var = jnp.mean(jnp.square(dense - mu), axis=0, keepdims=True)
        dense = (dense - mu) * jax.lax.rsqrt(var + 1e-5)
    return jnp.sum(dense * p['logits_w'], axis=1, keepdims=True) + p['logits_b']


# -------------------------------------------------------------------------------- forward
@jax.jit
def forward(params, neg, pos, fdb, context, emotion_context, alpha_key, gp_lambda=0.1):
    H = params['disc_bias'].shape[1]
    E = params['embedding'].shape[1]
    B, T = neg.shape
    # Stack the three token streams time-major BEFORE the embedding gather so the single
    # fused kernel reads one clean (T*3*B, E) slab and writes outputs in the layout the
    # classifier and the GP path consume (zero relayout anywhere).
    toks = jnp.transpose(jnp.stack([neg, pos, fdb], axis=0), (2, 0, 1))   # (T, 3, B)
    x = jnp.take(params['embedding'], toks, axis=0)                        # (T, 3, B, E)
    x2 = x.reshape(T * 3 * B, E).astype(jnp.bfloat16)                      # bf16 MXU operand

    out_np, logits = discriminator_fused_pallas(x2, emotion_context, params,
                                                T=T, S=3, B=B, H=H)
    neg_logits, pos_logits = logits[0], logits[1]                          # (B, 1) each
    disc_emo_loss = jnp.mean(neg_logits - pos_logits)
    gen_emo_loss = jnp.mean(neg_logits)

    # gradient penalty (WGAN-GP style), time-major layout throughout
    out_all = out_np.reshape(T, 2, B, H)                                   # free metadata reshape
    out_neg, out_pos = out_all[:, 0], out_all[:, 1]                        # (T, B, H) each
    alpha = jax.random.uniform(alpha_key, (1, B, 1), dtype=jnp.float32)
    interpolates = alpha * out_neg + (1.0 - alpha) * out_pos
    # TODO(synk): torch uses autograd backward + register_hook; Pallas kernels have no VJP
    # rule, so the gradient goes through the plain-JAX mirror of EmotionClassify (the torch
    # call passes feedback=context, emotion_context=True -> 1.0, batch_norm=False).
    ones_emo = jnp.ones((B, H), jnp.float32)
    grad_fn = jax.grad(lambda xv: jnp.sum(
        emotion_classify_ref_tm(xv, context, ones_emo, params, batch_norm=False)))
    gradients = grad_fn(interpolates)                                      # (T, B, H)
    # torch: slopes = sqrt(sum(g*g, dim=1)) on (B, T, H) -> reduce over the time axis
    slopes = jnp.sqrt(jnp.sum(gradients * gradients, axis=0))              # (B, H)
    gradient_penalty = gp_lambda * jnp.mean((slopes - 1.0) ** 2)
    disc_emo_loss = disc_emo_loss + gradient_penalty
    return disc_emo_loss, gen_emo_loss, gradient_penalty


# --------------------------------------------------------------------------------- params
def init_params(key, vocab, E, H):
    ks = jax.random.split(key, 12)
    s = 0.1
    f32 = jnp.float32
    return {
        'embedding': (jax.random.normal(ks[0], (vocab, E)) * s).astype(f32),
        'lstm_wih_t': (jax.random.normal(ks[1], (E, 4 * H)) * s).astype(f32),
        'lstm_whh_t': (jax.random.normal(ks[2], (H, 4 * H)) * s).astype(f32),
        'lstm_b': (jax.random.normal(ks[3], (1, 4 * H)) * s).astype(f32),   # b_ih + b_hh
        'conv_w0': (jax.random.normal(ks[4], (H, H)) * s).astype(f32),
        'conv_w1': (jax.random.normal(ks[5], (H, H)) * s).astype(f32),
        'conv_b': (jax.random.normal(ks[6], (1, H)) * s).astype(f32),
        'disc_bias': jax.random.normal(ks[7], (1, H)).astype(f32),          # nn.Parameter(randn(1,H))
        'dense_w': (jax.random.normal(ks[8], (H, H // 2)) * s).astype(f32),
        'dense_b': (jax.random.normal(ks[9], (1, H // 2)) * s).astype(f32),
        'logits_w': (jax.random.normal(ks[10], (1, H // 2)) * s).astype(f32),  # row layout (VPU reduce)
        'logits_b': (jax.random.normal(ks[11], (1, 1)) * s).astype(f32),
    }


if __name__ == "__main__":
    VOCAB, E, H, B, T = 50, 32, 32, 2, 8
    root = jax.random.PRNGKey(0)
    kp, k1, k2, k3, k4, k5, k6 = jax.random.split(root, 7)

    params = init_params(kp, VOCAB, E, H)
    neg = jax.random.randint(k1, (B, T), 0, VOCAB)
    pos = jax.random.randint(k2, (B, T), 0, VOCAB)
    fdb = jax.random.randint(k3, (B, T), 0, VOCAB)
    context = jax.random.normal(k4, (B, H), dtype=jnp.float32)
    emotion_context = jax.random.normal(k5, (B, H), dtype=jnp.float32)

    disc_loss, gen_loss, gp = forward(params, neg, pos, fdb, context, emotion_context,
                                      k6, 0.1)
    jax.block_until_ready((disc_loss, gen_loss, gp))
    assert not bool(jnp.isnan(gp)), "omg!!!!"
    print("KERNEL_OK")
</pallas_src>

<mosaic_0001>
module attributes {stable_mosaic.version = 11 : i64} {
  func.func @_disc_kernel(%arg0: memref<48x32xbf16, #tpu.memory_space<vmem>>, %arg1: memref<32x128xbf16, #tpu.memory_space<vmem>>, %arg2: memref<32x128xbf16, #tpu.memory_space<vmem>>, %arg3: memref<1x128xf32, #tpu.memory_space<vmem>>, %arg4: memref<32x32xf32, #tpu.memory_space<vmem>>, %arg5: memref<32x32xf32, #tpu.memory_space<vmem>>, %arg6: memref<1x32xf32, #tpu.memory_space<vmem>>, %arg7: memref<1x32xf32, #tpu.memory_space<vmem>>, %arg8: memref<32x16xf32, #tpu.memory_space<vmem>>, %arg9: memref<1x16xf32, #tpu.memory_space<vmem>>, %arg10: memref<1x16xf32, #tpu.memory_space<vmem>>, %arg11: memref<1x1xf32, #tpu.memory_space<vmem>>, %arg12: memref<2x32xf32, #tpu.memory_space<vmem>>, %arg13: memref<8x4x32xf32, #tpu.memory_space<vmem>>, %arg14: memref<2x2x1xf32, #tpu.memory_space<vmem>>) attributes {dimension_semantics = [], scalar_prefetch = 0 : i64, scratch_operands = 0 : i64, tpu.core_type = #tpu.core_type<tc>} {
    %c0 = arith.constant 0 : index
    %c0_0 = arith.constant 0 : index
    %0 = vector.load %arg0[%c0, %c0_0] : memref<48x32xbf16, #tpu.memory_space<vmem>>, vector<48x32xbf16>
    %c0_1 = arith.constant 0 : index
    %c0_2 = arith.constant 0 : index
    %1 = vector.load %arg1[%c0_1, %c0_2] : memref<32x128xbf16, #tpu.memory_space<vmem>>, vector<32x128xbf16>
    %cst = arith.constant dense<0.000000e+00> : vector<48x128xf32>
    %2 = tpu.matmul %0, %1, %cst {dimension_numbers = #tpu.dot_dimension_numbers<[1], [0], [0], [1], [0, 0, 1, 1], [], []>} : vector<48x32xbf16>, vector<32x128xbf16>, vector<48x128xf32> -> vector<48x128xf32>
    %c0_3 = arith.constant 0 : index
    %c0_4 = arith.constant 0 : index
    %3 = vector.load %arg3[%c0_3, %c0_4] : memref<1x128xf32, #tpu.memory_space<vmem>>, vector<1x128xf32>
    %4 = vector.broadcast %3 : vector<1x128xf32> to vector<48x128xf32>
    %5 = arith.addf %2, %4 : vector<48x128xf32>
    %6 = vector.extract_strided_slice %5 {offsets = [0, 0], sizes = [48, 32], strides = [1, 1]} : vector<48x128xf32> to vector<48x32xf32>
    %7 = vector.extract_strided_slice %5 {offsets = [0, 32], sizes = [48, 32], strides = [1, 1]} : vector<48x128xf32> to vector<48x32xf32>
    %8 = vector.extract_strided_slice %5 {offsets = [0, 64], sizes = [48, 32], strides = [1, 1]} : vector<48x128xf32> to vector<48x32xf32>
    %9 = vector.extract_strided_slice %5 {offsets = [0, 96], sizes = [48, 32], strides = [1, 1]} : vector<48x128xf32> to vector<48x32xf32>
    %c0_5 = arith.constant 0 : index
    %c0_6 = arith.constant 0 : index
    %10 = vector.load %arg2[%c0_5, %c0_6] : memref<32x128xbf16, #tpu.memory_space<vmem>>, vector<32x128xbf16>
    %11 = vector.extract_strided_slice %10 {offsets = [0, 0], sizes = [32, 32], strides = [1, 1]} : vector<32x128xbf16> to vector<32x32xbf16>
    %12 = vector.extract_strided_slice %10 {offsets = [0, 32], sizes = [32, 32], strides = [1, 1]} : vector<32x128xbf16> to vector<32x32xbf16>
    %13 = vector.extract_strided_slice %10 {offsets = [0, 64], sizes = [32, 32], strides = [1, 1]} : vector<32x128xbf16> to vector<32x32xbf16>
    %14 = vector.extract_strided_slice %10 {offsets = [0, 96], sizes = [32, 32], strides = [1, 1]} : vector<32x128xbf16> to vector<32x32xbf16>
    %cst_7 = arith.constant 0.000000e+00 : f32
    %15 = vector.broadcast %cst_7 : f32 to vector<6x32xf32>
    %cst_8 = arith.constant 0.000000e+00 : f32
    %16 = vector.broadcast %cst_8 : f32 to vector<6x32xf32>
    %17 = arith.truncf %15 : vector<6x32xf32> to vector<6x32xbf16>
    %18 = vector.extract_strided_slice %6 {offsets = [0, 0], sizes = [6, 32], strides = [1, 1]} : vector<48x32xf32> to vector<6x32xf32>
    %cst_9 = arith.constant dense<0.000000e+00> : vector<6x32xf32>
    %19 = tpu.matmul %17, %11, %cst_9 {dimension_numbers = #tpu.dot_dimension_numbers<[1], [0], [0], [1], [0, 0, 1, 1], [], []>} : vector<6x32xbf16>, vector<32x32xbf16>, vector<6x32xf32> -> vector<6x32xf32>
    %20 = arith.addf %18, %19 : vector<6x32xf32>
    %21 = arith.negf %20 : vector<6x32xf32>
    %22 = math.exp %21 : vector<6x32xf32>
    %cst_10 = arith.constant 1.000000e+00 : f32
    %23 = vector.broadcast %cst_10 : f32 to vector<6x32xf32>
    %24 = arith.addf %23, %22 : vector<6x32xf32>
    %25 = arith.divf %23, %24 : vector<6x32xf32>
    %26 = vector.extract_strided_slice %7 {offsets = [0, 0], sizes = [6, 32], strides = [1, 1]} : vector<48x32xf32> to vector<6x32xf32>
    %cst_11 = arith.constant dense<0.000000e+00> : vector<6x32xf32>
    %27 = tpu.matmul %17, %12, %cst_11 {dimension_numbers = #tpu.dot_dimension_numbers<[1], [0], [0], [1], [0, 0, 1, 1], [], []>} : vector<6x32xbf16>, vector<32x32xbf16>, vector<6x32xf32> -> vector<6x32xf32>
    %28 = arith.addf %26, %27 : vector<6x32xf32>
    %29 = arith.negf %28 : vector<6x32xf32>
    %30 = math.exp %29 : vector<6x32xf32>
    %cst_12 = arith.constant 1.000000e+00 : f32
    %31 = vector.broadcast %cst_12 : f32 to vector<6x32xf32>
    %32 = arith.addf %31, %30 : vector<6x32xf32>
    %33 = arith.divf %31, %32 : vector<6x32xf32>
    %34 = vector.extract_strided_slice %8 {offsets = [0, 0], sizes = [6, 32], strides = [1, 1]} : vector<48x32xf32> to vector<6x32xf32>
    %cst_13 = arith.constant dense<0.000000e+00> : vector<6x32xf32>
    %35 = tpu.matmul %17, %13, %cst_13 {dimension_numbers = #tpu.dot_dimension_numbers<[1], [0], [0], [1], [0, 0, 1, 1], [], []>} : vector<6x32xbf16>, vector<32x32xbf16>, vector<6x32xf32> -> vector<6x32xf32>
    %36 = arith.addf %34, %35 : vector<6x32xf32>
    %37 = math.tanh %36 : vector<6x32xf32>
    %38 = vector.extract_strided_slice %9 {offsets = [0, 0], sizes = [6, 32], strides = [1, 1]} : vector<48x32xf32> to vector<6x32xf32>
    %cst_14 = arith.constant dense<0.000000e+00> : vector<6x32xf32>
    %39 = tpu.matmul %17, %14, %cst_14 {dimension_numbers = #tpu.dot_dimension_numbers<[1], [0], [0], [1], [0, 0, 1, 1], [], []>} : vector<6x32xbf16>, vector<32x32xbf16>, vector<6x32xf32> -> vector<6x32xf32>
    %40 = arith.addf %38, %39 : vector<6x32xf32>
    %41 = arith.negf %40 : vector<6x32xf32>
    %42 = math.exp %41 : vector<6x32xf32>
    %cst_15 = arith.constant 1.000000e+00 : f32
    %43 = vector.broadcast %cst_15 : f32 to vector<6x32xf32>
    %44 = arith.addf %43, %42 : vector<6x32xf32>
    %45 = arith.divf %43, %44 : vector<6x32xf32>
    %46 = arith.mulf %33, %16 : vector<6x32xf32>
    %47 = arith.mulf %25, %37 : vector<6x32xf32>
    %48 = arith.addf %46, %47 : vector<6x32xf32>
    %49 = math.tanh %48 : vector<6x32xf32>
    %50 = arith.mulf %45, %49 : vector<6x32xf32>
    %51 = vector.extract_strided_slice %50 {offsets = [0, 0], sizes = [4, 32], strides = [1, 1]} : vector<6x32xf32> to vector<4x32xf32>
    %c0_16 = arith.constant 0 : index
    %c0_17 = arith.constant 0 : index
    %c0_18 = arith.constant 0 : index
    %52 = vector.load %arg13[%c0_16, %c0_17, %c0_18] : memref<8x4x32xf32, #tpu.memory_space<vmem>>, vector<1x4x32xf32>
    %53 = vector.shape_cast %52 : vector<1x4x32xf32> to vector<4x32xf32>
    %54 = vector.shape_cast %51 : vector<4x32xf32> to vector<1x4x32xf32>
    tpu.vector_store %arg13[%c0_16, %c0_17, %c0_18], %54 {strides = array<i32>} : memref<8x4x32xf32, #tpu.memory_space<vmem>>, vector<1x4x32xf32>,
    %55 = arith.truncf %50 : vector<6x32xf32> to vector<6x32xbf16>
    %56 = vector.extract_strided_slice %6 {offsets = [6, 0], sizes = [6, 32], strides = [1, 1]} : vector<48x32xf32> to vector<6x32xf32>
    %cst_19 = arith.constant dense<0.000000e+00> : vector<6x32xf32>
    %57 = tpu.matmul %55, %11, %cst_19 {dimension_numbers = #tpu.dot_dimension_numbers<[1], [0], [0], [1], [0, 0, 1, 1], [], []>} : vector<6x32xbf16>, vector<32x32xbf16>, vector<6x32xf32> -> vector<6x32xf32>
    %58 = arith.addf %56, %57 : vector<6x32xf32>
    %59 = arith.negf %58 : vector<6x32xf32>
    %60 = math.exp %59 : vector<6x32xf32>
    %cst_20 = arith.constant 1.000000e+00 : f32
    %61 = vector.broadcast %cst_20 : f32 to vector<6x32xf32>
    %62 = arith.addf %61, %60 : vector<6x32xf32>
    %63 = arith.divf %61, %62 : vector<6x32xf32>
    %64 = vector.extract_strided_slice %7 {offsets = [6, 0], sizes = [6, 32], strides = [1, 1]} : vector<48x32xf32> to vector<6x32xf32>
    %cst_21 = arith.constant dense<0.000000e+00> : vector<6x32xf32>
    %65 = tpu.matmul %55, %12, %cst_21 {dimension_numbers = #tpu.dot_dimension_numbers<[1], [0], [0], [1], [0, 0, 1, 1], [], []>} : vector<6x32xbf16>, vector<32x32xbf16>, vector<6x32xf32> -> vector<6x32xf32>
    %66 = arith.addf %64, %65 : vector<6x32xf32>
    %67 = arith.negf %66 : vector<6x32xf32>
    %68 = math.exp %67 : vector<6x32xf32>
    %cst_22 = arith.constant 1.000000e+00 : f32
    %69 = vector.broadcast %cst_22 : f32 to vector<6x32xf32>
    %70 = arith.addf %69, %68 : vector<6x32xf32>
    %71 = arith.divf %69, %70 : vector<6x32xf32>
    %72 = vector.extract_strided_slice %8 {offsets = [6, 0], sizes = [6, 32], strides = [1, 1]} : vector<48x32xf32> to vector<6x32xf32>
    %cst_23 = arith.constant dense<0.000000e+00> : vector<6x32xf32>
    %73 = tpu.matmul %55, %13, %cst_23 {dimension_numbers = #tpu.dot_dimension_numbers<[1], [0], [0], [1], [0, 0, 1, 1], [], []>} : vector<6x32xbf16>, vector<32x32xbf16>, vector<6x32xf32> -> vector<6x32xf32>
    %74 = arith.addf %72, %73 : vector<6x32xf32>
    %75 = math.tanh %74 : vector<6x32xf32>
    %76 = vector.extract_strided_slice %9 {offsets = [6, 0], sizes = [6, 32], strides = [1, 1]} : vector<48x32xf32> to vector<6x32xf32>
    %cst_24 = arith.constant dense<0.000000e+00> : vector<6x32xf32>
    %77 = tpu.matmul %55, %14, %cst_24 {dimension_numbers = #tpu.dot_dimension_numbers<[1], [0], [0], [1], [0, 0, 1, 1], [], []>} : vector<6x32xbf16>, vector<32x32xbf16>, vector<6x32xf32> -> vector<6x32xf32>
    %78 = arith.addf %76, %77 : vector<6x32xf32>
    %79 = arith.negf %78 : vector<6x32xf32>
    %80 = math.exp %79 : vector<6x32xf32>
    %cst_25 = arith.constant 1.000000e+00 : f32
    %81 = vector.broadcast %cst_25 : f32 to vector<6x32xf32>
    %82 = arith.addf %81, %80 : vector<6x32xf32>
    %83 = arith.divf %81, %82 : vector<6x32xf32>
    %84 = arith.mulf %71, %48 : vector<6x32xf32>
    %85 = arith.mulf %63, %75 : vector<6x32xf32>
    %86 = arith.addf %84, %85 : vector<6x32xf32>
    %87 = math.tanh %86 : vector<6x32xf32>
    %88 = arith.mulf %83, %87 : vector<6x32xf32>
    %89 = vector.extract_strided_slice %88 {offsets = [0, 0], sizes = [4, 32], strides = [1, 1]} : vector<6x32xf32> to vector<4x32xf32>
    %c1 = arith.constant 1 : index
    %c0_26 = arith.constant 0 : index
    %c0_27 = arith.constant 0 : index
    %90 = vector.load %arg13[%c1, %c0_26, %c0_27] : memref<8x4x32xf32, #tpu.memory_space<vmem>>, vector<1x4x32xf32>
    %91 = vector.shape_cast %90 : vector<1x4x32xf32> to vector<4x32xf32>
    %92 = vector.shape_cast %89 : vector<4x32xf32> to vector<1x4x32xf32>
    tpu.vector_store %arg13[%c1, %c0_26, %c0_27], %92 {strides = array<i32>} : memref<8x4x32xf32, #tpu.memory_space<vmem>>, vector<1x4x32xf32>,
    %93 = arith.truncf %88 : vector<6x32xf32> to vector<6x32xbf16>
    %94 = vector.extract_strided_slice %6 {offsets = [12, 0], sizes = [6, 32], strides = [1, 1]} : vector<48x32xf32> to vector<6x32xf32>
    %cst_28 = arith.constant dense<0.000000e+00> : vector<6x32xf32>
    %95 = tpu.matmul %93, %11, %cst_28 {dimension_numbers = #tpu.dot_dimension_numbers<[1], [0], [0], [1], [0, 0, 1, 1], [], []>} : vector<6x32xbf16>, vector<32x32xbf16>, vector<6x32xf32> -> vector<6x32xf32>
    %96 = arith.addf %94, %95 : vector<6x32xf32>
    %97 = arith.negf %96 : vector<6x32xf32>
    %98 = math.exp %97 : vector<6x32xf32>
    %cst_29 = arith.constant 1.000000e+00 : f32
    %99 = vector.broadcast %cst_29 : f32 to vector<6x32xf32>
    %100 = arith.addf %99, %98 : vector<6x32xf32>
    %101 = arith.divf %99, %100 : vector<6x32xf32>
    %102 = vector.extract_strided_slice %7 {offsets = [12, 0], sizes = [6, 32], strides = [1, 1]} : vector<48x32xf32> to vector<6x32xf32>
    %cst_30 = arith.constant dense<0.000000e+00> : vector<6x32xf32>
    %103 = tpu.matmul %93, %12, %cst_30 {dimension_numbers = #tpu.dot_dimension_numbers<[1], [0], [0], [1], [0, 0, 1, 1], [], []>} : vector<6x32xbf16>, vector<32x32xbf16>, vector<6x32xf32> -> vector<6x32xf32>
    %104 = arith.addf %102, %103 : vector<6x32xf32>
    %105 = arith.negf %104 : vector<6x32xf32>
    %106 = math.exp %105 : vector<6x32xf32>
    %cst_31 = arith.constant 1.000000e+00 : f32
    %107 = vector.broadcast %cst_31 : f32 to vector<6x32xf32>
    %108 = arith.addf %107, %106 : vector<6x32xf32>
    %109 = arith.divf %107, %108 : vector<6x32xf32>
    %110 = vector.extract_strided_slice %8 {offsets = [12, 0], sizes = [6, 32], strides = [1, 1]} : vector<48x32xf32> to vector<6x32xf32>
    %cst_32 = arith.constant dense<0.000000e+00> : vector<6x32xf32>
    %111 = tpu.matmul %93, %13, %cst_32 {dimension_numbers = #tpu.dot_dimension_numbers<[1], [0], [0], [1], [0, 0, 1, 1], [], []>} : vector<6x32xbf16>, vector<32x32xbf16>, vector<6x32xf32> -> vector<6x32xf32>
    %112 = arith.addf %110, %111 : vector<6x32xf32>
    %113 = math.tanh %112 : vector<6x32xf32>
    %114 = vector.extract_strided_slice %9 {offsets = [12, 0], sizes = [6, 32], strides = [1, 1]} : vector<48x32xf32> to vector<6x32xf32>
    %cst_33 = arith.constant dense<0.000000e+00> : vector<6x32xf32>
    %115 = tpu.matmul %93, %14, %cst_33 {dimension_numbers = #tpu.dot_dimension_numbers<[1], [0], [0], [1], [0, 0, 1, 1], [], []>} : vector<6x32xbf16>, vector<32x32xbf16>, vector<6x32xf32> -> vector<6x32xf32>
    %116 = arith.addf %114, %115 : vector<6x32xf32>
    %117 = arith.negf %116 : vector<6x32xf32>
    %118 = math.exp %117 : vector<6x32xf32>
    %cst_34 = arith.constant 1.000000e+00 : f32
    %119 = vector.broadcast %cst_34 : f32 to vector<6x32xf32>
    %120 = arith.addf %119, %118 : vector<6x32xf32>
    %121 = arith.divf %119, %120 : vector<6x32xf32>
    %122 = arith.mulf %109, %86 : vector<6x32xf32>
    %123 = arith.mulf %101, %113 : vector<6x32xf32>
    %124 = arith.addf %122, %123 : vector<6x32xf32>
    %125 = math.tanh %124 : vector<6x32xf32>
    %126 = arith.mulf %121, %125 : vector<6x32xf32>
    %127 = vector.extract_strided_slice %126 {offsets = [0, 0], sizes = [4, 32], strides = [1, 1]} : vector<6x32xf32> to vector<4x32xf32>
    %c2 = arith.constant 2 : index
    %c0_35 = arith.constant 0 : index
    %c0_36 = arith.constant 0 : index
    %128 = vector.load %arg13[%c2, %c0_35, %c0_36] : memref<8x4x32xf32, #tpu.memory_space<vmem>>, vector<1x4x32xf32>
    %129 = vector.shape_cast %128 : vector<1x4x32xf32> to vector<4x32xf32>
    %130 = vector.shape_cast %127 : vector<4x32xf32> to vector<1x4x32xf32>
    tpu.vector_store %arg13[%c2, %c0_35, %c0_36], %130 {strides = array<i32>} : memref<8x4x32xf32, #tpu.memory_space<vmem>>, vector<1x4x32xf32>,
    %131 = arith.truncf %126 : vector<6x32xf32> to vector<6x32xbf16>
    %132 = vector.extract_strided_slice %6 {offsets = [18, 0], sizes = [6, 32], strides = [1, 1]} : vector<48x32xf32> to vector<6x32xf32>
    %cst_37 = arith.constant dense<0.000000e+00> : vector<6x32xf32>
    %133 = tpu.matmul %131, %11, %cst_37 {dimension_numbers = #tpu.dot_dimension_numbers<[1], [0], [0], [1], [0, 0, 1, 1], [], []>} : vector<6x32xbf16>, vector<32x32xbf16>, vector<6x32xf32> -> vector<6x32xf32>
    %134 = arith.addf %132, %133 : vector<6x32xf32>
    %135 = arith.negf %134 : vector<6x32xf32>
    %136 = math.exp %135 : vector<6x32xf32>
    %cst_38 = arith.constant 1.000000e+00 : f32
    %137 = vector.broadcast %cst_38 : f32 to vector<6x32xf32>
    %138 = arith.addf %137, %136 : vector<6x32xf32>
    %139 = arith.divf %137, %138 : vector<6x32xf32>
    %140 = vector.extract_strided_slice %7 {offsets = [18, 0], sizes = [6, 32], strides = [1, 1]} : vector<48x32xf32> to vector<6x32xf32>
    %cst_39 = arith.constant dense<0.000000e+00> : vector<6x32xf32>
    %141 = tpu.matmul %131, %12, %cst_39 {dimension_numbers = #tpu.dot_dimension_numbers<[1], [0], [0], [1], [0, 0, 1, 1], [], []>} : vector<6x32xbf16>, vector<32x32xbf16>, vector<6x32xf32> -> vector<6x32xf32>
    %142 = arith.addf %140, %141 : vector<6x32xf32>
    %143 = arith.negf %142 : vector<6x32xf32>
    %144 = math.exp %143 : vector<6x32xf32>
    %cst_40 = arith.constant 1.000000e+00 : f32
    %145 = vector.broadcast %cst_40 : f32 to vector<6x32xf32>
    %146 = arith.addf %145, %144 : vector<6x32xf32>
    %147 = arith.divf %145, %146 : vector<6x32xf32>
    %148 = vector.extract_strided_slice %8 {offsets = [18, 0], sizes = [6, 32], strides = [1, 1]} : vector<48x32xf32> to vector<6x32xf32>
    %cst_41 = arith.constant dense<0.000000e+00> : vector<6x32xf32>
    %149 = tpu.matmul %131, %13, %cst_41 {dimension_numbers = #tpu.dot_dimension_numbers<[1], [0], [0], [1], [0, 0, 1, 1], [], []>} : vector<6x32xbf16>, vector<32x32xbf16>, vector<6x32xf32> -> vector<6x32xf32>
    %150 = arith.addf %148, %149 : vector<6x32xf32>
    %151 = math.tanh %150 : vector<6x32xf32>
    %152 = vector.extract_strided_slice %9 {offsets = [18, 0], sizes = [6, 32], strides = [1, 1]} : vector<48x32xf32> to vector<6x32xf32>
    %cst_42 = arith.constant dense<0.000000e+00> : vector<6x32xf32>
    %153 = tpu.matmul %131, %14, %cst_42 {dimension_numbers = #tpu.dot_dimension_numbers<[1], [0], [0], [1], [0, 0, 1, 1], [], []>} : vector<6x32xbf16>, vector<32x32xbf16>, vector<6x32xf32> -> vector<6x32xf32>
    %154 = arith.addf %152, %153 : vector<6x32xf32>
    %155 = arith.negf %154 : vector<6x32xf32>
    %156 = math.exp %155 : vector<6x32xf32>
    %cst_43 = arith.constant 1.000000e+00 : f32
    %157 = vector.broadcast %cst_43 : f32 to vector<6x32xf32>
    %158 = arith.addf %157, %156 : vector<6x32xf32>
    %159 = arith.divf %157, %158 : vector<6x32xf32>
    %160 = arith.mulf %147, %124 : vector<6x32xf32>
    %161 = arith.mulf %139, %151 : vector<6x32xf32>
    %162 = arith.addf %160, %161 : vector<6x32xf32>
    %163 = math.tanh %162 : vector<6x32xf32>
    %164 = arith.mulf %159, %163 : vector<6x32xf32>
    %165 = vector.extract_strided_slice %164 {offsets = [0, 0], sizes = [4, 32], strides = [1, 1]} : vector<6x32xf32> to vector<4x32xf32>
    %c3 = arith.constant 3 : index
    %c0_44 = arith.constant 0 : index
    %c0_45 = arith.constant 0 : index
    %166 = vector.load %arg13[%c3, %c0_44, %c0_45] : memref<8x4x32xf32, #tpu.memory_space<vmem>>, vector<1x4x32xf32>
    %167 = vector.shape_cast %166 : vector<1x4x32xf32> to vector<4x32xf32>
    %168 = vector.shape_cast %165 : vector<4x32xf32> to vector<1x4x32xf32>
    tpu.vector_store %arg13[%c3, %c0_44, %c0_45], %168 {strides = array<i32>} : memref<8x4x32xf32, #tpu.memory_space<vmem>>, vector<1x4x32xf32>,
    %169 = arith.truncf %164 : vector<6x32xf32> to vector<6x32xbf16>
    %170 = vector.extract_strided_slice %6 {offsets = [24, 0], sizes = [6, 32], strides = [1, 1]} : vector<48x32xf32> to vector<6x32xf32>
    %cst_46 = arith.constant dense<0.000000e+00> : vector<6x32xf32>
    %171 = tpu.matmul %169, %11, %cst_46 {dimension_numbers = #tpu.dot_dimension_numbers<[1], [0], [0], [1], [0, 0, 1, 1], [], []>} : vector<6x32xbf16>, vector<32x32xbf16>, vector<6x32xf32> -> vector<6x32xf32>
    %172 = arith.addf %170, %171 : vector<6x32xf32>
    %173 = arith.negf %172 : vector<6x32xf32>
    %174 = math.exp %173 : vector<6x32xf32>
    %cst_47 = arith.constant 1.000000e+00 : f32
    %175 = vector.broadcast %cst_47 : f32 to vector<6x32xf32>
    %176 = arith.addf %175, %174 : vector<6x32xf32>
    %177 = arith.divf %175, %176 : vector<6x32xf32>
    %178 = vector.extract_strided_slice %7 {offsets = [24, 0], sizes = [6, 32], strides = [1, 1]} : vector<48x32xf32> to vector<6x32xf32>
    %cst_48 = arith.constant dense<0.000000e+00> : vector<6x32xf32>
    %179 = tpu.matmul %169, %12, %cst_48 {dimension_numbers = #tpu.dot_dimension_numbers<[1], [0], [0], [1], [0, 0, 1, 1], [], []>} : vector<6x32xbf16>, vector<32x32xbf16>, vector<6x32xf32> -> vector<6x32xf32>
    %180 = arith.addf %178, %179 : vector<6x32xf32>
    %181 = arith.negf %180 : vector<6x32xf32>
    %182 = math.exp %181 : vector<6x32xf32>
    %cst_49 = arith.constant 1.000000e+00 : f32
    %183 = vector.broadcast %cst_49 : f32 to vector<6x32xf32>
    %184 = arith.addf %183, %182 : vector<6x32xf32>
    %185 = arith.divf %183, %184 : vector<6x32xf32>
    %186 = vector.extract_strided_slice %8 {offsets = [24, 0], sizes = [6, 32], strides = [1, 1]} : vector<48x32xf32> to vector<6x32xf32>
    %cst_50 = arith.constant dense<0.000000e+00> : vector<6x32xf32>
    %187 = tpu.matmul %169, %13, %cst_50 {dimension_numbers = #tpu.dot_dimension_numbers<[1], [0], [0], [1], [0, 0, 1, 1], [], []>} : vector<6x32xbf16>, vector<32x32xbf16>, vector<6x32xf32> -> vector<6x32xf32>
    %188 = arith.addf %186, %187 : vector<6x32xf32>
    %189 = math.tanh %188 : vector<6x32xf32>
    %190 = vector.extract_strided_slice %9 {offsets = [24, 0], sizes = [6, 32], strides = [1, 1]} : vector<48x32xf32> to vector<6x32xf32>
    %cst_51 = arith.constant dense<0.000000e+00> : vector<6x32xf32>
    %191 = tpu.matmul %169, %14, %cst_51 {dimension_numbers = #tpu.dot_dimension_numbers<[1], [0], [0], [1], [0, 0, 1, 1], [], []>} : vector<6x32xbf16>, vector<32x32xbf16>, vector<6x32xf32> -> vector<6x32xf32>
    %192 = arith.addf %190, %191 : vector<6x32xf32>
    %193 = arith.negf %192 : vector<6x32xf32>
    %194 = math.exp %193 : vector<6x32xf32>
    %cst_52 = arith.constant 1.000000e+00 : f32
    %195 = vector.broadcast %cst_52 : f32 to vector<6x32xf32>
    %196 = arith.addf %195, %194 : vector<6x32xf32>
    %197 = arith.divf %195, %196 : vector<6x32xf32>
    %198 = arith.mulf %185, %162 : vector<6x32xf32>
    %199 = arith.mulf %177, %189 : vector<6x32xf32>
    %200 = arith.addf %198, %199 : vector<6x32xf32>
    %201 = math.tanh %200 : vector<6x32xf32>
    %202 = arith.mulf %197, %201 : vector<6x32xf32>
    %203 = vector.extract_strided_slice %202 {offsets = [0, 0], sizes = [4, 32], strides = [1, 1]} : vector<6x32xf32> to vector<4x32xf32>
    %c4 = arith.constant 4 : index
    %c0_53 = arith.constant 0 : index
    %c0_54 = arith.constant 0 : index
    %204 = vector.load %arg13[%c4, %c0_53, %c0_54] : memref<8x4x32xf32, #tpu.memory_space<vmem>>, vector<1x4x32xf32>
    %205 = vector.shape_cast %204 : vector<1x4x32xf32> to vector<4x32xf32>
    %206 = vector.shape_cast %203 : vector<4x32xf32> to vector<1x4x32xf32>
    tpu.vector_store %arg13[%c4, %c0_53, %c0_54], %206 {strides = array<i32>} : memref<8x4x32xf32, #tpu.memory_space<vmem>>, vector<1x4x32xf32>,
    %207 = arith.truncf %202 : vector<6x32xf32> to vector<6x32xbf16>
    %208 = vector.extract_strided_slice %6 {offsets = [30, 0], sizes = [6, 32], strides = [1, 1]} : vector<48x32xf32> to vector<6x32xf32>
    %cst_55 = arith.constant dense<0.000000e+00> : vector<6x32xf32>
    %209 = tpu.matmul %207, %11, %cst_55 {dimension_numbers = #tpu.dot_dimension_numbers<[1], [0], [0], [1], [0, 0, 1, 1], [], []>} : vector<6x32xbf16>, vector<32x32xbf16>, vector<6x32xf32> -> vector<6x32xf32>
    %210 = arith.addf %208, %209 : vector<6x32xf32>
    %211 = arith.negf %210 : vector<6x32xf32>
    %212 = math.exp %211 : vector<6x32xf32>
    %cst_56 = arith.constant 1.000000e+00 : f32
    %213 = vector.broadcast %cst_56 : f32 to vector<6x32xf32>
    %214 = arith.addf %213, %212 : vector<6x32xf32>
    %215 = arith.divf %213, %214 : vector<6x32xf32>
    %216 = vector.extract_strided_slice %7 {offsets = [30, 0], sizes = [6, 32], strides = [1, 1]} : vector<48x32xf32> to vector<6x32xf32>
    %cst_57 = arith.constant dense<0.000000e+00> : vector<6x32xf32>
    %217 = tpu.matmul %207, %12, %cst_57 {dimension_numbers = #tpu.dot_dimension_numbers<[1], [0], [0], [1], [0, 0, 1, 1], [], []>} : vector<6x32xbf16>, vector<32x32xbf16>, vector<6x32xf32> -> vector<6x32xf32>
    %218 = arith.addf %216, %217 : vector<6x32xf32>
    %219 = arith.negf %218 : vector<6x32xf32>
    %220 = math.exp %219 : vector<6x32xf32>
    %cst_58 = arith.constant 1.000000e+00 : f32
    %221 = vector.broadcast %cst_58 : f32 to vector<6x32xf32>
    %222 = arith.addf %221, %220 : vector<6x32xf32>
    %223 = arith.divf %221, %222 : vector<6x32xf32>
    %224 = vector.extract_strided_slice %8 {offsets = [30, 0], sizes = [6, 32], strides = [1, 1]} : vector<48x32xf32> to vector<6x32xf32>
    %cst_59 = arith.constant dense<0.000000e+00> : vector<6x32xf32>
    %225 = tpu.matmul %207, %13, %cst_59 {dimension_numbers = #tpu.dot_dimension_numbers<[1], [0], [0], [1], [0, 0, 1, 1], [], []>} : vector<6x32xbf16>, vector<32x32xbf16>, vector<6x32xf32> -> vector<6x32xf32>
    %226 = arith.addf %224, %225 : vector<6x32xf32>
    %227 = math.tanh %226 : vector<6x32xf32>
    %228 = vector.extract_strided_slice %9 {offsets = [30, 0], sizes = [6, 32], strides = [1, 1]} : vector<48x32xf32> to vector<6x32xf32>
    %cst_60 = arith.constant dense<0.000000e+00> : vector<6x32xf32>
    %229 = tpu.matmul %207, %14, %cst_60 {dimension_numbers = #tpu.dot_dimension_numbers<[1], [0], [0], [1], [0, 0, 1, 1], [], []>} : vector<6x32xbf16>, vector<32x32xbf16>, vector<6x32xf32> -> vector<6x32xf32>
    %230 = arith.addf %228, %229 : vector<6x32xf32>
    %231 = arith.negf %230 : vector<6x32xf32>
    %232 = math.exp %231 : vector<6x32xf32>
    %cst_61 = arith.constant 1.000000e+00 : f32
    %233 = vector.broadcast %cst_61 : f32 to vector<6x32xf32>
    %234 = arith.addf %233, %232 : vector<6x32xf32>
    %235 = arith.divf %233, %234 : vector<6x32xf32>
    %236 = arith.mulf %223, %200 : vector<6x32xf32>
    %237 = arith.mulf %215, %227 : vector<6x32xf32>
    %238 = arith.addf %236, %237 : vector<6x32xf32>
    %239 = math.tanh %238 : vector<6x32xf32>
    %240 = arith.mulf %235, %239 : vector<6x32xf32>
    %241 = vector.extract_strided_slice %240 {offsets = [0, 0], sizes = [4, 32], strides = [1, 1]} : vector<6x32xf32> to vector<4x32xf32>
    %c5 = arith.constant 5 : index
    %c0_62 = arith.constant 0 : index
    %c0_63 = arith.constant 0 : index
    %242 = vector.load %arg13[%c5, %c0_62, %c0_63] : memref<8x4x32xf32, #tpu.memory_space<vmem>>, vector<1x4x32xf32>
    %243 = vector.shape_cast %242 : vector<1x4x32xf32> to vector<4x32xf32>
    %244 = vector.shape_cast %241 : vector<4x32xf32> to vector<1x4x32xf32>
    tpu.vector_store %arg13[%c5, %c0_62, %c0_63], %244 {strides = array<i32>} : memref<8x4x32xf32, #tpu.memory_space<vmem>>, vector<1x4x32xf32>,
    %245 = arith.truncf %240 : vector<6x32xf32> to vector<6x32xbf16>
    %246 = vector.extract_strided_slice %6 {offsets = [36, 0], sizes = [6, 32], strides = [1, 1]} : vector<48x32xf32> to vector<6x32xf32>
    %cst_64 = arith.constant dense<0.000000e+00> : vector<6x32xf32>
    %247 = tpu.matmul %245, %11, %cst_64 {dimension_numbers = #tpu.dot_dimension_numbers<[1], [0], [0], [1], [0, 0, 1, 1], [], []>} : vector<6x32xbf16>, vector<32x32xbf16>, vector<6x32xf32> -> vector<6x32xf32>
    %248 = arith.addf %246, %247 : vector<6x32xf32>
    %249 = arith.negf %248 : vector<6x32xf32>
    %250 = math.exp %249 : vector<6x32xf32>
    %cst_65 = arith.constant 1.000000e+00 : f32
    %251 = vector.broadcast %cst_65 : f32 to vector<6x32xf32>
    %252 = arith.addf %251, %250 : vector<6x32xf32>
    %253 = arith.divf %251, %252 : vector<6x32xf32>
    %254 = vector.extract_strided_slice %7 {offsets = [36, 0], sizes = [6, 32], strides = [1, 1]} : vector<48x32xf32> to vector<6x32xf32>
    %cst_66 = arith.constant dense<0.000000e+00> : vector<6x32xf32>
    %255 = tpu.matmul %245, %12, %cst_66 {dimension_numbers = #tpu.dot_dimension_numbers<[1], [0], [0], [1], [0, 0, 1, 1], [], []>} : vector<6x32xbf16>, vector<32x32xbf16>, vector<6x32xf32> -> vector<6x32xf32>
    %256 = arith.addf %254, %255 : vector<6x32xf32>
    %257 = arith.negf %256 : vector<6x32xf32>
    %258 = math.exp %257 : vector<6x32xf32>
    %cst_67 = arith.constant 1.000000e+00 : f32
    %259 = vector.broadcast %cst_67 : f32 to vector<6x32xf32>
    %260 = arith.addf %259, %258 : vector<6x32xf32>
    %261 = arith.divf %259, %260 : vector<6x32xf32>
    %262 = vector.extract_strided_slice %8 {offsets = [36, 0], sizes = [6, 32], strides = [1, 1]} : vector<48x32xf32> to vector<6x32xf32>
    %cst_68 = arith.constant dense<0.000000e+00> : vector<6x32xf32>
    %263 = tpu.matmul %245, %13, %cst_68 {dimension_numbers = #tpu.dot_dimension_numbers<[1], [0], [0], [1], [0, 0, 1, 1], [], []>} : vector<6x32xbf16>, vector<32x32xbf16>, vector<6x32xf32> -> vector<6x32xf32>
    %264 = arith.addf %262, %263 : vector<6x32xf32>
    %265 = math.tanh %264 : vector<6x32xf32>
    %266 = vector.extract_strided_slice %9 {offsets = [36, 0], sizes = [6, 32], strides = [1, 1]} : vector<48x32xf32> to vector<6x32xf32>
    %cst_69 = arith.constant dense<0.000000e+00> : vector<6x32xf32>
    %267 = tpu.matmul %245, %14, %cst_69 {dimension_numbers = #tpu.dot_dimension_numbers<[1], [0], [0], [1], [0, 0, 1, 1], [], []>} : vector<6x32xbf16>, vector<32x32xbf16>, vector<6x32xf32> -> vector<6x32xf32>
    %268 = arith.addf %266, %267 : vector<6x32xf32>
    %269 = arith.negf %268 : vector<6x32xf32>
    %270 = math.exp %269 : vector<6x32xf32>
    %cst_70 = arith.constant 1.000000e+00 : f32
    %271 = vector.broadcast %cst_70 : f32 to vector<6x32xf32>
    %272 = arith.addf %271, %270 : vector<6x32xf32>
    %273 = arith.divf %271, %272 : vector<6x32xf32>
    %274 = arith.mulf %261, %238 : vector<6x32xf32>
    %275 = arith.mulf %253, %265 : vector<6x32xf32>
    %276 = arith.addf %274, %275 : vector<6x32xf32>
    %277 = math.tanh %276 : vector<6x32xf32>
    %278 = arith.mulf %273, %277 : vector<6x32xf32>
    %279 = vector.extract_strided_slice %278 {offsets = [0, 0], sizes = [4, 32], strides = [1, 1]} : vector<6x32xf32> to vector<4x32xf32>
    %c6 = arith.constant 6 : index
    %c0_71 = arith.constant 0 : index
    %c0_72 = arith.constant 0 : index
    %280 = vector.load %arg13[%c6, %c0_71, %c0_72] : memref<8x4x32xf32, #tpu.memory_space<vmem>>, vector<1x4x32xf32>
    %281 = vector.shape_cast %280 : vector<1x4x32xf32> to vector<4x32xf32>
    %282 = vector.shape_cast %279 : vector<4x32xf32> to vector<1x4x32xf32>
    tpu.vector_store %arg13[%c6, %c0_71, %c0_72], %282 {strides = array<i32>} : memref<8x4x32xf32, #tpu.memory_space<vmem>>, vector<1x4x32xf32>,
    %283 = arith.truncf %278 : vector<6x32xf32> to vector<6x32xbf16>
    %284 = vector.extract_strided_slice %6 {offsets = [42, 0], sizes = [6, 32], strides = [1, 1]} : vector<48x32xf32> to vector<6x32xf32>
    %cst_73 = arith.constant dense<0.000000e+00> : vector<6x32xf32>
    %285 = tpu.matmul %283, %11, %cst_73 {dimension_numbers = #tpu.dot_dimension_numbers<[1], [0], [0], [1], [0, 0, 1, 1], [], []>} : vector<6x32xbf16>, vector<32x32xbf16>, vector<6x32xf32> -> vector<6x32xf32>
    %286 = arith.addf %284, %285 : vector<6x32xf32>
    %287 = arith.negf %286 : vector<6x32xf32>
    %288 = math.exp %287 : vector<6x32xf32>
    %cst_74 = arith.constant 1.000000e+00 : f32
    %289 = vector.broadcast %cst_74 : f32 to vector<6x32xf32>
    %290 = arith.addf %289, %288 : vector<6x32xf32>
    %291 = arith.divf %289, %290 : vector<6x32xf32>
    %292 = vector.extract_strided_slice %7 {offsets = [42, 0], sizes = [6, 32], strides = [1, 1]} : vector<48x32xf32> to vector<6x32xf32>
    %cst_75 = arith.constant dense<0.000000e+00> : vector<6x32xf32>
    %293 = tpu.matmul %283, %12, %cst_75 {dimension_numbers = #tpu.dot_dimension_numbers<[1], [0], [0], [1], [0, 0, 1, 1], [], []>} : vector<6x32xbf16>, vector<32x32xbf16>, vector<6x32xf32> -> vector<6x32xf32>
    %294 = arith.addf %292, %293 : vector<6x32xf32>
    %295 = arith.negf %294 : vector<6x32xf32>
    %296 = math.exp %295 : vector<6x32xf32>
    %cst_76 = arith.constant 1.000000e+00 : f32
    %297 = vector.broadcast %cst_76 : f32 to vector<6x32xf32>
    %298 = arith.addf %297, %296 : vector<6x32xf32>
    %299 = arith.divf %297, %298 : vector<6x32xf32>
    %300 = vector.extract_strided_slice %8 {offsets = [42, 0], sizes = [6, 32], strides = [1, 1]} : vector<48x32xf32> to vector<6x32xf32>
    %cst_77 = arith.constant dense<0.000000e+00> : vector<6x32xf32>
    %301 = tpu.matmul %283, %13, %cst_77 {dimension_numbers = #tpu.dot_dimension_numbers<[1], [0], [0], [1], [0, 0, 1, 1], [], []>} : vector<6x32xbf16>, vector<32x32xbf16>, vector<6x32xf32> -> vector<6x32xf32>
    %302 = arith.addf %300, %301 : vector<6x32xf32>
    %303 = math.tanh %302 : vector<6x32xf32>
    %304 = vector.extract_strided_slice %9 {offsets = [42, 0], sizes = [6, 32], strides = [1, 1]} : vector<48x32xf32> to vector<6x32xf32>
    %cst_78 = arith.constant dense<0.000000e+00> : vector<6x32xf32>
    %305 = tpu.matmul %283, %14, %cst_78 {dimension_numbers = #tpu.dot_dimension_numbers<[1], [0], [0], [1], [0, 0, 1, 1], [], []>} : vector<6x32xbf16>, vector<32x32xbf16>, vector<6x32xf32> -> vector<6x32xf32>
    %306 = arith.addf %304, %305 : vector<6x32xf32>
    %307 = arith.negf %306 : vector<6x32xf32>
    %308 = math.exp %307 : vector<6x32xf32>
    %cst_79 = arith.constant 1.000000e+00 : f32
    %309 = vector.broadcast %cst_79 : f32 to vector<6x32xf32>
    %310 = arith.addf %309, %308 : vector<6x32xf32>
    %311 = arith.divf %309, %310 : vector<6x32xf32>
    %312 = arith.mulf %299, %276 : vector<6x32xf32>
    %313 = arith.mulf %291, %303 : vector<6x32xf32>
    %314 = arith.addf %312, %313 : vector<6x32xf32>
    %315 = math.tanh %314 : vector<6x32xf32>
    %316 = arith.mulf %311, %315 : vector<6x32xf32>
    %317 = vector.extract_strided_slice %316 {offsets = [0, 0], sizes = [4, 32], strides = [1, 1]} : vector<6x32xf32> to vector<4x32xf32>
    %c7 = arith.constant 7 : index
    %c0_80 = arith.constant 0 : index
    %c0_81 = arith.constant 0 : index
    %318 = vector.load %arg13[%c7, %c0_80, %c0_81] : memref<8x4x32xf32, #tpu.memory_space<vmem>>, vector<1x4x32xf32>
    %319 = vector.shape_cast %318 : vector<1x4x32xf32> to vector<4x32xf32>
    %320 = vector.shape_cast %317 : vector<4x32xf32> to vector<1x4x32xf32>
    tpu.vector_store %arg13[%c7, %c0_80, %c0_81], %320 {strides = array<i32>} : memref<8x4x32xf32, #tpu.memory_space<vmem>>, vector<1x4x32xf32>,
    %321 = vector.extract_strided_slice %314 {offsets = [4, 0], sizes = [2, 32], strides = [1, 1]} : vector<6x32xf32> to vector<2x32xf32>
    %c0_82 = arith.constant 0 : index
    %c0_83 = arith.constant 0 : index
    %322 = vector.load %arg4[%c0_82, %c0_83] : memref<32x32xf32, #tpu.memory_space<vmem>>, vector<32x32xf32>
    %c0_84 = arith.constant 0 : index
    %c0_85 = arith.constant 0 : index
    %323 = vector.load %arg5[%c0_84, %c0_85] : memref<32x32xf32, #tpu.memory_space<vmem>>, vector<32x32xf32>
    %c0_86 = arith.constant 0 : index
    %c0_87 = arith.constant 0 : index
    %324 = vector.load %arg6[%c0_86, %c0_87] : memref<1x32xf32, #tpu.memory_space<vmem>>, vector<1x32xf32>
    %cst_88 = arith.constant dense<0.000000e+00> : vector<4x32xf32>
    %325 = tpu.matmul %51, %322, %cst_88 {dimension_numbers = #tpu.dot_dimension_numbers<[1], [0], [0], [1], [0, 0, 1, 1], [], []>} : vector<4x32xf32>, vector<32x32xf32>, vector<4x32xf32> -> vector<4x32xf32>
    %cst_89 = arith.constant dense<0.000000e+00> : vector<4x32xf32>
    %326 = tpu.matmul %89, %323, %cst_89 {dimension_numbers = #tpu.dot_dimension_numbers<[1], [0], [0], [1], [0, 0, 1, 1], [], []>} : vector<4x32xf32>, vector<32x32xf32>, vector<4x32xf32> -> vector<4x32xf32>
    %327 = arith.addf %325, %326 : vector<4x32xf32>
    %328 = vector.broadcast %324 : vector<1x32xf32> to vector<4x32xf32>
    %329 = arith.addf %327, %328 : vector<4x32xf32>
    %cst_90 = arith.constant dense<0.000000e+00> : vector<4x32xf32>
    %330 = tpu.matmul %89, %322, %cst_90 {dimension_numbers = #tpu.dot_dimension_numbers<[1], [0], [0], [1], [0, 0, 1, 1], [], []>} : vector<4x32xf32>, vector<32x32xf32>, vector<4x32xf32> -> vector<4x32xf32>
    %cst_91 = arith.constant dense<0.000000e+00> : vector<4x32xf32>
    %331 = tpu.matmul %127, %323, %cst_91 {dimension_numbers = #tpu.dot_dimension_numbers<[1], [0], [0], [1], [0, 0, 1, 1], [], []>} : vector<4x32xf32>, vector<32x32xf32>, vector<4x32xf32> -> vector<4x32xf32>
    %332 = arith.addf %330, %331 : vector<4x32xf32>
    %333 = vector.broadcast %324 : vector<1x32xf32> to vector<4x32xf32>
    %334 = arith.addf %332, %333 : vector<4x32xf32>
    %cst_92 = arith.constant dense<0.000000e+00> : vector<4x32xf32>
    %335 = tpu.matmul %127, %322, %cst_92 {dimension_numbers = #tpu.dot_dimension_numbers<[1], [0], [0], [1], [0, 0, 1, 1], [], []>} : vector<4x32xf32>, vector<32x32xf32>, vector<4x32xf32> -> vector<4x32xf32>
    %cst_93 = arith.constant dense<0.000000e+00> : vector<4x32xf32>
    %336 = tpu.matmul %165, %323, %cst_93 {dimension_numbers = #tpu.dot_dimension_numbers<[1], [0], [0], [1], [0, 0, 1, 1], [], []>} : vector<4x32xf32>, vector<32x32xf32>, vector<4x32xf32> -> vector<4x32xf32>
    %337 = arith.addf %335, %336 : vector<4x32xf32>
    %338 = vector.broadcast %324 : vector<1x32xf32> to vector<4x32xf32>
    %339 = arith.addf %337, %338 : vector<4x32xf32>
    %cst_94 = arith.constant dense<0.000000e+00> : vector<4x32xf32>
    %340 = tpu.matmul %165, %322, %cst_94 {dimension_numbers = #tpu.dot_dimension_numbers<[1], [0], [0], [1], [0, 0, 1, 1], [], []>} : vector<4x32xf32>, vector<32x32xf32>, vector<4x32xf32> -> vector<4x32xf32>
    %cst_95 = arith.constant dense<0.000000e+00> : vector<4x32xf32>
    %341 = tpu.matmul %203, %323, %cst_95 {dimension_numbers = #tpu.dot_dimension_numbers<[1], [0], [0], [1], [0, 0, 1, 1], [], []>} : vector<4x32xf32>, vector<32x32xf32>, vector<4x32xf32> -> vector<4x32xf32>
    %342 = arith.addf %340, %341 : vector<4x32xf32>
    %343 = vector.broadcast %324 : vector<1x32xf32> to vector<4x32xf32>
    %344 = arith.addf %342, %343 : vector<4x32xf32>
    %cst_96 = arith.constant dense<0.000000e+00> : vector<4x32xf32>
    %345 = tpu.matmul %203, %322, %cst_96 {dimension_numbers = #tpu.dot_dimension_numbers<[1], [0], [0], [1], [0, 0, 1, 1], [], []>} : vector<4x32xf32>, vector<32x32xf32>, vector<4x32xf32> -> vector<4x32xf32>
    %cst_97 = arith.constant dense<0.000000e+00> : vector<4x32xf32>
    %346 = tpu.matmul %241, %323, %cst_97 {dimension_numbers = #tpu.dot_dimension_numbers<[1], [0], [0], [1], [0, 0, 1, 1], [], []>} : vector<4x32xf32>, vector<32x32xf32>, vector<4x32xf32> -> vector<4x32xf32>
    %347 = arith.addf %345, %346 : vector<4x32xf32>
    %348 = vector.broadcast %324 : vector<1x32xf32> to vector<4x32xf32>
    %349 = arith.addf %347, %348 : vector<4x32xf32>
    %cst_98 = arith.constant dense<0.000000e+00> : vector<4x32xf32>
    %350 = tpu.matmul %241, %322, %cst_98 {dimension_numbers = #tpu.dot_dimension_numbers<[1], [0], [0], [1], [0, 0, 1, 1], [], []>} : vector<4x32xf32>, vector<32x32xf32>, vector<4x32xf32> -> vector<4x32xf32>
    %cst_99 = arith.constant dense<0.000000e+00> : vector<4x32xf32>
    %351 = tpu.matmul %279, %323, %cst_99 {dimension_numbers = #tpu.dot_dimension_numbers<[1], [0], [0], [1], [0, 0, 1, 1], [], []>} : vector<4x32xf32>, vector<32x32xf32>, vector<4x32xf32> -> vector<4x32xf32>
    %352 = arith.addf %350, %351 : vector<4x32xf32>
    %353 = vector.broadcast %324 : vector<1x32xf32> to vector<4x32xf32>
    %354 = arith.addf %352, %353 : vector<4x32xf32>
    %cst_100 = arith.constant dense<0.000000e+00> : vector<4x32xf32>
    %355 = tpu.matmul %279, %322, %cst_100 {dimension_numbers = #tpu.dot_dimension_numbers<[1], [0], [0], [1], [0, 0, 1, 1], [], []>} : vector<4x32xf32>, vector<32x32xf32>, vector<4x32xf32> -> vector<4x32xf32>
    %cst_101 = arith.constant dense<0.000000e+00> : vector<4x32xf32>
    %356 = tpu.matmul %317, %323, %cst_101 {dimension_numbers = #tpu.dot_dimension_numbers<[1], [0], [0], [1], [0, 0, 1, 1], [], []>} : vector<4x32xf32>, vector<32x32xf32>, vector<4x32xf32> -> vector<4x32xf32>
    %357 = arith.addf %355, %356 : vector<4x32xf32>
    %358 = vector.broadcast %324 : vector<1x32xf32> to vector<4x32xf32>
    %359 = arith.addf %357, %358 : vector<4x32xf32>
    %c0_102 = arith.constant 0 : index
    %c0_103 = arith.constant 0 : index
    %360 = vector.load %arg12[%c0_102, %c0_103] : memref<2x32xf32, #tpu.memory_space<vmem>>, vector<2x32xf32>
    %361 = arith.addf %360, %321 : vector<2x32xf32>
    %c0_104 = arith.constant 0 : index
    %c0_105 = arith.constant 0 : index
    %362 = vector.load %arg7[%c0_104, %c0_105] : memref<1x32xf32, #tpu.memory_space<vmem>>, vector<1x32xf32>
    %363 = vector.broadcast %362 : vector<1x32xf32> to vector<2x32xf32>
    %364 = arith.addf %361, %363 : vector<2x32xf32>
    %c0_106 = arith.constant 0 : index
    %c0_107 = arith.constant 0 : index
    %365 = vector.load %arg8[%c0_106, %c0_107] : memref<32x16xf32, #tpu.memory_space<vmem>>, vector<32x16xf32>
    %c0_108 = arith.constant 0 : index
    %c0_109 = arith.constant 0 : index
    %366 = vector.load %arg9[%c0_108, %c0_109] : memref<1x16xf32, #tpu.memory_space<vmem>>, vector<1x16xf32>
    %c0_110 = arith.constant 0 : index
    %c0_111 = arith.constant 0 : index
    %367 = vector.load %arg10[%c0_110, %c0_111] : memref<1x16xf32, #tpu.memory_space<vmem>>, vector<1x16xf32>
    %c0_112 = arith.constant 0 : index
    %c0_113 = arith.constant 0 : index
    %368 = vector.load %arg11[%c0_112, %c0_113] : memref<1x1xf32, #tpu.memory_space<vmem>>, vector<1x1xf32>
    %369 = vector.extract_strided_slice %329 {offsets = [0, 0], sizes = [2, 32], strides = [1, 1]} : vector<4x32xf32> to vector<2x32xf32>
    %370 = vector.extract_strided_slice %334 {offsets = [0, 0], sizes = [2, 32], strides = [1, 1]} : vector<4x32xf32> to vector<2x32xf32>
    %371 = vector.extract_strided_slice %339 {offsets = [0, 0], sizes = [2, 32], strides = [1, 1]} : vector<4x32xf32> to vector<2x32xf32>
    %372 = vector.extract_strided_slice %344 {offsets = [0, 0], sizes = [2, 32], strides = [1, 1]} : vector<4x32xf32> to vector<2x32xf32>
    %373 = vector.extract_strided_slice %349 {offsets = [0, 0], sizes = [2, 32], strides = [1, 1]} : vector<4x32xf32> to vector<2x32xf32>
    %374 = vector.extract_strided_slice %354 {offsets = [0, 0], sizes = [2, 32], strides = [1, 1]} : vector<4x32xf32> to vector<2x32xf32>
    %375 = vector.extract_strided_slice %359 {offsets = [0, 0], sizes = [2, 32], strides = [1, 1]} : vector<4x32xf32> to vector<2x32xf32>
    %376 = arith.addf %369, %370 : vector<2x32xf32>
    %377 = arith.addf %376, %371 : vector<2x32xf32>
    %378 = arith.addf %377, %372 : vector<2x32xf32>
    %379 = arith.addf %378, %373 : vector<2x32xf32>
    %380 = arith.addf %379, %374 : vector<2x32xf32>
    %381 = arith.addf %380, %375 : vector<2x32xf32>
    %cst_114 = arith.constant dense<0.000000e+00> : vector<32xf32>
    %382 = vector.multi_reduction <add>, %381, %cst_114 [0] : vector<2x32xf32> to vector<32xf32>
    %383 = vector.shape_cast %382 : vector<32xf32> to vector<1x32xf32>
    %cst_115 = arith.constant 0.0714285746 : f32
    %384 = vector.broadcast %cst_115 : f32 to vector<1x32xf32>
    %385 = arith.mulf %383, %384 : vector<1x32xf32>
    %386 = vector.broadcast %385 : vector<1x32xf32> to vector<2x32xf32>
    %387 = arith.subf %369, %386 : vector<2x32xf32>
    %388 = arith.mulf %387, %387 : vector<2x32xf32>
    %389 = vector.broadcast %385 : vector<1x32xf32> to vector<2x32xf32>
    %390 = arith.subf %370, %389 : vector<2x32xf32>
    %391 = arith.mulf %390, %390 : vector<2x32xf32>
    %392 = arith.addf %388, %391 : vector<2x32xf32>
    %393 = vector.broadcast %385 : vector<1x32xf32> to vector<2x32xf32>
    %394 = arith.subf %371, %393 : vector<2x32xf32>
    %395 = arith.mulf %394, %394 : vector<2x32xf32>
    %396 = arith.addf %392, %395 : vector<2x32xf32>
    %397 = vector.broadcast %385 : vector<1x32xf32> to vector<2x32xf32>
    %398 = arith.subf %372, %397 : vector<2x32xf32>
    %399 = arith.mulf %398, %398 : vector<2x32xf32>
    %400 = arith.addf %396, %399 : vector<2x32xf32>
    %401 = vector.broadcast %385 : vector<1x32xf32> to vector<2x32xf32>
    %402 = arith.subf %373, %401 : vector<2x32xf32>
    %403 = arith.mulf %402, %402 : vector<2x32xf32>
    %404 = arith.addf %400, %403 : vector<2x32xf32>
    %405 = vector.broadcast %385 : vector<1x32xf32> to vector<2x32xf32>
    %406 = arith.subf %374, %405 : vector<2x32xf32>
    %407 = arith.mulf %406, %406 : vector<2x32xf32>
    %408 = arith.addf %404, %407 : vector<2x32xf32>
    %409 = vector.broadcast %385 : vector<1x32xf32> to vector<2x32xf32>
    %410 = arith.subf %375, %409 : vector<2x32xf32>
    %411 = arith.mulf %410, %410 : vector<2x32xf32>
    %412 = arith.addf %408, %411 : vector<2x32xf32>
    %cst_116 = arith.constant dense<0.000000e+00> : vector<32xf32>
    %413 = vector.multi_reduction <add>, %412, %cst_116 [0] : vector<2x32xf32> to vector<32xf32>
    %414 = vector.shape_cast %413 : vector<32xf32> to vector<1x32xf32>
    %cst_117 = arith.constant 0.0714285746 : f32
    %415 = vector.broadcast %cst_117 : f32 to vector<1x32xf32>
    %416 = arith.mulf %414, %415 : vector<1x32xf32>
    %cst_118 = arith.constant 9.99999974E-6 : f32
    %417 = vector.broadcast %cst_118 : f32 to vector<1x32xf32>
    %418 = arith.addf %416, %417 : vector<1x32xf32>
    %419 = math.rsqrt %418 : vector<1x32xf32>
    %420 = vector.broadcast %385 : vector<1x32xf32> to vector<2x32xf32>
    %421 = arith.subf %369, %420 : vector<2x32xf32>
    %422 = vector.broadcast %419 : vector<1x32xf32> to vector<2x32xf32>
    %423 = arith.mulf %421, %422 : vector<2x32xf32>
    %cst_119 = arith.constant 0.000000e+00 : f32
    %424 = vector.broadcast %cst_119 : f32 to vector<2x32xf32>
    %425 = arith.maximumf %423, %424 : vector<2x32xf32>
    %426 = vector.broadcast %385 : vector<1x32xf32> to vector<2x32xf32>
    %427 = arith.subf %370, %426 : vector<2x32xf32>
    %428 = vector.broadcast %419 : vector<1x32xf32> to vector<2x32xf32>
    %429 = arith.mulf %427, %428 : vector<2x32xf32>
    %cst_120 = arith.constant 0.000000e+00 : f32
    %430 = vector.broadcast %cst_120 : f32 to vector<2x32xf32>
    %431 = arith.maximumf %429, %430 : vector<2x32xf32>
    %432 = arith.maximumf %425, %431 : vector<2x32xf32>
    %433 = vector.broadcast %385 : vector<1x32xf32> to vector<2x32xf32>
    %434 = arith.subf %371, %433 : vector<2x32xf32>
    %435 = vector.broadcast %419 : vector<1x32xf32> to vector<2x32xf32>
    %436 = arith.mulf %434, %435 : vector<2x32xf32>
    %cst_121 = arith.constant 0.000000e+00 : f32
    %437 = vector.broadcast %cst_121 : f32 to vector<2x32xf32>
    %438 = arith.maximumf %436, %437 : vector<2x32xf32>
    %439 = arith.maximumf %432, %438 : vector<2x32xf32>
    %440 = vector.broadcast %385 : vector<1x32xf32> to vector<2x32xf32>
    %441 = arith.subf %372, %440 : vector<2x32xf32>
    %442 = vector.broadcast %419 : vector<1x32xf32> to vector<2x32xf32>
    %443 = arith.mulf %441, %442 : vector<2x32xf32>
    %cst_122 = arith.constant 0.000000e+00 : f32
    %444 = vector.broadcast %cst_122 : f32 to vector<2x32xf32>
    %445 = arith.maximumf %443, %444 : vector<2x32xf32>
    %446 = arith.maximumf %439, %445 : vector<2x32xf32>
    %447 = vector.broadcast %385 : vector<1x32xf32> to vector<2x32xf32>
    %448 = arith.subf %373, %447 : vector<2x32xf32>
    %449 = vector.broadcast %419 : vector<1x32xf32> to vector<2x32xf32>
    %450 = arith.mulf %448, %449 : vector<2x32xf32>
    %cst_123 = arith.constant 0.000000e+00 : f32
    %451 = vector.broadcast %cst_123 : f32 to vector<2x32xf32>
    %452 = arith.maximumf %450, %451 : vector<2x32xf32>
    %453 = arith.maximumf %446, %452 : vector<2x32xf32>
    %454 = vector.broadcast %385 : vector<1x32xf32> to vector<2x32xf32>
    %455 = arith.subf %374, %454 : vector<2x32xf32>
    %456 = vector.broadcast %419 : vector<1x32xf32> to vector<2x32xf32>
    %457 = arith.mulf %455, %456 : vector<2x32xf32>
    %cst_124 = arith.constant 0.000000e+00 : f32
    %458 = vector.broadcast %cst_124 : f32 to vector<2x32xf32>
    %459 = arith.maximumf %457, %458 : vector<2x32xf32>
    %460 = arith.maximumf %453, %459 : vector<2x32xf32>
    %461 = vector.broadcast %385 : vector<1x32xf32> to vector<2x32xf32>
    %462 = arith.subf %375, %461 : vector<2x32xf32>
    %463 = vector.broadcast %419 : vector<1x32xf32> to vector<2x32xf32>
    %464 = arith.mulf %462, %463 : vector<2x32xf32>
    %cst_125 = arith.constant 0.000000e+00 : f32
    %465 = vector.broadcast %cst_125 : f32 to vector<2x32xf32>
    %466 = arith.maximumf %464, %465 : vector<2x32xf32>
    %467 = arith.maximumf %460, %466 : vector<2x32xf32>
    %468 = arith.addf %467, %364 : vector<2x32xf32>
    %cst_126 = arith.constant 0.000000e+00 : f32
    %469 = vector.broadcast %cst_126 : f32 to vector<2x32xf32>
    %470 = arith.maximumf %468, %469 : vector<2x32xf32>
    %cst_127 = arith.constant dense<0.000000e+00> : vector<2x16xf32>
    %471 = tpu.matmul %470, %365, %cst_127 {dimension_numbers = #tpu.dot_dimension_numbers<[1], [0], [0], [1], [0, 0, 1, 1], [], []>} : vector<2x32xf32>, vector<32x16xf32>, vector<2x16xf32> -> vector<2x16xf32>
    %472 = vector.broadcast %366 : vector<1x16xf32> to vector<2x16xf32>
    %473 = arith.addf %471, %472 : vector<2x16xf32>
    %cst_128 = arith.constant 0.000000e+00 : f32
    %474 = vector.broadcast %cst_128 : f32 to vector<2x16xf32>
    %475 = arith.maximumf %473, %474 : vector<2x16xf32>
    %cst_129 = arith.constant dense<0.000000e+00> : vector<16xf32>
    %476 = vector.multi_reduction <add>, %475, %cst_129 [0] : vector<2x16xf32> to vector<16xf32>
    %477 = vector.shape_cast %476 : vector<16xf32> to vector<1x16xf32>
    %cst_130 = arith.constant 2.000000e+00 : f32
    %478 = vector.broadcast %cst_130 : f32 to vector<1x16xf32>
    %479 = arith.divf %477, %478 : vector<1x16xf32>
    %480 = vector.broadcast %479 : vector<1x16xf32> to vector<2x16xf32>
    %481 = arith.subf %475, %480 : vector<2x16xf32>
    %482 = arith.mulf %481, %481 : vector<2x16xf32>
    %cst_131 = arith.constant dense<0.000000e+00> : vector<16xf32>
    %483 = vector.multi_reduction <add>, %482, %cst_131 [0] : vector<2x16xf32> to vector<16xf32>
    %484 = vector.shape_cast %483 : vector<16xf32> to vector<1x16xf32>
    %cst_132 = arith.constant 2.000000e+00 : f32
    %485 = vector.broadcast %cst_132 : f32 to vector<1x16xf32>
    %486 = arith.divf %484, %485 : vector<1x16xf32>
    %487 = vector.broadcast %479 : vector<1x16xf32> to vector<2x16xf32>
    %488 = arith.subf %475, %487 : vector<2x16xf32>
    %cst_133 = arith.constant 9.99999974E-6 : f32
    %489 = vector.broadcast %cst_133 : f32 to vector<1x16xf32>
    %490 = arith.addf %486, %489 : vector<1x16xf32>
    %491 = math.rsqrt %490 : vector<1x16xf32>
    %492 = vector.broadcast %491 : vector<1x16xf32> to vector<2x16xf32>
    %493 = arith.mulf %488, %492 : vector<2x16xf32>
    %494 = vector.broadcast %367 : vector<1x16xf32> to vector<2x16xf32>
    %495 = arith.mulf %493, %494 : vector<2x16xf32>
    %cst_134 = arith.constant dense<0.000000e+00> : vector<2xf32>
    %496 = vector.multi_reduction <add>, %495, %cst_134 [1] : vector<2x16xf32> to vector<2xf32>
    %497 = vector.shape_cast %496 : vector<2xf32> to vector<2x1xf32>
    %498 = vector.broadcast %368 : vector<1x1xf32> to vector<2x1xf32>
    %499 = arith.addf %497, %498 : vector<2x1xf32>
    %c0_135 = arith.constant 0 : index
    %c0_136 = arith.constant 0 : index
    %c0_137 = arith.constant 0 : index
    %500 = vector.load %arg14[%c0_135, %c0_136, %c0_137] : memref<2x2x1xf32, #tpu.memory_space<vmem>>, vector<1x2x1xf32>
    %501 = vector.shape_cast %500 : vector<1x2x1xf32> to vector<2x1xf32>
    %502 = vector.shape_cast %499 : vector<2x1xf32> to vector<1x2x1xf32>
    tpu.vector_store %arg14[%c0_135, %c0_136, %c0_137], %502 {strides = array<i32>} : memref<2x2x1xf32, #tpu.memory_space<vmem>>, vector<1x2x1xf32>,
    %503 = vector.extract_strided_slice %329 {offsets = [2, 0], sizes = [2, 32], strides = [1, 1]} : vector<4x32xf32> to vector<2x32xf32>
    %504 = vector.extract_strided_slice %334 {offsets = [2, 0], sizes = [2, 32], strides = [1, 1]} : vector<4x32xf32> to vector<2x32xf32>
    %505 = vector.extract_strided_slice %339 {offsets = [2, 0], sizes = [2, 32], strides = [1, 1]} : vector<4x32xf32> to vector<2x32xf32>
    %506 = vector.extract_strided_slice %344 {offsets = [2, 0], sizes = [2, 32], strides = [1, 1]} : vector<4x32xf32> to vector<2x32xf32>
    %507 = vector.extract_strided_slice %349 {offsets = [2, 0], sizes = [2, 32], strides = [1, 1]} : vector<4x32xf32> to vector<2x32xf32>
    %508 = vector.extract_strided_slice %354 {offsets = [2, 0], sizes = [2, 32], strides = [1, 1]} : vector<4x32xf32> to vector<2x32xf32>
    %509 = vector.extract_strided_slice %359 {offsets = [2, 0], sizes = [2, 32], strides = [1, 1]} : vector<4x32xf32> to vector<2x32xf32>
    %510 = arith.addf %503, %504 : vector<2x32xf32>
    %511 = arith.addf %510, %505 : vector<2x32xf32>
    %512 = arith.addf %511, %506 : vector<2x32xf32>
    %513 = arith.addf %512, %507 : vector<2x32xf32>
    %514 = arith.addf %513, %508 : vector<2x32xf32>
    %515 = arith.addf %514, %509 : vector<2x32xf32>
    %cst_138 = arith.constant dense<0.000000e+00> : vector<32xf32>
    %516 = vector.multi_reduction <add>, %515, %cst_138 [0] : vector<2x32xf32> to vector<32xf32>
    %517 = vector.shape_cast %516 : vector<32xf32> to vector<1x32xf32>
    %cst_139 = arith.constant 0.0714285746 : f32
    %518 = vector.broadcast %cst_139 : f32 to vector<1x32xf32>
    %519 = arith.mulf %517, %518 : vector<1x32xf32>
    %520 = vector.broadcast %519 : vector<1x32xf32> to vector<2x32xf32>
    %521 = arith.subf %503, %520 : vector<2x32xf32>
    %522 = arith.mulf %521, %521 : vector<2x32xf32>
    %523 = vector.broadcast %519 : vector<1x32xf32> to vector<2x32xf32>
    %524 = arith.subf %504, %523 : vector<2x32xf32>
    %525 = arith.mulf %524, %524 : vector<2x32xf32>
    %526 = arith.addf %522, %525 : vector<2x32xf32>
    %527 = vector.broadcast %519 : vector<1x32xf32> to vector<2x32xf32>
    %528 = arith.subf %505, %527 : vector<2x32xf32>
    %529 = arith.mulf %528, %528 : vector<2x32xf32>
    %530 = arith.addf %526, %529 : vector<2x32xf32>
    %531 = vector.broadcast %519 : vector<1x32xf32> to vector<2x32xf32>
    %532 = arith.subf %506, %531 : vector<2x32xf32>
    %533 = arith.mulf %532, %532 : vector<2x32xf32>
    %534 = arith.addf %530, %533 : vector<2x32xf32>
    %535 = vector.broadcast %519 : vector<1x32xf32> to vector<2x32xf32>
    %536 = arith.subf %507, %535 : vector<2x32xf32>
    %537 = arith.mulf %536, %536 : vector<2x32xf32>
    %538 = arith.addf %534, %537 : vector<2x32xf32>
    %539 = vector.broadcast %519 : vector<1x32xf32> to vector<2x32xf32>
    %540 = arith.subf %508, %539 : vector<2x32xf32>
    %541 = arith.mulf %540, %540 : vector<2x32xf32>
    %542 = arith.addf %538, %541 : vector<2x32xf32>
    %543 = vector.broadcast %519 : vector<1x32xf32> to vector<2x32xf32>
    %544 = arith.subf %509, %543 : vector<2x32xf32>
    %545 = arith.mulf %544, %544 : vector<2x32xf32>
    %546 = arith.addf %542, %545 : vector<2x32xf32>
    %cst_140 = arith.constant dense<0.000000e+00> : vector<32xf32>
    %547 = vector.multi_reduction <add>, %546, %cst_140 [0] : vector<2x32xf32> to vector<32xf32>
    %548 = vector.shape_cast %547 : vector<32xf32> to vector<1x32xf32>
    %cst_141 = arith.constant 0.0714285746 : f32
    %549 = vector.broadcast %cst_141 : f32 to vector<1x32xf32>
    %550 = arith.mulf %548, %549 : vector<1x32xf32>
    %cst_142 = arith.constant 9.99999974E-6 : f32
    %551 = vector.broadcast %cst_142 : f32 to vector<1x32xf32>
    %552 = arith.addf %550, %551 : vector<1x32xf32>
    %553 = math.rsqrt %552 : vector<1x32xf32>
    %554 = vector.broadcast %519 : vector<1x32xf32> to vector<2x32xf32>
    %555 = arith.subf %503, %554 : vector<2x32xf32>
    %556 = vector.broadcast %553 : vector<1x32xf32> to vector<2x32xf32>
    %557 = arith.mulf %555, %556 : vector<2x32xf32>
    %cst_143 = arith.constant 0.000000e+00 : f32
    %558 = vector.broadcast %cst_143 : f32 to vector<2x32xf32>
    %559 = arith.maximumf %557, %558 : vector<2x32xf32>
    %560 = vector.broadcast %519 : vector<1x32xf32> to vector<2x32xf32>
    %561 = arith.subf %504, %560 : vector<2x32xf32>
    %562 = vector.broadcast %553 : vector<1x32xf32> to vector<2x32xf32>
    %563 = arith.mulf %561, %562 : vector<2x32xf32>
    %cst_144 = arith.constant 0.000000e+00 : f32
    %564 = vector.broadcast %cst_144 : f32 to vector<2x32xf32>
    %565 = arith.maximumf %563, %564 : vector<2x32xf32>
    %566 = arith.maximumf %559, %565 : vector<2x32xf32>
    %567 = vector.broadcast %519 : vector<1x32xf32> to vector<2x32xf32>
    %568 = arith.subf %505, %567 : vector<2x32xf32>
    %569 = vector.broadcast %553 : vector<1x32xf32> to vector<2x32xf32>
    %570 = arith.mulf %568, %569 : vector<2x32xf32>
    %cst_145 = arith.constant 0.000000e+00 : f32
    %571 = vector.broadcast %cst_145 : f32 to vector<2x32xf32>
    %572 = arith.maximumf %570, %571 : vector<2x32xf32>
    %573 = arith.maximumf %566, %572 : vector<2x32xf32>
    %574 = vector.broadcast %519 : vector<1x32xf32> to vector<2x32xf32>
    %575 = arith.subf %506, %574 : vector<2x32xf32>
    %576 = vector.broadcast %553 : vector<1x32xf32> to vector<2x32xf32>
    %577 = arith.mulf %575, %576 : vector<2x32xf32>
    %cst_146 = arith.constant 0.000000e+00 : f32
    %578 = vector.broadcast %cst_146 : f32 to vector<2x32xf32>
    %579 = arith.maximumf %577, %578 : vector<2x32xf32>
    %580 = arith.maximumf %573, %579 : vector<2x32xf32>
    %581 = vector.broadcast %519 : vector<1x32xf32> to vector<2x32xf32>
    %582 = arith.subf %507, %581 : vector<2x32xf32>
    %583 = vector.broadcast %553 : vector<1x32xf32> to vector<2x32xf32>
    %584 = arith.mulf %582, %583 : vector<2x32xf32>
    %cst_147 = arith.constant 0.000000e+00 : f32
    %585 = vector.broadcast %cst_147 : f32 to vector<2x32xf32>
    %586 = arith.maximumf %584, %585 : vector<2x32xf32>
    %587 = arith.maximumf %580, %586 : vector<2x32xf32>
    %588 = vector.broadcast %519 : vector<1x32xf32> to vector<2x32xf32>
    %589 = arith.subf %508, %588 : vector<2x32xf32>
    %590 = vector.broadcast %553 : vector<1x32xf32> to vector<2x32xf32>
    %591 = arith.mulf %589, %590 : vector<2x32xf32>
    %cst_148 = arith.constant 0.000000e+00 : f32
    %592 = vector.broadcast %cst_148 : f32 to vector<2x32xf32>
    %593 = arith.maximumf %591, %592 : vector<2x32xf32>
    %594 = arith.maximumf %587, %593 : vector<2x32xf32>
    %595 = vector.broadcast %519 : vector<1x32xf32> to vector<2x32xf32>
    %596 = arith.subf %509, %595 : vector<2x32xf32>
    %597 = vector.broadcast %553 : vector<1x32xf32> to vector<2x32xf32>
    %598 = arith.mulf %596, %597 : vector<2x32xf32>
    %cst_149 = arith.constant 0.000000e+00 : f32
    %599 = vector.broadcast %cst_149 : f32 to vector<2x32xf32>
    %600 = arith.maximumf %598, %599 : vector<2x32xf32>
    %601 = arith.maximumf %594, %600 : vector<2x32xf32>
    %602 = arith.addf %601, %364 : vector<2x32xf32>
    %cst_150 = arith.constant 0.000000e+00 : f32
    %603 = vector.broadcast %cst_150 : f32 to vector<2x32xf32>
    %604 = arith.maximumf %602, %603 : vector<2x32xf32>
    %cst_151 = arith.constant dense<0.000000e+00> : vector<2x16xf32>
    %605 = tpu.matmul %604, %365, %cst_151 {dimension_numbers = #tpu.dot_dimension_numbers<[1], [0], [0], [1], [0, 0, 1, 1], [], []>} : vector<2x32xf32>, vector<32x16xf32>, vector<2x16xf32> -> vector<2x16xf32>
    %606 = vector.broadcast %366 : vector<1x16xf32> to vector<2x16xf32>
    %607 = arith.addf %605, %606 : vector<2x16xf32>
    %cst_152 = arith.constant 0.000000e+00 : f32
    %608 = vector.broadcast %cst_152 : f32 to vector<2x16xf32>
    %609 = arith.maximumf %607, %608 : vector<2x16xf32>
    %cst_153 = arith.constant dense<0.000000e+00> : vector<16xf32>
    %610 = vector.multi_reduction <add>, %609, %cst_153 [0] : vector<2x16xf32> to vector<16xf32>
    %611 = vector.shape_cast %610 : vector<16xf32> to vector<1x16xf32>
    %cst_154 = arith.constant 2.000000e+00 : f32
    %612 = vector.broadcast %cst_154 : f32 to vector<1x16xf32>
    %613 = arith.divf %611, %612 : vector<1x16xf32>
    %614 = vector.broadcast %613 : vector<1x16xf32> to vector<2x16xf32>
    %615 = arith.subf %609, %614 : vector<2x16xf32>
    %616 = arith.mulf %615, %615 : vector<2x16xf32>
    %cst_155 = arith.constant dense<0.000000e+00> : vector<16xf32>
    %617 = vector.multi_reduction <add>, %616, %cst_155 [0] : vector<2x16xf32> to vector<16xf32>
    %618 = vector.shape_cast %617 : vector<16xf32> to vector<1x16xf32>
    %cst_156 = arith.constant 2.000000e+00 : f32
    %619 = vector.broadcast %cst_156 : f32 to vector<1x16xf32>
    %620 = arith.divf %618, %619 : vector<1x16xf32>
    %621 = vector.broadcast %613 : vector<1x16xf32> to vector<2x16xf32>
    %622 = arith.subf %609, %621 : vector<2x16xf32>
    %cst_157 = arith.constant 9.99999974E-6 : f32
    %623 = vector.broadcast %cst_157 : f32 to vector<1x16xf32>
    %624 = arith.addf %620, %623 : vector<1x16xf32>
    %625 = math.rsqrt %624 : vector<1x16xf32>
    %626 = vector.broadcast %625 : vector<1x16xf32> to vector<2x16xf32>
    %627 = arith.mulf %622, %626 : vector<2x16xf32>
    %628 = vector.broadcast %367 : vector<1x16xf32> to vector<2x16xf32>
    %629 = arith.mulf %627, %628 : vector<2x16xf32>
    %cst_158 = arith.constant dense<0.000000e+00> : vector<2xf32>
    %630 = vector.multi_reduction <add>, %629, %cst_158 [1] : vector<2x16xf32> to vector<2xf32>
    %631 = vector.shape_cast %630 : vector<2xf32> to vector<2x1xf32>
    %632 = vector.broadcast %368 : vector<1x1xf32> to vector<2x1xf32>
    %633 = arith.addf %631, %632 : vector<2x1xf32>
    %c1_159 = arith.constant 1 : index
    %c0_160 = arith.constant 0 : index
    %c0_161 = arith.constant 0 : index
    %634 = vector.load %arg14[%c1_159, %c0_160, %c0_161] : memref<2x2x1xf32, #tpu.memory_space<vmem>>, vector<1x2x1xf32>
    %635 = vector.shape_cast %634 : vector<1x2x1xf32> to vector<2x1xf32>
    %636 = vector.shape_cast %633 : vector<2x1xf32> to vector<1x2x1xf32>
    tpu.vector_store %arg14[%c1_159, %c0_160, %c0_161], %636 {strides = array<i32>} : memref<2x2x1xf32, #tpu.memory_space<vmem>>, vector<1x2x1xf32>,
    return
  }
}

</mosaic_0001>

<bundles_post_ra>
// kernel: forward.1
= control target key start
LH: loop header
LB: loop body
LE: loop exit
PB: predicated region body
PF: predicated region fallthrough
CT: control target
= control target key end

     0   :  { %v4719_v1 = vmov 0.0   ;;  %vm4720_vm0 = vmmov 0   ;;  %s4721_s17 = smov 96   ;;  %s4722_s18 = smov 64   ;;  %vm93_vm1 = vcmask 261120   ;;  %v4724_v6 = vmov 0   ;;  %s5669_s2 = inlined_call_operand.vmem [shape: bf16[32,128], index: 2, kind: input, shape index: {}]   ;;  %s5670_s1 = inlined_call_operand.vmem [shape: bf16[32,128], index: 1, kind: input, shape index: {}]   ;;  %s5671_s0 = inlined_call_operand.vmem [shape: bf16[48,32], index: 0, kind: input, shape index: {}]   ;;  %s5672_s3 = inlined_call_operand.vmem [shape: f32[1,128], index: 3, kind: input, shape index: {}]   ;;  %s5673_s4 = inlined_call_operand.vmem [shape: f32[32,32], index: 4, kind: input, shape index: {}]   ;;  %s5674_s13 = inlined_call_operand.vmem [shape: f32[8,4,32], index: 13, kind: output, shape index: {0}]   ;;  %s5675_s5 = inlined_call_operand.vmem [shape: f32[32,32], index: 5, kind: input, shape index: {}]   ;;  %s5676_s6 = inlined_call_operand.vmem [shape: f32[1,32], index: 6, kind: input, shape index: {}]   ;;  %s5677_s8 = inlined_call_operand.vmem [shape: f32[32,16], index: 8, kind: input, shape index: {}]   ;;  %s5678_s12 = inlined_call_operand.vmem [shape: f32[2,32], index: 12, kind: input, shape index: {}]   ;;  %s5679_s7 = inlined_call_operand.vmem [shape: f32[1,32], index: 7, kind: input, shape index: {}]   ;;  %s5680_s11 = inlined_call_operand.<no memory space> [shape: f32[1,1], index: 11, kind: input, shape index: {}]   ;;  %s5681_s9 = inlined_call_operand.vmem [shape: f32[1,16], index: 9, kind: input, shape index: {}]   ;;  %s5682_s10 = inlined_call_operand.vmem [shape: f32[1,16], index: 10, kind: input, shape index: {}]   ;;  %s5683_s14 = inlined_call_operand.vmem [shape: f32[2,2,1], index: 14, kind: output, shape index: {1}]  }
   0x1   :  { %v4804_v0 = vld [vmem:[%s5669_s2] sm:$0xff]   ;;  %3959 = vmatprep.subr.bf16.mxu0 %v4719_v1  ;;  %3975 = vmatprep.subr.bf16.mxu1 %v4719_v1  ;;  %v4811_v2 = vld [vmem:[%s5669_s2 + $0x8] sm:$0xff]   ;;  %s4723_s25 = smov 32   ;;  %v4516_v8 = vld [vmem:[%s5671_s0 + $0x10] sm:$0xff]   ;;  %vm930_vm2 = vcmask 1045504   ;;  %vm413_vm3 = vcmask 257024  }
   0x2   :  { %3963 = vmatprep.mubr.msk.bf16.mxu0 %vm4720_vm0, %v4719_v1  ;;  %3979 = vmatprep.mubr.msk.bf16.mxu1 %vm4720_vm0, %v4719_v1  ;;  %v4512_v3 = vld [vmem:[%s5670_s1] sm:$0xff]   ;;  %v4513_v4 = vld [vmem:[%s5670_s1 + $0x8] sm:$0xff]   ;;  %vm2250_vm4 = vcmask 1041408   ;;  %vm694_vm5 = vcmask 254976   ;;  %vm1214_vm6 = vcmask 259074   ;;  %vm692_vm7 = vcmask 261126  }
   0x3   :  { %226 = vrot.lane.b32.xlu0 %v4804_v0, %s4721_s17  ;;  %283 = vrot.lane.b32.xlu1 %v4804_v0, %s4722_s18  ;;  %v4514_v5 = vld [vmem:[%s5671_s0] sm:$0xff]   ;;  %v4515_v7 = vld [vmem:[%s5671_s0 + $0x8] sm:$0xff]   ;;  %vm975_vm8 = vcmask 261124   ;;  %vm3450_vm9 = vcmask 123904   ;;  %vm3490_vm10 = vcmask 1024  }
   0x4   :  { %3976 = vmatpush3.bf16.msra.mxu1 %v4804_v0  ;;  %3960 = vmatpush3.bf16.msra.mxu0 %v4512_v3  ;;  %v3672_v20 = vld [vmem:[%s5672_s3] ss:$0 sm:$0xff] }
   0x5   :  { %3977 = vmatprep.subr.bf16.mxu1 %v4719_v1  ;;  %3961 = vmatprep.subr.bf16.mxu0 %v4719_v1 }
   0x7   :  { %228 = vrot.lane.b32.xlu0 %v4811_v2, %s4721_s17  ;;  %285 = vrot.lane.b32.xlu1 %v4811_v2, %s4722_s18 }
   0x8   :  { %3978 = vmatpush3.bf16.msra.mxu1 %v4811_v2  ;;  %3962 = vmatpush3.bf16.msra.mxu0 %v4513_v4 }
   0x9   :  { %3983 = vmatprep.subr.bf16.mxu1 %v4719_v1  ;;  %3999 = vmatprep.subr.bf16.mxu0 %v4719_v1 }
   0xb   :  { %335 = vrot.lane.b32.xlu0 %v4804_v0, %s4723_s25  ;;  %337 = vrot.lane.b32.xlu1 %v4811_v2, %s4723_s25 }
   0xc   :  { %3980 = vmatmul.mubr.bf16.vlgmr.msra.gmra.mrb[0].mxu1 %v4724_v6  ;;  %3964 = vmatmul.mubr.msk.bf16.vlgmr.msra.gmra.mrb[0].mxu0 %vm93_vm1, %v4514_v5 }
   0xd   :  { %3987 = vmatprep.mubr.msk.bf16.mxu1 %vm4720_vm0, %v4719_v1  ;;  %3967 = vmatprep.mubr.msk.bf16.mxu0 %vm4720_vm0, %v4719_v1 }
  0x14   :  { %3968 = vmatmul.mubr.msk.bf16.gmra.mrb[4].mxu0 %vm93_vm1, %v4515_v7 }
  0x15   :  { %3971 = vmatprep.mubr.msk.bf16.mxu0 %vm4720_vm0, %v4719_v1 }
  0x1c   :  { %3972 = vmatmul.mubr.msk.bf16.gmra.mrb[8].mxu0 %vm93_vm1, %v4516_v8 }
  0x1d   :  { %4003 = vmatprep.mubr.msk.bf16.mxu0 %vm4720_vm0, %v4719_v1 }
  0x75   :  { %v4861_v9 = vpop.permute.xlu0 %226  ;;  %v4863_v10 = vpop.permute.xlu1 %283 }
  0x76   :  { %3984 = vmatpush3.bf16.msra.mxu1 %v4861_v9 }
  0x77   :  { %3985 = vmatprep.subr.bf16.mxu1 %v4719_v1 }
  0x79   :  { %v4867_v11 = vpop.permute.xlu0 %228  ;;  %v4869_v12 = vpop.permute.xlu1 %285 }
  0x7a   :  { %3986 = vmatpush3.bf16.msra.mxu1 %v4867_v11 }
  0x7b   :  { %3991 = vmatprep.subr.bf16.mxu1 %v4719_v1 }
  0x7d   :  { %v4873_v13 = vpop.permute.xlu0 %335  ;;  %3988 = vmatmul.mubr.bf16.vlgmr.msra.gmra.mrb[4].mxu1 %v4724_v6  ;;  %v4877_v14 = vpop.permute.xlu1 %337 }
  0x7e   :  { %3992 = vmatpush3.bf16.msra.mxu1 %v4863_v10  ;;  %4000 = vmatpush3.bf16.msra.mxu0 %v4873_v13 }
  0x7f   :  { %3993 = vmatprep.subr.bf16.mxu1 %v4719_v1  ;;  %4001 = vmatprep.subr.bf16.mxu0 %v4719_v1 }
  0x80   :  { %3995 = vmatprep.mubr.msk.bf16.mxu1 %vm4720_vm0, %v4719_v1 }
  0x82   :  { %3994 = vmatpush3.bf16.msra.mxu1 %v4869_v12  ;;  %4002 = vmatpush3.bf16.msra.mxu0 %v4877_v14 }
  0x83   :  { %4015 = vmatprep.subr.bf16.mxu0 %v4719_v1  ;;  %4007 = vmatprep.subr.bf16.mxu1 %v4719_v1 }
  0x85   :  { %3996 = vmatmul.mubr.bf16.vlgmr.msra.gmra.mrb[8].mxu1 %v4724_v6  ;;  %4004 = vmatmul.mubr.bf16.vlgmr.msra.gmra.mrb[12].mxu0 %v4724_v6 }
  0x86   :  { %4016 = vmatpush3.bf16.msra.mxu0 %v4861_v9  ;;  %4008 = vmatpush3.bf16.msra.mxu1 %v4804_v0 }
  0x87   :  { %4017 = vmatprep.subr.bf16.mxu0 %v4719_v1  ;;  %4009 = vmatprep.subr.bf16.mxu1 %v4719_v1 }
  0x88   :  { %4011 = vmatprep.mubr.msk.bf16.mxu1 %vm4720_vm0, %v4719_v1  ;;  %4019 = vmatprep.mubr.msk.bf16.mxu0 %vm4720_vm0, %v4719_v1 }
  0x8a   :  { %4018 = vmatpush3.bf16.msra.mxu0 %v4867_v11  ;;  %4010 = vmatpush3.bf16.msra.mxu1 %v4811_v2 }
  0x8b   :  { %4023 = vmatprep.subr.bf16.mxu1 %v4719_v1  ;;  %4031 = vmatprep.subr.bf16.mxu0 %v4719_v1 }
  0xdf   :  { %v213_v15 = vpop.f32.mrb[0].mxu1  ;;  %v137_v16 = vpop.f32.mrb[0].mxu0 }
  0xe0   :  { %v3981_v17 = vpop.f32.mrb[1].mxu1  ;;  %v3965_v19 = vpop.f32.mrb[1].mxu0  ;;  %v4915_v49 = vadd.f32 %v3672_v20, %v137_v16 }
  0xe1   :  { %v216_v18 = vpop.f32.mrb[2].mxu1  ;;  %v140_v22 = vpop.f32.mrb[2].mxu0 }
  0xe2   :  { %v3982_v21 = vpop.f32.mrb[3].mxu1  ;;  %v4902_v23 = vadd.f32 %v3672_v20, %v140_v22  ;;  %v3966_v24 = vpop.f32.mrb[3].mxu0  ;;  %v219_v53 = vadd.f32 %v213_v15, %v4915_v49 }
  0xe4   :  { %v3683_v54 = vmul.f32 -1.442695, %v219_v53 }
  0xe7   :  { %v145_v25 = vpop.f32.mrb[4].mxu0 }
  0xe8   :  { %v4904_v26 = vadd.f32 %v3672_v20, %v145_v25  ;;  %v3969_v27 = vpop.f32.mrb[5].mxu0 }
  0xe9   :  { %v148_v28 = vpop.f32.mrb[6].mxu0 }
  0xea   :  { %v4906_v29 = vadd.f32 %v3672_v20, %v148_v28  ;;  %v3970_v30 = vpop.f32.mrb[7].mxu0 }
  0xef   :  { %v153_v31 = vpop.f32.mrb[8].mxu0 }
  0xf0   :  { %v4908_v32 = vadd.f32 %v3672_v20, %v153_v31  ;;  %v3973_v33 = vpop.f32.mrb[9].mxu0 }
  0xf1   :  { %v156_v34 = vpop.f32.mrb[10].mxu0 }
  0xf2   :  { %v4910_v35 = vadd.f32 %v3672_v20, %v156_v34  ;;  %v3974_v36 = vpop.f32.mrb[11].mxu0 }
 0x150   :  { %v266_v37 = vpop.f32.mrb[4].mxu1 }
 0x151   :  { %v3989_v38 = vpop.f32.mrb[5].mxu1 }
 0x152   :  { %v269_v39 = vpop.f32.mrb[6].mxu1 }
 0x153   :  { %v3990_v40 = vpop.f32.mrb[7].mxu1 }
 0x158   :  { %v323_v41 = vpop.f32.mrb[8].mxu1  ;;  %v375_v42 = vpop.f32.mrb[12].mxu0 }
 0x159   :  { %330 = vrot.lane.b32.xlu0 %v323_v41, %s4722_s18  ;;  %v3997_v43 = vpop.f32.mrb[9].mxu1  ;;  %v4005_v44 = vpop.f32.mrb[13].mxu0 }
 0x15a   :  { %v326_v45 = vpop.f32.mrb[10].mxu1  ;;  %v378_v46 = vpop.f32.mrb[14].mxu0 }
 0x15b   :  { %v3998_v47 = vpop.f32.mrb[11].mxu1  ;;  %v4006_v48 = vpop.f32.mrb[15].mxu0 }
 0x15d   :  { %273 = vrot.lane.b32.xlu0 %v266_v37, %s4723_s25 }
 0x161   :  { %382 = vrot.lane.b32.xlu0 %v375_v42, %s4721_s17 }
 0x1cb   :  { %v331_v50 = vpop.permute.xlu0 %330 }
 0x1cc   :  { %v333_v51 = vadd.f32 %v331_v50, %v4915_v49 }
 0x1ce   :  { %4517 = vtanh.f32 %v333_v51 }
 0x1cf   :  { %4519 = vpow2.f32 %v3683_v54  ;;  %v274_v60 = vpop.permute.xlu0 %273 }
 0x1d0   :  { %v276_v61 = vadd.f32 %v274_v60, %v4915_v49 }
 0x1d2   :  { %v3684_v62 = vmul.f32 -1.442695, %v276_v61 }
 0x1d3   :  { %v383_v15 = vpop.permute.xlu0 %382 }
 0x1d4   :  { %v385_v16 = vadd.f32 %v383_v15, %v4915_v49 }
 0x1d6   :  { %v3685_v17 = vmul.f32 -1.442695, %v385_v16 }
 0x1d8   :  { %v4518_v52 = vpop.eup %4517 }
 0x1d9   :  { %394 = vrot.lane.b32.xlu1 %v4518_v52, %s4722_s18  ;;  %v4520_v55 = vpop.eup %4519 }
 0x1da   :  { %v223_v56 = vadd.f32 1.0, %v4520_v55 }
 0x1dc   :  { %4521 = vrcp.f32 %v223_v56 }
 0x1dd   :  { %4523 = vpow2.f32 %v3684_v62 }
 0x1e6   :  { %v4522_v57 = vpop.eup %4521 }
 0x1e7   :  { %v4524_v63 = vpop.eup %4523 }
 0x1e8   :  { %v280_v3 = vadd.f32 1.0, %v4524_v63 }
 0x1ea   :  { %4525 = vrcp.f32 %v280_v3 }
 0x1f4   :  { %v4526_v4 = vpop.eup %4525 }
 0x1f5   :  { %v392_v5 = vmul.f32 0.0, %v4526_v4 }
 0x24b   :  { %v395_v58 = vpop.permute.xlu1 %394 }
 0x24c   :  { %v397_v59 = vmul.f32 %v4522_v57, %v395_v58 }
 0x24e   :  { %399 = vrot.lane.b32.xlu1 %v397_v59, %s4723_s25 }
 0x2c0   :  { %v400_v6 = vpop.permute.xlu1 %399 }
 0x2c1   :  { %v4922_v7 = vadd.f32 %v400_v6, %v392_v5 }
 0x2c3   :  { %4527 = vtanh.f32 %v4922_v7 }
 0x2c4   :  { %4529 = vpow2.f32 %v3685_v17 }
 0x2cd   :  { %v4528_v8 = vpop.eup %4527 }
 0x2ce   :  { %405 = vrot.lane.b32.xlu1 %v4528_v8, %s4722_s18  ;;  %v4530_v18 = vpop.eup %4529 }
 0x2cf   :  { %v389_v19 = vadd.f32 1.0, %v4530_v18 }
 0x2d1   :  { %4531 = vrcp.f32 %v389_v19 }
 0x2db   :  { %v4532_v20 = vpop.eup %4531 }
 0x340   :  { %v406_v21 = vpop.permute.xlu1 %405 }
 0x341   :  { %v4927_v22 = vmul.f32 %v4532_v20, %v406_v21 }
 0x343   :  { %v415_v24 = vpack.c.bf16 %v4927_v22, %v4927_v22 }
 0x345   :  { %417 = vrot.lane.b32.xlu0 %v415_v24, %s4723_s25 }
 0x3b7   :  { %v418_v25 = vpop.permute.xlu0 %417 }
 0x3b8   :  { %4012 = vmatmul.mubr.msk.bf16.vlgmr.msra.gmra.mrb[12].mxu1 %vm93_vm1, %v418_v25  ;;  %4020 = vmatmul.mubr.msk.bf16.vlgmr.msra.gmra.mrb[16].mxu0 %vm93_vm1, %v418_v25 }
 0x3b9   :  { %4024 = vmatpush3.bf16.msra.mxu1 %v4863_v10  ;;  %4032 = vmatpush3.bf16.msra.mxu0 %v4873_v13 }
 0x3ba   :  { %4025 = vmatprep.subr.bf16.mxu1 %v4719_v1  ;;  %4033 = vmatprep.subr.bf16.mxu0 %v4719_v1 }
 0x3bb   :  { %4027 = vmatprep.mubr.msk.bf16.mxu1 %vm4720_vm0, %v4719_v1  ;;  %4035 = vmatprep.mubr.msk.bf16.mxu0 %vm4720_vm0, %v4719_v1 }
 0x3bd   :  { %4026 = vmatpush3.bf16.msra.mxu1 %v4869_v12  ;;  %4034 = vmatpush3.bf16.msra.mxu0 %v4877_v14 }
 0x3be   :  { %4047 = vmatprep.subr.bf16.mxu0 %v4719_v1  ;;  %4039 = vmatprep.subr.bf16.mxu1 %v4719_v1 }
 0x3c0   :  { %4028 = vmatmul.mubr.msk.bf16.vlgmr.msra.gmra.mrb[16].mxu1 %vm93_vm1, %v418_v25  ;;  %4036 = vmatmul.mubr.msk.bf16.vlgmr.msra.gmra.mrb[20].mxu0 %vm93_vm1, %v418_v25 }
 0x3c1   :  { %4048 = vmatpush3.bf16.msra.mxu0 %v4861_v9  ;;  %4040 = vmatpush3.bf16.msra.mxu1 %v4804_v0 }
 0x3c2   :  { %4049 = vmatprep.subr.bf16.mxu0 %v4719_v1  ;;  %4041 = vmatprep.subr.bf16.mxu1 %v4719_v1 }
 0x3c3   :  { %4043 = vmatprep.mubr.msk.bf16.mxu1 %vm4720_vm0, %v4719_v1  ;;  %4051 = vmatprep.mubr.msk.bf16.mxu0 %vm4720_vm0, %v4719_v1 }
 0x3c5   :  { %4050 = vmatpush3.bf16.msra.mxu0 %v4867_v11  ;;  %4042 = vmatpush3.bf16.msra.mxu1 %v4811_v2 }
 0x3c6   :  { %4055 = vmatprep.subr.bf16.mxu1 %v4719_v1  ;;  %4063 = vmatprep.subr.bf16.mxu0 %v4719_v1 }
 0x48b   :  { %v456_v27 = vpop.f32.mrb[12].mxu1  ;;  %v513_v28 = vpop.f32.mrb[16].mxu0 }
 0x48c   :  { %v4013_v30 = vpop.f32.mrb[13].mxu1  ;;  %v4021_v31 = vpop.f32.mrb[17].mxu0  ;;  %v520_v53 = vrot.slane %v513_v28, 2  ;;  %v463_v54 = vrot.slane %v456_v27, 2 }
 0x48d   :  { %v459_v33 = vpop.f32.mrb[14].mxu1  ;;  %v516_v34 = vpop.f32.mrb[18].mxu0  ;;  %v647_v31 = vrot.slane %v4922_v7, 2 }
 0x48e   :  { %v4014_v36 = vpop.f32.mrb[15].mxu1  ;;  %v4022_v37 = vpop.f32.mrb[19].mxu0  ;;  %v465_v55 = vadd.f32 %v463_v54, %v4915_v49  ;;  %v466_v56 = vadd.f32 %v463_v54, %v4902_v23 }
 0x490   :  { %v3687_v57 = vmul.f32 -1.442695, %v465_v55  ;;  %v3688_v58 = vmul.f32 -1.442695, %v466_v56 }
 0x493   :  { %v572_v38 = vpop.f32.mrb[16].mxu1  ;;  %v621_v39 = vpop.f32.mrb[20].mxu0 }
 0x494   :  { %v579_v40 = vrot.slane %v572_v38, 2  ;;  %v4029_v41 = vpop.f32.mrb[17].mxu1  ;;  %v4037_v42 = vpop.f32.mrb[21].mxu0  ;;  %v628_v15 = vrot.slane %v621_v39, 2 }
 0x495   :  { %v575_v43 = vpop.f32.mrb[18].mxu1  ;;  %v624_v44 = vpop.f32.mrb[22].mxu0 }
 0x496   :  { %580 = vrot.lane.b32.xlu1 %v579_v40, %s4722_s18  ;;  %v4030_v45 = vpop.f32.mrb[19].mxu1  ;;  %v4038_v46 = vpop.f32.mrb[23].mxu0 }
 0x508   :  { %v581_v47 = vpop.permute.xlu1 %580 }
 0x509   :  { %v583_v48 = vadd.f32 %v581_v47, %v4915_v49  ;;  %v584_v50 = vadd.f32 %v581_v47, %v4902_v23 }
 0x50b   :  { %4533 = vtanh.f32 %v583_v48 }
 0x50c   :  { %4535 = vtanh.f32 %v584_v50 }
 0x50d   :  { %4537 = vpow2.f32 %v3687_v57 }
 0x50e   :  { %4539 = vpow2.f32 %v3688_v58 }
 0x515   :  { %v4534_v51 = vpop.eup %4533 }
 0x516   :  { %v4536_v52 = vpop.eup %4535  ;;  %653 = vrot.lane.b32.xlu0 %v4534_v51, %s4722_s18 }
 0x517   :  { %655 = vrot.lane.b32.xlu1 %v4536_v52, %s4722_s18  ;;  %v4538_v59 = vpop.eup %4537 }
 0x518   :  { %v4540_v60 = vpop.eup %4539  ;;  %v473_v61 = vadd.f32 1.0, %v4538_v59 }
 0x519   :  { %v474_v62 = vadd.f32 1.0, %v4540_v60 }
 0x51a   :  { %521 = vrot.lane.b32.xlu0 %v520_v53, %s4723_s25  ;;  %4541 = vrcp.f32 %v473_v61 }
 0x51b   :  { %4543 = vrcp.f32 %v474_v62 }
 0x524   :  { %v4542_v63 = vpop.eup %4541 }
 0x525   :  { %v4544_v4 = vpop.eup %4543 }
 0x588   :  { %v654_v3 = vpop.permute.xlu0 %653 }
 0x589   :  { %v656_v5 = vpop.permute.xlu1 %655  ;;  %v659_v6 = vmul.f32 %v4542_v63, %v654_v3 }
 0x58a   :  { %v660_v8 = vmul.f32 %v4544_v4, %v656_v5 }
 0x58b   :  { %663 = vrot.lane.b32.xlu1 %v659_v6, %s4723_s25 }
 0x58c   :  { %665 = vrot.lane.b32.xlu0 %v660_v8, %s4723_s25  ;;  %v522_v16 = vpop.permute.xlu0 %521 }
 0x58d   :  { %v524_v17 = vadd.f32 %v522_v16, %v4915_v49  ;;  %v525_v18 = vadd.f32 %v522_v16, %v4902_v23 }
 0x58f   :  { %629 = vrot.lane.b32.xlu1 %v628_v15, %s4721_s17  ;;  %v3690_v19 = vmul.f32 -1.442695, %v524_v17  ;;  %v3691_v20 = vmul.f32 -1.442695, %v525_v18 }
 0x591   :  { %4545 = vpow2.f32 %v3690_v19 }
 0x592   :  { %4547 = vpow2.f32 %v3691_v20 }
 0x59b   :  { %v4546_v21 = vpop.eup %4545 }
 0x59c   :  { %v4548_v24 = vpop.eup %4547  ;;  %v532_v25 = vadd.f32 1.0, %v4546_v21 }
 0x59d   :  { %v533_v27 = vadd.f32 1.0, %v4548_v24 }
 0x59e   :  { %4549 = vrcp.f32 %v532_v25 }
 0x59f   :  { %4551 = vrcp.f32 %v533_v27 }
 0x5a8   :  { %v4550_v28 = vpop.eup %4549 }
 0x5a9   :  { %v4552_v30 = vpop.eup %4551  ;;  %v649_v33 = vmul.f32 %v4550_v28, %v647_v31 }
 0x5aa   :  { %v650_v36 = vmul.f32 %v4552_v30, %v647_v31 }
 0x5fd   :  { %v664_v34 = vpop.permute.xlu1 %663 }
 0x5fe   :  { %v669_v37 = vadd.f32 %v664_v34, %v649_v33  ;;  %v666_v38 = vpop.permute.xlu0 %665 }
 0x5ff   :  { %v4974_v39 = vadd.f32 %v666_v38, %v650_v36 }
 0x600   :  { %4553 = vtanh.f32 %v669_v37  ;;  %v931_v40 = vrot.slane %v669_v37, 2 }
 0x601   :  { %4555 = vtanh.f32 %v4974_v39  ;;  %v932_v41 = vrot.slane %v4974_v39, 2  ;;  %v630_v44 = vpop.permute.xlu1 %629 }
 0x602   :  { %v632_v45 = vadd.f32 %v630_v44, %v4915_v49  ;;  %v633_v46 = vadd.f32 %v630_v44, %v4902_v23 }
 0x603   :  { %v4981_v42 = vsel %vm930_vm2, %v931_v40, %v932_v41 }
 0x604   :  { %v3694_v47 = vmul.f32 -1.442695, %v632_v45  ;;  %v3695_v48 = vmul.f32 -1.442695, %v633_v46 }
 0x606   :  { %4557 = vpow2.f32 %v3694_v47 }
 0x607   :  { %4559 = vpow2.f32 %v3695_v48 }
 0x60a   :  { %v4554_v7 = vpop.eup %4553 }
 0x60b   :  { %v4556_v43 = vpop.eup %4555  ;;  %675 = vrot.lane.b32.xlu0 %v4554_v7, %s4722_s18 }
 0x60c   :  { %677 = vrot.lane.b32.xlu1 %v4556_v43, %s4722_s18 }
 0x610   :  { %v4558_v50 = vpop.eup %4557 }
 0x611   :  { %v4560_v51 = vpop.eup %4559  ;;  %v640_v52 = vadd.f32 1.0, %v4558_v50 }
 0x612   :  { %v641_v53 = vadd.f32 1.0, %v4560_v51 }
 0x613   :  { %4561 = vrcp.f32 %v640_v52 }
 0x614   :  { %4563 = vrcp.f32 %v641_v53 }
 0x61d   :  { %v4562_v54 = vpop.eup %4561 }
 0x61e   :  { %v4564_v56 = vpop.eup %4563 }
 0x67d   :  { %v676_v55 = vpop.permute.xlu0 %675 }
 0x67e   :  { %v4987_v57 = vmul.f32 %v4562_v54, %v676_v55  ;;  %v678_v58 = vpop.permute.xlu1 %677 }
 0x67f   :  { %v4989_v59 = vmul.f32 %v4564_v56, %v678_v58 }
 0x681   :  { %v696_v49 = vpack.c.bf16 %v4989_v59, %v4987_v57 }
 0x683   :  { %v698_v60 = vrot.slane %v696_v49, 3 }
 0x685   :  { %699 = vrot.lane.b32.xlu0 %v698_v60, %s4723_s25 }
 0x6f7   :  { %v700_v61 = vpop.permute.xlu0 %699 }
 0x6f8   :  { %4044 = vmatmul.mubr.msk.bf16.vlgmr.msra.gmra.mrb[20].mxu1 %vm93_vm1, %v700_v61  ;;  %4052 = vmatmul.mubr.msk.bf16.vlgmr.msra.gmra.mrb[24].mxu0 %vm93_vm1, %v700_v61 }
 0x6f9   :  { %4056 = vmatpush3.bf16.msra.mxu1 %v4863_v10  ;;  %4064 = vmatpush3.bf16.msra.mxu0 %v4873_v13 }
 0x6fa   :  { %4057 = vmatprep.subr.bf16.mxu1 %v4719_v1  ;;  %4065 = vmatprep.subr.bf16.mxu0 %v4719_v1 }
 0x6fb   :  { %4059 = vmatprep.mubr.msk.bf16.mxu1 %vm4720_vm0, %v4719_v1  ;;  %4067 = vmatprep.mubr.msk.bf16.mxu0 %vm4720_vm0, %v4719_v1 }
 0x6fd   :  { %4058 = vmatpush3.bf16.msra.mxu1 %v4869_v12  ;;  %4066 = vmatpush3.bf16.msra.mxu0 %v4877_v14 }
 0x6fe   :  { %4079 = vmatprep.subr.bf16.mxu0 %v4719_v1  ;;  %4071 = vmatprep.subr.bf16.mxu1 %v4719_v1 }
 0x700   :  { %4060 = vmatmul.mubr.msk.bf16.vlgmr.msra.gmra.mrb[24].mxu1 %vm93_vm1, %v700_v61  ;;  %4068 = vmatmul.mubr.msk.bf16.vlgmr.msra.gmra.mrb[28].mxu0 %vm93_vm1, %v700_v61 }
 0x701   :  { %4080 = vmatpush3.bf16.msra.mxu0 %v4861_v9  ;;  %4072 = vmatpush3.bf16.msra.mxu1 %v4804_v0 }
 0x702   :  { %4081 = vmatprep.subr.bf16.mxu0 %v4719_v1  ;;  %4073 = vmatprep.subr.bf16.mxu1 %v4719_v1 }
 0x703   :  { %4075 = vmatprep.mubr.msk.bf16.mxu1 %vm4720_vm0, %v4719_v1  ;;  %4083 = vmatprep.mubr.msk.bf16.mxu0 %vm4720_vm0, %v4719_v1 }
 0x705   :  { %4082 = vmatpush3.bf16.msra.mxu0 %v4867_v11  ;;  %4074 = vmatpush3.bf16.msra.mxu1 %v4811_v2 }
 0x706   :  { %4087 = vmatprep.subr.bf16.mxu1 %v4719_v1  ;;  %4095 = vmatprep.subr.bf16.mxu0 %v4719_v1 }
 0x7cb   :  { %v738_v62 = vpop.f32.mrb[20].mxu1  ;;  %v795_v63 = vpop.f32.mrb[24].mxu0 }
 0x7cc   :  { %v4045_v3 = vpop.f32.mrb[21].mxu1  ;;  %v4053_v4 = vpop.f32.mrb[25].mxu0  ;;  %v802_v36 = vrot.slane %v795_v63, 4  ;;  %v745_v37 = vrot.slane %v738_v62, 4 }
 0x7cd   :  { %v741_v5 = vpop.f32.mrb[22].mxu1  ;;  %v798_v6 = vpop.f32.mrb[26].mxu0 }
 0x7ce   :  { %v4046_v8 = vpop.f32.mrb[23].mxu1  ;;  %v4054_v15 = vpop.f32.mrb[27].mxu0  ;;  %v747_v38 = vadd.f32 %v745_v37, %v4902_v23  ;;  %v748_v40 = vadd.f32 %v745_v37, %v4904_v26 }
 0x7d0   :  { %v3699_v7 = vmul.f32 -1.442695, %v747_v38  ;;  %v3700_v43 = vmul.f32 -1.442695, %v748_v40 }
 0x7d3   :  { %v854_v16 = vpop.f32.mrb[24].mxu1  ;;  %v903_v17 = vpop.f32.mrb[28].mxu0 }
 0x7d4   :  { %v861_v18 = vrot.slane %v854_v16, 4  ;;  %v4061_v19 = vpop.f32.mrb[25].mxu1  ;;  %v4069_v20 = vpop.f32.mrb[29].mxu0  ;;  %v910_v55 = vrot.slane %v903_v17, 4 }
 0x7d5   :  { %v857_v21 = vpop.f32.mrb[26].mxu1  ;;  %v906_v24 = vpop.f32.mrb[30].mxu0 }
 0x7d6   :  { %862 = vrot.lane.b32.xlu1 %v861_v18, %s4722_s18  ;;  %v4062_v25 = vpop.f32.mrb[27].mxu1  ;;  %v4070_v27 = vpop.f32.mrb[31].mxu0 }
 0x848   :  { %v863_v28 = vpop.permute.xlu1 %862 }
 0x849   :  { %v865_v30 = vadd.f32 %v863_v28, %v4902_v23  ;;  %v866_v31 = vadd.f32 %v863_v28, %v4904_v26 }
 0x84b   :  { %4565 = vtanh.f32 %v865_v30 }
 0x84c   :  { %4567 = vtanh.f32 %v866_v31 }
 0x84d   :  { %4569 = vpow2.f32 %v3699_v7 }
 0x84e   :  { %4571 = vpow2.f32 %v3700_v43 }
 0x855   :  { %v4566_v33 = vpop.eup %4565 }
 0x856   :  { %v4568_v34 = vpop.eup %4567  ;;  %940 = vrot.lane.b32.xlu0 %v4566_v33, %s4722_s18 }
 0x857   :  { %942 = vrot.lane.b32.xlu1 %v4568_v34, %s4722_s18  ;;  %v4570_v44 = vpop.eup %4569 }
 0x858   :  { %v4572_v45 = vpop.eup %4571  ;;  %v755_v46 = vadd.f32 1.0, %v4570_v44 }
 0x859   :  { %v756_v47 = vadd.f32 1.0, %v4572_v45 }
 0x85a   :  { %803 = vrot.lane.b32.xlu0 %v802_v36, %s4723_s25  ;;  %4573 = vrcp.f32 %v755_v46 }
 0x85b   :  { %4575 = vrcp.f32 %v756_v47 }
 0x864   :  { %v4574_v48 = vpop.eup %4573 }
 0x865   :  { %v4576_v51 = vpop.eup %4575 }
 0x8c8   :  { %v941_v50 = vpop.permute.xlu0 %940 }
 0x8c9   :  { %v943_v52 = vpop.permute.xlu1 %942  ;;  %v946_v53 = vmul.f32 %v4574_v48, %v941_v50 }
 0x8ca   :  { %v947_v54 = vmul.f32 %v4576_v51, %v943_v52 }
 0x8cb   :  { %950 = vrot.lane.b32.xlu1 %v946_v53, %s4723_s25 }
 0x8cc   :  { %952 = vrot.lane.b32.xlu0 %v947_v54, %s4723_s25  ;;  %v804_v56 = vpop.permute.xlu0 %803 }
 0x8cd   :  { %v806_v58 = vadd.f32 %v804_v56, %v4902_v23  ;;  %v807_v49 = vadd.f32 %v804_v56, %v4904_v26 }
 0x8cf   :  { %911 = vrot.lane.b32.xlu1 %v910_v55, %s4721_s17  ;;  %v3702_v60 = vmul.f32 -1.442695, %v806_v58  ;;  %v3703_v61 = vmul.f32 -1.442695, %v807_v49 }
 0x8d1   :  { %4577 = vpow2.f32 %v3702_v60 }
 0x8d2   :  { %4579 = vpow2.f32 %v3703_v61 }
 0x8db   :  { %v4578_v62 = vpop.eup %4577 }
 0x8dc   :  { %v4580_v63 = vpop.eup %4579  ;;  %v814_v3 = vadd.f32 1.0, %v4578_v62 }
 0x8dd   :  { %v815_v4 = vadd.f32 1.0, %v4580_v63 }
 0x8de   :  { %4581 = vrcp.f32 %v814_v3 }
 0x8df   :  { %4583 = vrcp.f32 %v815_v4 }
 0x8e8   :  { %v4582_v5 = vpop.eup %4581 }
 0x8e9   :  { %v4584_v6 = vpop.eup %4583  ;;  %v936_v8 = vmul.f32 %v4582_v5, %v4981_v42 }
 0x8ea   :  { %v937_v16 = vmul.f32 %v4584_v6, %v932_v41 }
 0x93d   :  { %v951_v15 = vpop.permute.xlu1 %950 }
 0x93e   :  { %v956_v17 = vadd.f32 %v951_v15, %v936_v8  ;;  %v953_v18 = vpop.permute.xlu0 %952 }
 0x93f   :  { %v957_v19 = vadd.f32 %v953_v18, %v937_v16 }
 0x940   :  { %4585 = vtanh.f32 %v956_v17  ;;  %v1188_v20 = vrot.slane %v956_v17, 2 }
 0x941   :  { %4587 = vtanh.f32 %v957_v19  ;;  %v1189_v21 = vrot.slane %v957_v19, 2  ;;  %v912_v42 = vpop.permute.xlu1 %911 }
 0x942   :  { %v914_v39 = vadd.f32 %v912_v42, %v4902_v23  ;;  %v915_v41 = vadd.f32 %v912_v42, %v4904_v26 }
 0x943   :  { %v5039_v24 = vsel %vm930_vm2, %v1188_v20, %v1189_v21 }
 0x944   :  { %v3706_v28 = vmul.f32 -1.442695, %v914_v39  ;;  %v3707_v30 = vmul.f32 -1.442695, %v915_v41 }
 0x946   :  { %4589 = vpow2.f32 %v3706_v28 }
 0x947   :  { %4591 = vpow2.f32 %v3707_v30 }
 0x94a   :  { %v4586_v25 = vpop.eup %4585 }
 0x94b   :  { %v4588_v27 = vpop.eup %4587  ;;  %962 = vrot.lane.b32.xlu0 %v4586_v25, %s4722_s18 }
 0x94c   :  { %964 = vrot.lane.b32.xlu1 %v4588_v27, %s4722_s18 }
 0x950   :  { %v4590_v31 = vpop.eup %4589 }
 0x951   :  { %v4592_v33 = vpop.eup %4591  ;;  %v922_v34 = vadd.f32 1.0, %v4590_v31 }
 0x952   :  { %v923_v36 = vadd.f32 1.0, %v4592_v33 }
 0x953   :  { %4593 = vrcp.f32 %v922_v34 }
 0x954   :  { %4595 = vrcp.f32 %v923_v36 }
 0x95d   :  { %v4594_v37 = vpop.eup %4593 }
 0x95e   :  { %v4596_v40 = vpop.eup %4595 }
 0x9bd   :  { %v963_v38 = vpop.permute.xlu0 %962 }
 0x9be   :  { %v5045_v7 = vmul.f32 %v4594_v37, %v963_v38  ;;  %v965_v43 = vpop.permute.xlu1 %964 }
 0x9bf   :  { %v969_v44 = vmul.f32 %v4596_v40, %v965_v43 }
 0x9c1   :  { %v977_v23 = vpack.c.bf16 %v969_v44, %v5045_v7 }
 0x9c3   :  { %v979_v45 = vrot.slane %v977_v23, 2 }
 0x9c5   :  { %980 = vrot.lane.b32.xlu0 %v979_v45, %s4723_s25 }
 0xa37   :  { %v981_v46 = vpop.permute.xlu0 %980 }
 0xa38   :  { %4076 = vmatmul.mubr.msk.bf16.vlgmr.msra.gmra.mrb[28].mxu1 %vm93_vm1, %v981_v46  ;;  %4084 = vmatmul.mubr.msk.bf16.vlgmr.msra.gmra.mrb[32].mxu0 %vm93_vm1, %v981_v46 }
 0xa39   :  { %4088 = vmatpush3.bf16.msra.mxu1 %v4863_v10  ;;  %4096 = vmatpush3.bf16.msra.mxu0 %v4873_v13 }
 0xa3a   :  { %4089 = vmatprep.subr.bf16.mxu1 %v4719_v1  ;;  %4097 = vmatprep.subr.bf16.mxu0 %v4719_v1 }
 0xa3b   :  { %4091 = vmatprep.mubr.msk.bf16.mxu1 %vm4720_vm0, %v4719_v1  ;;  %4099 = vmatprep.mubr.msk.bf16.mxu0 %vm4720_vm0, %v4719_v1 }
 0xa3d   :  { %4090 = vmatpush3.bf16.msra.mxu1 %v4869_v12  ;;  %4098 = vmatpush3.bf16.msra.mxu0 %v4877_v14 }
 0xa3e   :  { %4111 = vmatprep.subr.bf16.mxu0 %v4719_v1  ;;  %4103 = vmatprep.subr.bf16.mxu1 %v4719_v1 }
 0xa40   :  { %4092 = vmatmul.mubr.msk.bf16.vlgmr.msra.gmra.mrb[32].mxu1 %vm93_vm1, %v981_v46  ;;  %4100 = vmatmul.mubr.msk.bf16.vlgmr.msra.gmra.mrb[36].mxu0 %vm93_vm1, %v981_v46 }
 0xa41   :  { %4112 = vmatpush3.bf16.msra.mxu0 %v4861_v9  ;;  %4104 = vmatpush3.bf16.msra.mxu1 %v4804_v0 }
 0xa42   :  { %4113 = vmatprep.subr.bf16.mxu0 %v4719_v1  ;;  %4105 = vmatprep.subr.bf16.mxu1 %v4719_v1 }
 0xa43   :  { %4107 = vmatprep.mubr.msk.bf16.mxu1 %vm4720_vm0, %v4719_v1  ;;  %4115 = vmatprep.mubr.msk.bf16.mxu0 %vm4720_vm0, %v4719_v1 }
 0xa45   :  { %4114 = vmatpush3.bf16.msra.mxu0 %v4867_v11  ;;  %4106 = vmatpush3.bf16.msra.mxu1 %v4811_v2 }
 0xa46   :  { %4119 = vmatprep.subr.bf16.mxu1 %v4719_v1  ;;  %4127 = vmatprep.subr.bf16.mxu0 %v4719_v1 }
 0xb0b   :  { %v1019_v47 = vpop.f32.mrb[28].mxu1  ;;  %v1069_v0 = vpop.f32.mrb[32].mxu0 }
 0xb0c   :  { %v4077_v48 = vpop.f32.mrb[29].mxu1  ;;  %v4085_v50 = vpop.f32.mrb[33].mxu0  ;;  %v1076_v3 = vrot.slane %v1069_v0, 6  ;;  %v1026_v15 = vrot.slane %v1019_v47, 6 }
 0xb0d   :  { %v1022_v51 = vpop.f32.mrb[30].mxu1  ;;  %v1072_v52 = vpop.f32.mrb[34].mxu0  ;;  %v5129_v48 = vld [vmem:[%s5669_s2 + $0x8] sm:$0xff]  }
 0xb0e   :  { %v4078_v53 = vpop.f32.mrb[31].mxu1  ;;  %v4086_v54 = vpop.f32.mrb[35].mxu0  ;;  %v1028_v16 = vadd.f32 %v1026_v15, %v4904_v26 }
 0xb10   :  { %v3710_v17 = vmul.f32 -1.442695, %v1028_v16 }
 0xb13   :  { %v1121_v55 = vpop.f32.mrb[32].mxu1  ;;  %v1168_v56 = vpop.f32.mrb[36].mxu0 }
 0xb14   :  { %v1128_v58 = vrot.slane %v1121_v55, 6  ;;  %v4093_v49 = vpop.f32.mrb[33].mxu1  ;;  %v4101_v60 = vpop.f32.mrb[37].mxu0  ;;  %v1175_v4 = vrot.slane %v1168_v56, 6 }
 0xb15   :  { %v1124_v61 = vpop.f32.mrb[34].mxu1  ;;  %v1171_v62 = vpop.f32.mrb[38].mxu0 }
 0xb16   :  { %1129 = vrot.lane.b32.xlu1 %v1128_v58, %s4722_s18  ;;  %v4094_v2 = vpop.f32.mrb[35].mxu1  ;;  %v4102_v63 = vpop.f32.mrb[39].mxu0 }
 0xb1a   :  { %1077 = vrot.lane.b32.xlu1 %v1076_v3, %s4723_s25 }
 0xb1e   :  { %1176 = vrot.lane.b32.xlu1 %v1175_v4, %s4721_s17 }
 0xb88   :  { %v1130_v5 = vpop.permute.xlu1 %1129 }
 0xb89   :  { %v1132_v6 = vadd.f32 %v1130_v5, %v4904_v26 }
 0xb8b   :  { %4597 = vtanh.f32 %v1132_v6 }
 0xb8c   :  { %4599 = vpow2.f32 %v3710_v17  ;;  %v1078_v27 = vpop.permute.xlu1 %1077 }
 0xb8d   :  { %v1080_v42 = vadd.f32 %v1078_v27, %v4904_v26 }
 0xb8f   :  { %v3712_v39 = vmul.f32 -1.442695, %v1080_v42 }
 0xb90   :  { %v1177_v37 = vpop.permute.xlu1 %1176 }
 0xb91   :  { %v1179_v38 = vadd.f32 %v1177_v37, %v4904_v26  ;;  %v5116_v26 = vld [vmem:[%s5669_s2] sm:$0xff]  }
 0xb93   :  { %v3715_v40 = vmul.f32 -1.442695, %v1179_v38 }
 0xb95   :  { %v4598_v8 = vpop.eup %4597 }
 0xb96   :  { %1194 = vrot.lane.b32.xlu0 %v4598_v8, %s4722_s18  ;;  %v4600_v18 = vpop.eup %4599 }
 0xb97   :  { %v1032_v19 = vadd.f32 1.0, %v4600_v18 }
 0xb99   :  { %4601 = vrcp.f32 %v1032_v19 }
 0xb9a   :  { %4603 = vpow2.f32 %v3712_v39 }
 0xba3   :  { %v4602_v20 = vpop.eup %4601 }
 0xba4   :  { %v4604_v41 = vpop.eup %4603 }
 0xba5   :  { %v1084_v28 = vadd.f32 1.0, %v4604_v41 }
 0xba7   :  { %4605 = vrcp.f32 %v1084_v28 }
 0xbb1   :  { %v4606_v30 = vpop.eup %4605 }
 0xbb2   :  { %v1192_v31 = vmul.f32 %v4606_v30, %v5039_v24 }
 0xc08   :  { %v1195_v21 = vpop.permute.xlu0 %1194 }
 0xc09   :  { %v1197_v25 = vmul.f32 %v4602_v20, %v1195_v21 }
 0xc0b   :  { %1199 = vrot.lane.b32.xlu0 %v1197_v25, %s4723_s25 }
 0xc7d   :  { %v1200_v33 = vpop.permute.xlu0 %1199 }
 0xc7e   :  { %v5086_v34 = vadd.f32 %v1200_v33, %v1192_v31 }
 0xc80   :  { %4607 = vtanh.f32 %v5086_v34  ;;  %v1420_v30 = vrot.slane %v5086_v34, 2 }
 0xc81   :  { %4609 = vpow2.f32 %v3715_v40 }
 0xc8a   :  { %v4608_v36 = vpop.eup %4607 }
 0xc8b   :  { %1205 = vrot.lane.b32.xlu0 %v4608_v36, %s4722_s18  ;;  %v4610_v43 = vpop.eup %4609 }
 0xc8c   :  { %v1183_v44 = vadd.f32 1.0, %v4610_v43 }
 0xc8e   :  { %4611 = vrcp.f32 %v1183_v44 }
 0xc98   :  { %v4612_v23 = vpop.eup %4611 }
 0xcfd   :  { %v1206_v45 = vpop.permute.xlu0 %1205 }
 0xcfe   :  { %v5091_v46 = vmul.f32 %v4612_v23, %v1206_v45 }
 0xd00   :  { %v1216_v24 = vpack.c.bf16 %v5091_v46, %v5091_v46 }
 0xd02   :  { %v1218_v47 = vrot.slane %v1216_v24, 1 }
 0xd04   :  { %1219 = vrot.lane.b32.xlu1 %v1218_v47, %s4723_s25 }
 0xd76   :  { %v1220_v0 = vpop.permute.xlu1 %1219 }
 0xd77   :  { %4108 = vmatmul.mubr.msk.bf16.vlgmr.msra.gmra.mrb[36].mxu1 %vm93_vm1, %v1220_v0  ;;  %4116 = vmatmul.mubr.msk.bf16.vlgmr.msra.gmra.mrb[40].mxu0 %vm93_vm1, %v1220_v0 }
 0xd78   :  { %4120 = vmatpush3.bf16.msra.mxu1 %v4863_v10  ;;  %4128 = vmatpush3.bf16.msra.mxu0 %v4873_v13 }
 0xd79   :  { %4121 = vmatprep.subr.bf16.mxu1 %v4719_v1  ;;  %4129 = vmatprep.subr.bf16.mxu0 %v4719_v1 }
 0xd7a   :  { %4123 = vmatprep.mubr.msk.bf16.mxu1 %vm4720_vm0, %v4719_v1  ;;  %4131 = vmatprep.mubr.msk.bf16.mxu0 %vm4720_vm0, %v4719_v1 }
 0xd7c   :  { %4122 = vmatpush3.bf16.msra.mxu1 %v4869_v12  ;;  %4130 = vmatpush3.bf16.msra.mxu0 %v4877_v14 }
 0xd7d   :  { %4143 = vmatprep.subr.bf16.mxu0 %v4719_v1  ;;  %4135 = vmatprep.subr.bf16.mxu1 %v4719_v1 }
 0xd7f   :  { %4124 = vmatmul.mubr.msk.bf16.vlgmr.msra.gmra.mrb[40].mxu1 %vm93_vm1, %v1220_v0  ;;  %4132 = vmatmul.mubr.msk.bf16.vlgmr.msra.gmra.mrb[44].mxu0 %vm93_vm1, %v1220_v0 }
 0xd80   :  { %4144 = vmatpush3.bf16.msra.mxu0 %v4861_v9  ;;  %4136 = vmatpush3.bf16.msra.mxu1 %v5116_v26 }
 0xd81   :  { %4145 = vmatprep.subr.bf16.mxu0 %v4719_v1  ;;  %4137 = vmatprep.subr.bf16.mxu1 %v4719_v1 }
 0xd82   :  { %4139 = vmatprep.mubr.msk.bf16.mxu1 %vm4720_vm0, %v4719_v1  ;;  %4147 = vmatprep.mubr.msk.bf16.mxu0 %vm4720_vm0, %v4719_v1 }
 0xd84   :  { %4146 = vmatpush3.bf16.msra.mxu0 %v4867_v11  ;;  %4138 = vmatpush3.bf16.msra.mxu1 %v5129_v48 }
 0xd85   :  { %4151 = vmatprep.subr.bf16.mxu1 %v4719_v1  ;;  %4159 = vmatprep.subr.bf16.mxu0 %v4719_v1 }
 0xe4a   :  { %v1258_v50 = vpop.f32.mrb[36].mxu1  ;;  %v1305_v51 = vpop.f32.mrb[40].mxu0 }
 0xe4b   :  { %v4109_v52 = vpop.f32.mrb[37].mxu1  ;;  %v4117_v53 = vpop.f32.mrb[41].mxu0  ;;  %v1264_v15 = vadd.f32 %v1258_v50, %v4906_v29 }
 0xe4c   :  { %v1261_v54 = vpop.f32.mrb[38].mxu1  ;;  %v1308_v55 = vpop.f32.mrb[42].mxu0 }
 0xe4d   :  { %v4110_v56 = vpop.f32.mrb[39].mxu1  ;;  %v4118_v58 = vpop.f32.mrb[43].mxu0  ;;  %v3718_v16 = vmul.f32 -1.442695, %v1264_v15 }
 0xe52   :  { %v1356_v49 = vpop.f32.mrb[40].mxu1  ;;  %v1402_v60 = vpop.f32.mrb[44].mxu0 }
 0xe53   :  { %1363 = vrot.lane.b32.xlu0 %v1356_v49, %s4722_s18  ;;  %v4125_v61 = vpop.f32.mrb[41].mxu1  ;;  %v4133_v62 = vpop.f32.mrb[45].mxu0 }
 0xe54   :  { %v1359_v2 = vpop.f32.mrb[42].mxu1  ;;  %v1405_v63 = vpop.f32.mrb[46].mxu0 }
 0xe55   :  { %v4126_v3 = vpop.f32.mrb[43].mxu1  ;;  %v4134_v4 = vpop.f32.mrb[47].mxu0 }
 0xe57   :  { %1312 = vrot.lane.b32.xlu0 %v1305_v51, %s4723_s25 }
 0xe5b   :  { %1409 = vrot.lane.b32.xlu0 %v1402_v60, %s4721_s17 }
 0xec5   :  { %v1364_v5 = vpop.permute.xlu0 %1363 }
 0xec6   :  { %v1366_v6 = vadd.f32 %v1364_v5, %v4906_v29 }
 0xec8   :  { %4613 = vtanh.f32 %v1366_v6 }
 0xec9   :  { %4615 = vpow2.f32 %v3718_v16  ;;  %v1313_v25 = vpop.permute.xlu0 %1312 }
 0xeca   :  { %v1315_v27 = vadd.f32 %v1313_v25, %v4906_v29 }
 0xecc   :  { %v3720_v42 = vmul.f32 -1.442695, %v1315_v27 }
 0xecd   :  { %v1410_v38 = vpop.permute.xlu0 %1409 }
 0xece   :  { %v1412_v40 = vadd.f32 %v1410_v38, %v4906_v29 }
 0xed0   :  { %v3723_v43 = vmul.f32 -1.442695, %v1412_v40 }
 0xed2   :  { %v4614_v8 = vpop.eup %4613 }
 0xed3   :  { %1424 = vrot.lane.b32.xlu1 %v4614_v8, %s4722_s18  ;;  %v4616_v17 = vpop.eup %4615 }
 0xed4   :  { %v1268_v18 = vadd.f32 1.0, %v4616_v17 }
 0xed6   :  { %4617 = vrcp.f32 %v1268_v18 }
 0xed7   :  { %4619 = vpow2.f32 %v3720_v42 }
 0xee0   :  { %v4618_v19 = vpop.eup %4617 }
 0xee1   :  { %v4620_v39 = vpop.eup %4619 }
 0xee2   :  { %v1319_v41 = vadd.f32 1.0, %v4620_v39 }
 0xee4   :  { %4621 = vrcp.f32 %v1319_v41 }
 0xeee   :  { %v4622_v28 = vpop.eup %4621 }
 0xeef   :  { %v1422_v31 = vmul.f32 %v4622_v28, %v1420_v30 }
 0xf45   :  { %v1425_v20 = vpop.permute.xlu1 %1424 }
 0xf46   :  { %v1427_v21 = vmul.f32 %v4618_v19, %v1425_v20 }
 0xf48   :  { %1429 = vrot.lane.b32.xlu1 %v1427_v21, %s4723_s25 }
 0xfba   :  { %v1430_v33 = vpop.permute.xlu1 %1429 }
 0xfbb   :  { %v5143_v36 = vadd.f32 %v1430_v33, %v1422_v31 }
 0xfbd   :  { %4623 = vtanh.f32 %v5143_v36 }
 0xfbe   :  { %4625 = vpow2.f32 %v3723_v43 }
 0xfc7   :  { %v4624_v37 = vpop.eup %4623 }
 0xfc8   :  { %1435 = vrot.lane.b32.xlu1 %v4624_v37, %s4722_s18  ;;  %v4626_v44 = vpop.eup %4625 }
 0xfc9   :  { %v1416_v23 = vadd.f32 1.0, %v4626_v44 }
 0xfcb   :  { %4627 = vrcp.f32 %v1416_v23 }
 0xfd5   :  { %v4628_v45 = vpop.eup %4627 }
0x103a   :  { %v1436_v24 = vpop.permute.xlu1 %1435 }
0x103b   :  { %v5148_v34 = vmul.f32 %v4628_v45, %v1436_v24 }
0x103d   :  { %v1445_v47 = vpack.c.bf16 %v5148_v34, %v5148_v34 }
0x103f   :  { %1447 = vrot.lane.b32.xlu0 %v1445_v47, %s4723_s25 }
0x10b1   :  { %v1448_v0 = vpop.permute.xlu0 %1447 }
0x10b2   :  { %4140 = vmatmul.mubr.msk.bf16.vlgmr.msra.gmra.mrb[44].mxu1 %vm93_vm1, %v1448_v0  ;;  %4148 = vmatmul.mubr.msk.bf16.vlgmr.msra.gmra.mrb[48].mxu0 %vm93_vm1, %v1448_v0 }
0x10b3   :  { %4152 = vmatpush3.bf16.msra.mxu1 %v4863_v10  ;;  %4160 = vmatpush3.bf16.msra.mxu0 %v4873_v13 }
0x10b4   :  { %4153 = vmatprep.subr.bf16.mxu1 %v4719_v1  ;;  %4161 = vmatprep.subr.bf16.mxu0 %v4719_v1 }
0x10b5   :  { %4155 = vmatprep.mubr.msk.bf16.mxu1 %vm4720_vm0, %v4719_v1  ;;  %4163 = vmatprep.mubr.msk.bf16.mxu0 %vm4720_vm0, %v4719_v1 }
0x10b7   :  { %4154 = vmatpush3.bf16.msra.mxu1 %v4869_v12  ;;  %4162 = vmatpush3.bf16.msra.mxu0 %v4877_v14 }
0x10b8   :  { %4175 = vmatprep.subr.bf16.mxu0 %v4719_v1  ;;  %4167 = vmatprep.subr.bf16.mxu1 %v4719_v1 }
0x10ba   :  { %4156 = vmatmul.mubr.msk.bf16.vlgmr.msra.gmra.mrb[48].mxu1 %vm93_vm1, %v1448_v0  ;;  %4164 = vmatmul.mubr.msk.bf16.vlgmr.msra.gmra.mrb[52].mxu0 %vm93_vm1, %v1448_v0 }
0x10bb   :  { %4176 = vmatpush3.bf16.msra.mxu0 %v4861_v9  ;;  %4168 = vmatpush3.bf16.msra.mxu1 %v5116_v26 }
0x10bc   :  { %4177 = vmatprep.subr.bf16.mxu0 %v4719_v1  ;;  %4169 = vmatprep.subr.bf16.mxu1 %v4719_v1 }
0x10bd   :  { %4171 = vmatprep.mubr.msk.bf16.mxu1 %vm4720_vm0, %v4719_v1  ;;  %4179 = vmatprep.mubr.msk.bf16.mxu0 %vm4720_vm0, %v4719_v1 }
0x10bf   :  { %4178 = vmatpush3.bf16.msra.mxu0 %v4867_v11  ;;  %4170 = vmatpush3.bf16.msra.mxu1 %v5129_v48 }
0x10c0   :  { %4183 = vmatprep.subr.bf16.mxu1 %v4719_v1  ;;  %4191 = vmatprep.subr.bf16.mxu0 %v4719_v1 }
0x1185   :  { %v1486_v50 = vpop.f32.mrb[44].mxu1  ;;  %v1543_v51 = vpop.f32.mrb[48].mxu0 }
0x1186   :  { %v4141_v52 = vpop.f32.mrb[45].mxu1  ;;  %v4149_v53 = vpop.f32.mrb[49].mxu0  ;;  %v1550_v18 = vrot.slane %v1543_v51, 2  ;;  %v1493_v19 = vrot.slane %v1486_v50, 2 }
0x1187   :  { %v1489_v54 = vpop.f32.mrb[46].mxu1  ;;  %v1546_v55 = vpop.f32.mrb[50].mxu0 }
0x1188   :  { %v4142_v56 = vpop.f32.mrb[47].mxu1  ;;  %v4150_v58 = vpop.f32.mrb[51].mxu0  ;;  %v1495_v20 = vadd.f32 %v1493_v19, %v4906_v29  ;;  %v1496_v21 = vadd.f32 %v1493_v19, %v4908_v32  ;;  %v1677_v55 = vrot.slane %v5143_v36, 2 }
0x118a   :  { %v3726_v25 = vmul.f32 -1.442695, %v1495_v20  ;;  %v3727_v27 = vmul.f32 -1.442695, %v1496_v21 }
0x118d   :  { %v1602_v49 = vpop.f32.mrb[48].mxu1  ;;  %v1651_v60 = vpop.f32.mrb[52].mxu0 }
0x118e   :  { %v1609_v61 = vrot.slane %v1602_v49, 2  ;;  %v4157_v62 = vpop.f32.mrb[49].mxu1  ;;  %v4165_v2 = vpop.f32.mrb[53].mxu0  ;;  %v1658_v43 = vrot.slane %v1651_v60, 2 }
0x118f   :  { %v1605_v63 = vpop.f32.mrb[50].mxu1  ;;  %v1654_v3 = vpop.f32.mrb[54].mxu0 }
0x1190   :  { %1610 = vrot.lane.b32.xlu1 %v1609_v61, %s4722_s18  ;;  %v4158_v4 = vpop.f32.mrb[51].mxu1  ;;  %v4166_v5 = vpop.f32.mrb[55].mxu0 }
0x1202   :  { %v1611_v6 = vpop.permute.xlu1 %1610 }
0x1203   :  { %v1613_v8 = vadd.f32 %v1611_v6, %v4906_v29  ;;  %v1614_v15 = vadd.f32 %v1611_v6, %v4908_v32 }
0x1205   :  { %4629 = vtanh.f32 %v1613_v8 }
0x1206   :  { %4631 = vtanh.f32 %v1614_v15 }
0x1207   :  { %4633 = vpow2.f32 %v3726_v25 }
0x1208   :  { %4635 = vpow2.f32 %v3727_v27 }
0x120f   :  { %v4630_v16 = vpop.eup %4629 }
0x1210   :  { %v4632_v17 = vpop.eup %4631  ;;  %1683 = vrot.lane.b32.xlu0 %v4630_v16, %s4722_s18 }
0x1211   :  { %1685 = vrot.lane.b32.xlu1 %v4632_v17, %s4722_s18  ;;  %v4634_v42 = vpop.eup %4633 }
0x1212   :  { %v4636_v39 = vpop.eup %4635  ;;  %v1503_v41 = vadd.f32 1.0, %v4634_v42 }
0x1213   :  { %v1504_v28 = vadd.f32 1.0, %v4636_v39 }
0x1214   :  { %1551 = vrot.lane.b32.xlu0 %v1550_v18, %s4723_s25  ;;  %4637 = vrcp.f32 %v1503_v41 }
0x1215   :  { %4639 = vrcp.f32 %v1504_v28 }
0x121e   :  { %v4638_v30 = vpop.eup %4637 }
0x121f   :  { %v4640_v33 = vpop.eup %4639 }
0x1282   :  { %v1684_v31 = vpop.permute.xlu0 %1683 }
0x1283   :  { %v1686_v37 = vpop.permute.xlu1 %1685  ;;  %v1689_v38 = vmul.f32 %v4638_v30, %v1684_v31 }
0x1284   :  { %v1690_v40 = vmul.f32 %v4640_v33, %v1686_v37 }
0x1285   :  { %1693 = vrot.lane.b32.xlu1 %v1689_v38, %s4723_s25 }
0x1286   :  { %1695 = vrot.lane.b32.xlu0 %v1690_v40, %s4723_s25  ;;  %v1552_v44 = vpop.permute.xlu0 %1551 }
0x1287   :  { %v1554_v23 = vadd.f32 %v1552_v44, %v4906_v29  ;;  %v1555_v45 = vadd.f32 %v1552_v44, %v4908_v32 }
0x1289   :  { %1659 = vrot.lane.b32.xlu1 %v1658_v43, %s4721_s17  ;;  %v3729_v24 = vmul.f32 -1.442695, %v1554_v23  ;;  %v3730_v47 = vmul.f32 -1.442695, %v1555_v45 }
0x128b   :  { %4641 = vpow2.f32 %v3729_v24 }
0x128c   :  { %4643 = vpow2.f32 %v3730_v47 }
0x1295   :  { %v4642_v0 = vpop.eup %4641 }
0x1296   :  { %v4644_v50 = vpop.eup %4643  ;;  %v1562_v51 = vadd.f32 1.0, %v4642_v0 }
0x1297   :  { %v1563_v52 = vadd.f32 1.0, %v4644_v50 }
0x1298   :  { %4645 = vrcp.f32 %v1562_v51 }
0x1299   :  { %4647 = vrcp.f32 %v1563_v52 }
0x12a2   :  { %v4646_v53 = vpop.eup %4645 }
0x12a3   :  { %v4648_v54 = vpop.eup %4647  ;;  %v1679_v56 = vmul.f32 %v4646_v53, %v1677_v55 }
0x12a4   :  { %v1680_v49 = vmul.f32 %v4648_v54, %v1677_v55 }
0x12f7   :  { %v1694_v58 = vpop.permute.xlu1 %1693 }
0x12f8   :  { %v1699_v60 = vadd.f32 %v1694_v58, %v1679_v56  ;;  %v1696_v61 = vpop.permute.xlu0 %1695 }
0x12f9   :  { %v5195_v62 = vadd.f32 %v1696_v61, %v1680_v49 }
0x12fa   :  { %4649 = vtanh.f32 %v1699_v60  ;;  %v1958_v2 = vrot.slane %v1699_v60, 2 }
0x12fb   :  { %4651 = vtanh.f32 %v5195_v62  ;;  %v1959_v63 = vrot.slane %v5195_v62, 2  ;;  %v1660_v5 = vpop.permute.xlu1 %1659 }
0x12fc   :  { %v1662_v6 = vadd.f32 %v1660_v5, %v4906_v29  ;;  %v1663_v8 = vadd.f32 %v1660_v5, %v4908_v32 }
0x12fd   :  { %v5202_v3 = vsel %vm930_vm2, %v1958_v2, %v1959_v63 }
0x12fe   :  { %v3733_v15 = vmul.f32 -1.442695, %v1662_v6  ;;  %v3734_v16 = vmul.f32 -1.442695, %v1663_v8 }
0x1300   :  { %4653 = vpow2.f32 %v3733_v15 }
0x1301   :  { %4655 = vpow2.f32 %v3734_v16 }
0x1304   :  { %v4650_v4 = vpop.eup %4649 }
0x1305   :  { %v4652_v36 = vpop.eup %4651  ;;  %1705 = vrot.lane.b32.xlu0 %v4650_v4, %s4722_s18 }
0x1306   :  { %1707 = vrot.lane.b32.xlu1 %v4652_v36, %s4722_s18 }
0x130a   :  { %v4654_v17 = vpop.eup %4653 }
0x130b   :  { %v4656_v18 = vpop.eup %4655  ;;  %v1670_v19 = vadd.f32 1.0, %v4654_v17 }
0x130c   :  { %v1671_v20 = vadd.f32 1.0, %v4656_v18 }
0x130d   :  { %4657 = vrcp.f32 %v1670_v19 }
0x130e   :  { %4659 = vrcp.f32 %v1671_v20 }
0x1317   :  { %v4658_v21 = vpop.eup %4657 }
0x1318   :  { %v4660_v27 = vpop.eup %4659 }
0x1377   :  { %v1706_v25 = vpop.permute.xlu0 %1705 }
0x1378   :  { %v5208_v42 = vmul.f32 %v4658_v21, %v1706_v25  ;;  %v1708_v39 = vpop.permute.xlu1 %1707 }
0x1379   :  { %v5210_v41 = vmul.f32 %v4660_v27, %v1708_v39 }
0x137b   :  { %v1724_v29 = vpack.c.bf16 %v5210_v41, %v5208_v42 }
0x137d   :  { %v1726_v28 = vrot.slane %v1724_v29, 3 }
0x137f   :  { %1727 = vrot.lane.b32.xlu0 %v1726_v28, %s4723_s25 }
0x13f1   :  { %v1728_v30 = vpop.permute.xlu0 %1727 }
0x13f2   :  { %4172 = vmatmul.mubr.msk.bf16.vlgmr.msra.gmra.mrb[52].mxu1 %vm93_vm1, %v1728_v30  ;;  %4180 = vmatmul.mubr.msk.bf16.vlgmr.msra.gmra.mrb[56].mxu0 %vm93_vm1, %v1728_v30 }
0x13f3   :  { %4184 = vmatpush3.bf16.msra.mxu1 %v4863_v10  ;;  %4192 = vmatpush3.bf16.msra.mxu0 %v4873_v13 }
0x13f4   :  { %4185 = vmatprep.subr.bf16.mxu1 %v4719_v1  ;;  %4193 = vmatprep.subr.bf16.mxu0 %v4719_v1 }
0x13f5   :  { %4187 = vmatprep.mubr.msk.bf16.mxu1 %vm4720_vm0, %v4719_v1  ;;  %4195 = vmatprep.mubr.msk.bf16.mxu0 %vm4720_vm0, %v4719_v1 }
0x13f7   :  { %4186 = vmatpush3.bf16.msra.mxu1 %v4869_v12  ;;  %4194 = vmatpush3.bf16.msra.mxu0 %v4877_v14 }
0x13f8   :  { %4207 = vmatprep.subr.bf16.mxu0 %v4719_v1  ;;  %4199 = vmatprep.subr.bf16.mxu1 %v4719_v1 }
0x13fa   :  { %4188 = vmatmul.mubr.msk.bf16.vlgmr.msra.gmra.mrb[56].mxu1 %vm93_vm1, %v1728_v30  ;;  %4196 = vmatmul.mubr.msk.bf16.vlgmr.msra.gmra.mrb[60].mxu0 %vm93_vm1, %v1728_v30 }
0x13fb   :  { %4208 = vmatpush3.bf16.msra.mxu0 %v4861_v9  ;;  %4200 = vmatpush3.bf16.msra.mxu1 %v5116_v26 }
0x13fc   :  { %4209 = vmatprep.subr.bf16.mxu0 %v4719_v1  ;;  %4201 = vmatprep.subr.bf16.mxu1 %v4719_v1 }
0x13fd   :  { %4203 = vmatprep.mubr.msk.bf16.mxu1 %vm4720_vm0, %v4719_v1  ;;  %4211 = vmatprep.mubr.msk.bf16.mxu0 %vm4720_vm0, %v4719_v1 }
0x13ff   :  { %4210 = vmatpush3.bf16.msra.mxu0 %v4867_v11  ;;  %4202 = vmatpush3.bf16.msra.mxu1 %v5129_v48 }
0x1400   :  { %4215 = vmatprep.subr.bf16.mxu1 %v4719_v1  ;;  %4223 = vmatprep.subr.bf16.mxu0 %v4719_v1 }
0x14c5   :  { %v1766_v9 = vpop.f32.mrb[52].mxu1  ;;  %v1823_v26 = vpop.f32.mrb[56].mxu0 }
0x14c6   :  { %v4173_v31 = vpop.f32.mrb[53].mxu1  ;;  %v4181_v33 = vpop.f32.mrb[57].mxu0  ;;  %v1830_v56 = vrot.slane %v1823_v26, 4  ;;  %v1773_v58 = vrot.slane %v1766_v9, 4 }
0x14c7   :  { %v1769_v37 = vpop.f32.mrb[54].mxu1  ;;  %v1826_v38 = vpop.f32.mrb[58].mxu0 }
0x14c8   :  { %v4174_v40 = vpop.f32.mrb[55].mxu1  ;;  %v4182_v43 = vpop.f32.mrb[59].mxu0  ;;  %v1775_v49 = vadd.f32 %v1773_v58, %v4908_v32  ;;  %v1776_v60 = vadd.f32 %v1773_v58, %v4910_v35 }
0x14ca   :  { %v3738_v61 = vmul.f32 -1.442695, %v1775_v49  ;;  %v3739_v2 = vmul.f32 -1.442695, %v1776_v60 }
0x14cd   :  { %v1882_v44 = vpop.f32.mrb[56].mxu1  ;;  %v1931_v23 = vpop.f32.mrb[60].mxu0 }
0x14ce   :  { %v1889_v45 = vrot.slane %v1882_v44, 4  ;;  %v4189_v24 = vpop.f32.mrb[57].mxu1  ;;  %v4197_v47 = vpop.f32.mrb[61].mxu0  ;;  %v1938_v20 = vrot.slane %v1931_v23, 4 }
0x14cf   :  { %v1885_v11 = vpop.f32.mrb[58].mxu1  ;;  %v1934_v0 = vpop.f32.mrb[62].mxu0 }
0x14d0   :  { %1890 = vrot.lane.b32.xlu1 %v1889_v45, %s4722_s18  ;;  %v4190_v48 = vpop.f32.mrb[59].mxu1  ;;  %v4198_v50 = vpop.f32.mrb[63].mxu0 }
0x1542   :  { %v1891_v51 = vpop.permute.xlu1 %1890 }
0x1543   :  { %v1893_v52 = vadd.f32 %v1891_v51, %v4908_v32  ;;  %v1894_v53 = vadd.f32 %v1891_v51, %v4910_v35 }
0x1545   :  { %4661 = vtanh.f32 %v1893_v52 }
0x1546   :  { %4663 = vtanh.f32 %v1894_v53 }
0x1547   :  { %4665 = vpow2.f32 %v3738_v61 }
0x1548   :  { %4667 = vpow2.f32 %v3739_v2 }
0x154f   :  { %v4662_v54 = vpop.eup %4661 }
0x1550   :  { %v4664_v55 = vpop.eup %4663  ;;  %1967 = vrot.lane.b32.xlu0 %v4662_v54, %s4722_s18 }
0x1551   :  { %1969 = vrot.lane.b32.xlu1 %v4664_v55, %s4722_s18  ;;  %v4666_v4 = vpop.eup %4665 }
0x1552   :  { %v4668_v36 = vpop.eup %4667  ;;  %v1783_v5 = vadd.f32 1.0, %v4666_v4 }
0x1553   :  { %v1784_v6 = vadd.f32 1.0, %v4668_v36 }
0x1554   :  { %1831 = vrot.lane.b32.xlu0 %v1830_v56, %s4723_s25  ;;  %4669 = vrcp.f32 %v1783_v5 }
0x1555   :  { %4671 = vrcp.f32 %v1784_v6 }
0x155e   :  { %v4670_v8 = vpop.eup %4669 }
0x155f   :  { %v4672_v16 = vpop.eup %4671 }
0x15c2   :  { %v1968_v15 = vpop.permute.xlu0 %1967 }
0x15c3   :  { %v1970_v17 = vpop.permute.xlu1 %1969  ;;  %v1973_v18 = vmul.f32 %v4670_v8, %v1968_v15 }
0x15c4   :  { %v1974_v19 = vmul.f32 %v4672_v16, %v1970_v17 }
0x15c5   :  { %1977 = vrot.lane.b32.xlu1 %v1973_v18, %s4723_s25  ;;  %v4725_v18 = vmov 0.0|0.0  }
0x15c6   :  { %1979 = vrot.lane.b32.xlu0 %v1974_v19, %s4723_s25  ;;  %v1832_v21 = vpop.permute.xlu0 %1831  ;;  %v2243_v19 = vld [vmem:[%s5673_s4 + $0x10] sm:$0xff] }
0x15c7   :  { %v1834_v25 = vadd.f32 %v1832_v21, %v4908_v32  ;;  %v1835_v27 = vadd.f32 %v1832_v21, %v4910_v35 }
0x15c9   :  { %1939 = vrot.lane.b32.xlu1 %v1938_v20, %s4721_s17  ;;  %v3741_v39 = vmul.f32 -1.442695, %v1834_v25  ;;  %v3742_v29 = vmul.f32 -1.442695, %v1835_v27  ;;  %v2244_v20 = vld [vmem:[%s5673_s4 + $0x18] sm:$0xff] }
0x15ca   :  { %v5308_v21 = vpack.c.bf16 %v2244_v20, %v2243_v19  ;;  %v2553_v19 = vrot.slane %v5091_v46, 2  ;;  %v2842_v20 = vrot.slane %v5208_v42, 6 }
0x15cb   :  { %4673 = vpow2.f32 %v3741_v39 }
0x15cc   :  { %4675 = vpow2.f32 %v3742_v29 }
0x15d5   :  { %v4674_v28 = vpop.eup %4673 }
0x15d6   :  { %v4676_v30 = vpop.eup %4675  ;;  %v1842_v9 = vadd.f32 1.0, %v4674_v28 }
0x15d7   :  { %v1843_v26 = vadd.f32 1.0, %v4676_v30 }
0x15d8   :  { %4677 = vrcp.f32 %v1842_v9 }
0x15d9   :  { %4679 = vrcp.f32 %v1843_v26 }
0x15e2   :  { %v4678_v31 = vpop.eup %4677 }
0x15e3   :  { %v4680_v33 = vpop.eup %4679  ;;  %v1963_v37 = vmul.f32 %v4678_v31, %v5202_v3 }
0x15e4   :  { %v1964_v40 = vmul.f32 %v4680_v33, %v1959_v63 }
0x1637   :  { %v1978_v38 = vpop.permute.xlu1 %1977 }
0x1638   :  { %v1983_v43 = vadd.f32 %v1978_v38, %v1963_v37  ;;  %v1980_v44 = vpop.permute.xlu0 %1979  ;;  %v2407_v38 = vrot.slane %v5045_v7, 4 }
0x1639   :  { %v1984_v23 = vadd.f32 %v1980_v44, %v1964_v40 }
0x163a   :  { %4681 = vtanh.f32 %v1983_v43  ;;  %v2214_v45 = vrot.slane %v1983_v43, 2 }
0x163b   :  { %4683 = vtanh.f32 %v1984_v23  ;;  %v2215_v24 = vrot.slane %v1984_v23, 2  ;;  %v1940_v3 = vpop.permute.xlu1 %1939 }
0x163c   :  { %v1942_v62 = vadd.f32 %v1940_v3, %v4908_v32  ;;  %v1943_v63 = vadd.f32 %v1940_v3, %v4910_v35 }
0x163d   :  { %v5260_v47 = vsel %vm930_vm2, %v2214_v45, %v2215_v24 }
0x163e   :  { %v3745_v48 = vmul.f32 -1.442695, %v1942_v62  ;;  %v3746_v50 = vmul.f32 -1.442695, %v1943_v63 }
0x1640   :  { %4685 = vpow2.f32 %v3745_v48 }
0x1641   :  { %4687 = vpow2.f32 %v3746_v50 }
0x1644   :  { %v4682_v11 = vpop.eup %4681 }
0x1645   :  { %v4684_v0 = vpop.eup %4683  ;;  %1989 = vrot.lane.b32.xlu0 %v4682_v11, %s4722_s18 }
0x1646   :  { %1991 = vrot.lane.b32.xlu1 %v4684_v0, %s4722_s18 }
0x164a   :  { %v4686_v51 = vpop.eup %4685 }
0x164b   :  { %v4688_v52 = vpop.eup %4687  ;;  %v1950_v53 = vadd.f32 1.0, %v4686_v51 }
0x164c   :  { %v1951_v54 = vadd.f32 1.0, %v4688_v52 }
0x164d   :  { %4689 = vrcp.f32 %v1950_v53 }
0x164e   :  { %4691 = vrcp.f32 %v1951_v54 }
0x1657   :  { %v4690_v55 = vpop.eup %4689 }
0x1658   :  { %v4692_v58 = vpop.eup %4691 }
0x16b7   :  { %v1990_v56 = vpop.permute.xlu0 %1989 }
0x16b8   :  { %v5266_v49 = vmul.f32 %v4690_v55, %v1990_v56  ;;  %v1992_v60 = vpop.permute.xlu1 %1991 }
0x16b9   :  { %v1996_v61 = vmul.f32 %v4692_v58, %v1992_v60 }
0x16ba   :  { %v2990_v40 = vrot.slane %v5266_v49, 4 }
0x16bb   :  { %v2003_v32 = vpack.c.bf16 %v1996_v61, %v5266_v49 }
0x16bd   :  { %v2005_v2 = vrot.slane %v2003_v32, 2 }
0x16bf   :  { %2006 = vrot.lane.b32.xlu0 %v2005_v2, %s4723_s25  ;;  %v2246_v2 = vld [vmem:[%s5675_s5 + $0x8] sm:$0xff] }
0x1731   :  { %v2007_v4 = vpop.permute.xlu0 %2006 }
0x1732   :  { %4204 = vmatmul.mubr.msk.bf16.vlgmr.msra.gmra.mrb[60].mxu1 %vm93_vm1, %v2007_v4  ;;  %4212 = vmatmul.mubr.msk.bf16.vlgmr.msra.gmra.mrb[64].mxu0 %vm93_vm1, %v2007_v4 }
0x1733   :  { %4216 = vmatpush3.bf16.msra.mxu1 %v4863_v10  ;;  %4224 = vmatpush3.bf16.msra.mxu0 %v4873_v13 }
0x1734   :  { %4217 = vmatprep.subr.bf16.mxu1 %v4719_v1  ;;  %4225 = vmatprep.subr.bf16.mxu0 %v4719_v1 }
0x1735   :  { %4219 = vmatprep.mubr.msk.bf16.mxu1 %vm4720_vm0, %v4719_v1  ;;  %4227 = vmatprep.mubr.msk.bf16.mxu0 %vm4720_vm0, %v4719_v1 }
0x1737   :  { %4218 = vmatpush3.bf16.msra.mxu1 %v4869_v12  ;;  %4226 = vmatpush3.bf16.msra.mxu0 %v4877_v14  ;;  %v2241_v12 = vld [vmem:[%s5673_s4] sm:$0xff]  ;;  %v2242_v14 = vld [vmem:[%s5673_s4 + $0x8] sm:$0xff] }
0x1738   :  { %v5296_v15 = vpack.c.bf16 %v2242_v14, %v2241_v12  ;;  %4413 = vmatprep.subr.bf16.mxu0 %v4725_v18  ;;  %4407 = vmatprep.subr.bf16.mxu1 %v4725_v18 }
0x173a   :  { %4220 = vmatmul.mubr.msk.bf16.vlgmr.msra.gmra.mrb[64].mxu1 %vm93_vm1, %v2007_v4  ;;  %4228 = vmatmul.mubr.msk.bf16.vlgmr.msra.gmra.mrb[68].mxu0 %vm93_vm1, %v2007_v4 }
0x173b   :  { %4250 = vmatprep.mubr.msk.f32.mxu0 %vm4720_vm0, %v4719_v1  ;;  %4239 = vmatprep.mubr.msk.f32.mxu1 %vm4720_vm0, %v4719_v1 }
0x173c   :  { %4415 = vmatpush3.bf16.msra.mxu0 %v5296_v15 }
0x173d   :  { %4416 = vmatprep.subr.bf16.mxu0 %v4725_v18 }
0x1740   :  { %4418 = vmatpush3.bf16.msra.mxu0 %v5308_v21 }
0x1741   :  { %4425 = vmatprep.subr.bf16.mxu0 %v4725_v18 }
0x1805   :  { %v5288_v10 = vpop.f32.mrb[60].mxu1  ;;  %v2095_v13 = vpop.f32.mrb[64].mxu0 }
0x1806   :  { %v4205_v36 = vpop.f32.mrb[61].mxu1  ;;  %v4213_v5 = vpop.f32.mrb[65].mxu0  ;;  %v2102_v33 = vrot.slane %v2095_v13, 6  ;;  %v2052_v51 = vrot.slane %v5288_v10, 6  ;;  %v2247_v10 = vld [vmem:[%s5675_s5 + $0x10] sm:$0xff]  ;;  %v2248_v13 = vld [vmem:[%s5675_s5 + $0x18] sm:$0xff] }
0x1807   :  { %v2048_v6 = vpop.f32.mrb[62].mxu1  ;;  %v2098_v8 = vpop.f32.mrb[66].mxu0  ;;  %v5368_v5 = vpack.c.bf16 %v2248_v13, %v2247_v10 }
0x1808   :  { %v4206_v16 = vpop.f32.mrb[63].mxu1  ;;  %v4214_v17 = vpop.f32.mrb[67].mxu0  ;;  %v2054_v52 = vadd.f32 %v2052_v51, %v4910_v35  ;;  %v2251_v8 = vrot.slane %v4987_v57, 6 }
0x1809   :  { %v2252_v16 = vrot.slane %v4989_v59, 6 }
0x180a   :  { %v3749_v53 = vmul.f32 -1.442695, %v2054_v52 }
0x180b   :  { %v2253_v17 = vsel %vm2250_vm4, %v2251_v8, %v2252_v16 }
0x180d   :  { %v2147_v25 = vpop.f32.mrb[64].mxu1  ;;  %v2194_v27 = vpop.f32.mrb[68].mxu0 }
0x180e   :  { %v2154_v39 = vrot.slane %v2147_v25, 6  ;;  %v4221_v29 = vpop.f32.mrb[65].mxu1  ;;  %v4229_v28 = vpop.f32.mrb[69].mxu0  ;;  %v2201_v37 = vrot.slane %v2194_v27, 6  ;;  %v2843_v25 = vrot.slane %v5210_v41, 6 }
0x180f   :  { %v2150_v30 = vpop.f32.mrb[66].mxu1  ;;  %v2197_v9 = vpop.f32.mrb[70].mxu0 }
0x1810   :  { %2155 = vrot.lane.b32.xlu1 %v2154_v39, %s4722_s18  ;;  %v4222_v26 = vpop.f32.mrb[67].mxu1  ;;  %v4230_v31 = vpop.f32.mrb[71].mxu0 }
0x1814   :  { %2103 = vrot.lane.b32.xlu1 %v2102_v33, %s4723_s25 }
0x1818   :  { %2202 = vrot.lane.b32.xlu1 %v2201_v37, %s4721_s17 }
0x181c   :  { %410 = vrot.lane.b32.xlu1 %v4927_v22, %s4723_s25 }
0x1820   :  { %2408 = vrot.lane.b32.xlu1 %v2407_v38, %s4723_s25 }
0x1824   :  { %1440 = vrot.lane.b32.xlu1 %v5148_v34, %s4723_s25 }
0x1828   :  { %2991 = vrot.lane.b32.xlu1 %v2990_v40, %s4723_s25 }
0x1882   :  { %v2156_v43 = vpop.permute.xlu1 %2155 }
0x1883   :  { %v2158_v44 = vadd.f32 %v2156_v43, %v4910_v35 }
0x1885   :  { %4693 = vtanh.f32 %v2158_v44 }
0x1886   :  { %v2104_v23 = vpop.permute.xlu1 %2103 }
0x1887   :  { %v2106_v45 = vadd.f32 %v2104_v23, %v4910_v35 }
0x1889   :  { %v3751_v24 = vmul.f32 -1.442695, %v2106_v45 }
0x188a   :  { %v5325_v22 = vpop.permute.xlu1 %2202 }
0x188b   :  { %4695 = vpow2.f32 %v3751_v24  ;;  %v2205_v27 = vadd.f32 %v5325_v22, %v4910_v35  ;;  %v3758_v24 = vld [vmem:[%s5676_s6] ss:$0 sm:$0xff] }
0x188d   :  { %v3754_v39 = vmul.f32 -1.442695, %v2205_v27  ;;  %v3297_v27 = vld [vmem:[%s5677_s8] sm:$0xff] }
0x188e   :  { %v411_v11 = vpop.permute.xlu1 %410 }
0x188f   :  { %v4694_v0 = vpop.eup %4693  ;;  %414 = vst.msk [vmem:[%s5674_s13] sm:$0xf] %vm413_vm3, %v411_v11  ;;  %4251 = vmatmul.mubr.msk.f32.vlgmr.msra.gmra.mrb[72].mxu0 %vm93_vm1, %v411_v11 }
0x1890   :  { %2220 = vrot.lane.b32.xlu0 %v4694_v0, %s4722_s18  ;;  %4427 = vmatpush3.bf16.msra.mxu0 %v5296_v15 }
0x1891   :  { %4428 = vmatprep.subr.bf16.mxu0 %v4725_v18  ;;  %4272 = vmatprep.mubr.msk.f32.mxu0 %vm4720_vm0, %v4719_v1 }
0x1892   :  { %v5336_v34 = vpop.permute.xlu1 %2408 }
0x1894   :  { %4430 = vmatpush3.bf16.msra.mxu0 %v5308_v21 }
0x1895   :  { %v4696_v3 = vpop.eup %4695  ;;  %4437 = vmatprep.subr.bf16.mxu0 %v4725_v18 }
0x1896   :  { %v2110_v62 = vadd.f32 1.0, %v4696_v3  ;;  %v5340_v63 = vpop.permute.xlu1 %1440 }
0x1897   :  { %3724 = vst.msk [vmem:[%s5674_s13 + $0x10] sm:$0xf] %vm413_vm3, %v5340_v63 }
0x1898   :  { %4697 = vrcp.f32 %v2110_v62 }
0x1899   :  { %4699 = vpow2.f32 %v3749_v53 }
0x189a   :  { %v5390_v30 = vpop.permute.xlu1 %2991 }
0x18a2   :  { %v4698_v48 = vpop.eup %4697 }
0x18a3   :  { %v2218_v50 = vmul.f32 %v4698_v48, %v5260_v47  ;;  %v4700_v54 = vpop.eup %4699  ;;  %v2245_v47 = vld [vmem:[%s5675_s5] sm:$0xff] }
0x18a4   :  { %v2058_v55 = vadd.f32 1.0, %v4700_v54  ;;  %v5358_v4 = vpack.c.bf16 %v2246_v2, %v2245_v47 }
0x18a6   :  { %4701 = vrcp.f32 %v2058_v55  ;;  %4409 = vmatpush3.bf16.msra.mxu1 %v5358_v4 }
0x18a7   :  { %4410 = vmatprep.subr.bf16.mxu1 %v4725_v18 }
0x18aa   :  { %4412 = vmatpush3.bf16.msra.mxu1 %v5368_v5 }
0x18ab   :  { %4419 = vmatprep.subr.bf16.mxu1 %v4725_v18 }
0x18b0   :  { %v4702_v56 = vpop.eup %4701 }
0x1902   :  { %v2221_v58 = vpop.permute.xlu0 %2220 }
0x1903   :  { %v2223_v60 = vmul.f32 %v4702_v56, %v2221_v58 }
0x1905   :  { %2225 = vrot.lane.b32.xlu0 %v2223_v60, %s4723_s25 }
0x1962   :  { %v5350_v61 = vpop.f32.mrb[72].mxu0 }
0x1963   :  { %v4252_v32 = vpop.f32.mrb[73].mxu0 }
0x1977   :  { %v2226_v36 = vpop.permute.xlu0 %2225 }
0x1978   :  { %v2228_v12 = vadd.f32 %v2226_v36, %v2218_v50 }
0x197a   :  { %4703 = vtanh.f32 %v2228_v12  ;;  %v3284_v14 = vrot.slane %v2228_v12, 6 }
0x197b   :  { %4705 = vpow2.f32 %v3754_v39  ;;  %v3298_v39 = vld [vmem:[%s5677_s8 + $0x8] sm:$0xff] }
0x197c   :  { %3285 = vrot.lane.b32.xlu1 %v3284_v14, %s4721_s17 }
0x1980   :  { %687 = vrot.lane.b32.xlu1 %v4989_v59, %s4723_s25  ;;  %v2844_v59 = vsel %vm2250_vm4, %v2842_v20, %v2843_v25 }
0x1984   :  { %v4704_v6 = vpop.eup %4703  ;;  %1210 = vrot.lane.b32.xlu1 %v5091_v46, %s4723_s25 }
0x1985   :  { %2231 = vrot.lane.b32.xlu0 %v4704_v6, %s4722_s18  ;;  %v4706_v29 = vpop.eup %4705 }
0x1986   :  { %v2209_v28 = vadd.f32 1.0, %v4706_v29  ;;  %v4492_v29 = vpack.c.bf16 %v3298_v39, %v3297_v27 }
0x1988   :  { %1717 = vrot.lane.b32.xlu1 %v5210_v41, %s4723_s25  ;;  %4707 = vrcp.f32 %v2209_v28  ;;  %v3299_v28 = vld [vmem:[%s5677_s8 + $0x10] sm:$0xff] }
0x1989   :  { %2254 = vrot.lane.b32.xlu0 %v2253_v17, %s4723_s25 }
0x198d   :  { %2554 = vrot.lane.b32.xlu0 %v2553_v19, %s4723_s25 }
0x1991   :  { %2845 = vrot.lane.b32.xlu0 %v2844_v59, %s4723_s25 }
0x1992   :  { %v4708_v26 = vpop.eup %4707 }
0x19ee   :  { %v5392_v46 = vpop.permute.xlu1 %3285 }
0x19f2   :  { %v688_v9 = vpop.permute.xlu1 %687 }
0x19f3   :  { %3697 = vst.msk [vmem:[%s5674_s13 + $0x6] sm:$0x3] %vm694_vm5, %v688_v9 }
0x19f6   :  { %v1211_v41 = vpop.permute.xlu1 %1210 }
0x19f7   :  { %3716 = vst.msk [vmem:[%s5674_s13 + $0xa] sm:$0x3c] %vm1214_vm6, %v1211_v41  ;;  %v2232_v35 = vpop.permute.xlu0 %2231 }
0x19f8   :  { %v5402_v31 = vmul.f32 %v4708_v26, %v2232_v35 }
0x19fa   :  { %v3136_v33 = vrot.slane %v5402_v31, 2  ;;  %v1718_v37 = vpop.permute.xlu1 %1717 }
0x19fb   :  { %3736 = vst.msk [vmem:[%s5674_s13 + $0x16] sm:$0x3] %vm694_vm5, %v1718_v37  ;;  %v2255_v38 = vpop.permute.xlu0 %2254 }
0x19fc   :  { %4240 = vmatmul.mubr.msk.f32.vlgmr.msra.gmra.mrb[68].mxu1 %vm93_vm1, %v2255_v38  ;;  %3137 = vrot.lane.b32.xlu0 %v3136_v33, %s4723_s25 }
0x19fd   :  { %4421 = vmatpush3.bf16.msra.mxu1 %v5358_v4  ;;  %4273 = vmatmul.mubr.msk.f32.vlgmr.msra.gmra.mrb[74].mxu0 %vm93_vm1, %v2255_v38 }
0x19fe   :  { %4439 = vmatpush3.bf16.msra.mxu0 %v5296_v15  ;;  %4422 = vmatprep.subr.bf16.mxu1 %v4725_v18 }
0x19ff   :  { %4440 = vmatprep.subr.bf16.mxu0 %v4725_v18  ;;  %4261 = vmatprep.mubr.msk.f32.mxu1 %vm4720_vm0, %v4719_v1 }
0x1a00   :  { %685 = vrot.lane.b32.xlu0 %v4987_v57, %s4723_s25  ;;  %4294 = vmatprep.mubr.msk.f32.mxu0 %vm4720_vm0, %v4719_v1  ;;  %v2555_v57 = vpop.permute.xlu0 %2554 }
0x1a01   :  { %4424 = vmatpush3.bf16.msra.mxu1 %v5368_v5 }
0x1a02   :  { %4442 = vmatpush3.bf16.msra.mxu0 %v5308_v21  ;;  %4431 = vmatprep.subr.bf16.mxu1 %v4725_v18 }
0x1a03   :  { %4449 = vmatprep.subr.bf16.mxu0 %v4725_v18 }
0x1a04   :  { %4262 = vmatmul.mubr.msk.f32.vlgmr.msra.gmra.mrb[70].mxu1 %vm93_vm1, %v5336_v34  ;;  %971 = vrot.lane.b32.xlu0 %v5045_v7, %s4723_s25  ;;  %v2846_v7 = vpop.permute.xlu0 %2845 }
0x1a05   :  { %4295 = vmatmul.mubr.msk.f32.vlgmr.msra.gmra.mrb[76].mxu0 %vm93_vm1, %v5336_v34  ;;  %4433 = vmatpush3.bf16.msra.mxu1 %v5358_v4 }
0x1a06   :  { %4451 = vmatpush3.bf16.msra.mxu0 %v5296_v15  ;;  %4434 = vmatprep.subr.bf16.mxu1 %v4725_v18 }
0x1a07   :  { %4452 = vmatprep.subr.bf16.mxu0 %v4725_v18  ;;  %4283 = vmatprep.mubr.msk.f32.mxu1 %vm4720_vm0, %v4719_v1 }
0x1a08   :  { %1715 = vrot.lane.b32.xlu0 %v5208_v42, %s4723_s25  ;;  %4316 = vmatprep.mubr.msk.f32.mxu0 %vm4720_vm0, %v4719_v1 }
0x1a09   :  { %4436 = vmatpush3.bf16.msra.mxu1 %v5368_v5 }
0x1a0a   :  { %4454 = vmatpush3.bf16.msra.mxu0 %v5308_v21  ;;  %4443 = vmatprep.subr.bf16.mxu1 %v4725_v18 }
0x1a0b   :  { %4461 = vmatprep.subr.bf16.mxu0 %v4725_v18 }
0x1a0c   :  { %4284 = vmatmul.mubr.msk.f32.vlgmr.msra.gmra.mrb[72].mxu1 %vm93_vm1, %v2555_v57 }
0x1a0d   :  { %4317 = vmatmul.mubr.msk.f32.vlgmr.msra.gmra.mrb[78].mxu0 %vm93_vm1, %v2555_v57  ;;  %4445 = vmatpush3.bf16.msra.mxu1 %v5358_v4 }
0x1a0e   :  { %4463 = vmatpush3.bf16.msra.mxu0 %v5296_v15  ;;  %4446 = vmatprep.subr.bf16.mxu1 %v4725_v18 }
0x1a0f   :  { %4464 = vmatprep.subr.bf16.mxu0 %v4725_v18  ;;  %4305 = vmatprep.mubr.msk.f32.mxu1 %vm4720_vm0, %v4719_v1 }
0x1a10   :  { %4338 = vmatprep.mubr.msk.f32.mxu0 %vm4720_vm0, %v4719_v1 }
0x1a11   :  { %4448 = vmatpush3.bf16.msra.mxu1 %v5368_v5 }
0x1a12   :  { %4466 = vmatpush3.bf16.msra.mxu0 %v5308_v21  ;;  %4455 = vmatprep.subr.bf16.mxu1 %v4725_v18 }
0x1a13   :  { %4473 = vmatprep.subr.bf16.mxu0 %v4725_v18 }
0x1a14   :  { %4306 = vmatmul.mubr.msk.f32.vlgmr.msra.gmra.mrb[74].mxu1 %vm93_vm1, %v5340_v63 }
0x1a15   :  { %4339 = vmatmul.mubr.msk.f32.vlgmr.msra.gmra.mrb[80].mxu0 %vm93_vm1, %v5340_v63  ;;  %4457 = vmatpush3.bf16.msra.mxu1 %v5358_v4 }
0x1a16   :  { %4475 = vmatpush3.bf16.msra.mxu0 %v5296_v15  ;;  %4458 = vmatprep.subr.bf16.mxu1 %v4725_v18 }
0x1a17   :  { %4476 = vmatprep.subr.bf16.mxu0 %v4725_v18  ;;  %4327 = vmatprep.mubr.msk.f32.mxu1 %vm4720_vm0, %v4719_v1 }
0x1a18   :  { %4360 = vmatprep.mubr.msk.f32.mxu0 %vm4720_vm0, %v4719_v1 }
0x1a19   :  { %4460 = vmatpush3.bf16.msra.mxu1 %v5368_v5 }
0x1a1a   :  { %4478 = vmatpush3.bf16.msra.mxu0 %v5308_v21  ;;  %4467 = vmatprep.subr.bf16.mxu1 %v4725_v18 }
0x1a1b   :  { %4485 = vmatprep.subr.bf16.mxu0 %v4725_v18 }
0x1a1c   :  { %4328 = vmatmul.mubr.msk.f32.vlgmr.msra.gmra.mrb[76].mxu1 %vm93_vm1, %v2846_v7 }
0x1a1d   :  { %4361 = vmatmul.mubr.msk.f32.vlgmr.msra.gmra.mrb[82].mxu0 %vm93_vm1, %v2846_v7  ;;  %4469 = vmatpush3.bf16.msra.mxu1 %v5358_v4 }
0x1a1e   :  { %4487 = vmatpush3.bf16.msra.mxu0 %v5296_v15  ;;  %4470 = vmatprep.subr.bf16.mxu1 %v4725_v18 }
0x1a1f   :  { %4488 = vmatprep.subr.bf16.mxu0 %v4725_v18  ;;  %4349 = vmatprep.mubr.msk.f32.mxu1 %vm4720_vm0, %v4719_v1 }
0x1a20   :  { %4382 = vmatprep.mubr.msk.f32.mxu0 %vm4720_vm0, %v4719_v1 }
0x1a21   :  { %4472 = vmatpush3.bf16.msra.mxu1 %v5368_v5 }
0x1a22   :  { %4490 = vmatpush3.bf16.msra.mxu0 %v5308_v21  ;;  %4479 = vmatprep.subr.bf16.mxu1 %v4725_v18 }
0x1a23   :  { %4497 = vmatprep.subr.bf16.mxu0 %v4725_v18 }
0x1a24   :  { %4350 = vmatmul.mubr.msk.f32.vlgmr.msra.gmra.mrb[78].mxu1 %vm93_vm1, %v5390_v30 }
0x1a25   :  { %4383 = vmatmul.mubr.msk.f32.vlgmr.msra.gmra.mrb[84].mxu0 %vm93_vm1, %v5390_v30  ;;  %4481 = vmatpush3.bf16.msra.mxu1 %v5358_v4  ;;  %v3300_v30 = vld [vmem:[%s5677_s8 + $0x18] sm:$0xff] }
0x1a26   :  { %4482 = vmatprep.subr.bf16.mxu1 %v4725_v18  ;;  %4371 = vmatprep.mubr.msk.f32.mxu1 %vm4720_vm0, %v4719_v1  ;;  %v4495_v9 = vpack.c.bf16 %v3300_v30, %v3299_v28 }
0x1a27   :  { %4404 = vmatprep.mubr.msk.f32.mxu0 %vm4720_vm0, %v4719_v1  ;;  %4499 = vmatpush3.bf16.msra.mxu0 %v4492_v29 }
0x1a28   :  { %4500 = vmatprep.subr.bf16.mxu0 %v4725_v18 }
0x1a29   :  { %4484 = vmatpush3.bf16.msra.mxu1 %v5368_v5 }
0x1a2a   :  { %4491 = vmatprep.subr.bf16.mxu1 %v4725_v18 }
0x1a2b   :  { %4502 = vmatpush3.bf16.msra.mxu0 %v4495_v9 }
0x1a6e   :  { %v3138_v42 = vpop.permute.xlu0 %3137 }
0x1a6f   :  { %4372 = vmatmul.mubr.msk.f32.vlgmr.msra.gmra.mrb[80].mxu1 %vm93_vm1, %v3138_v42 }
0x1a70   :  { %4393 = vmatprep.mubr.msk.f32.mxu1 %vm4720_vm0, %v4719_v1  ;;  %4493 = vmatpush3.bf16.msra.mxu1 %v4492_v29 }
0x1a71   :  { %4494 = vmatprep.subr.bf16.mxu1 %v4725_v18 }
0x1a72   :  { %v686_v15 = vpop.permute.xlu0 %685 }
0x1a73   :  { %3696 = vst.msk [vmem:[%s5674_s13 - $0x2] sm:$0xc0] %vm692_vm7, %v686_v15 }
0x1a74   :  { %4496 = vmatpush3.bf16.msra.mxu1 %v4495_v9 }
0x1a76   :  { %v972_v21 = vpop.permute.xlu0 %971 }
0x1a77   :  { %3708 = vst.msk [vmem:[%s5674_s13 + $0x4] sm:$0xf0] %vm975_vm8, %v972_v21 }
0x1a7a   :  { %v1716_v40 = vpop.permute.xlu0 %1715 }
0x1a7b   :  { %3735 = vst.msk [vmem:[%s5674_s13 + $0xe] sm:$0xc0] %vm692_vm7, %v1716_v40 }
0x1acf   :  { %v2324_v43 = vpop.f32.mrb[68].mxu1 }
0x1ad0   :  { %v2397_v1 = vadd.f32 %v5350_v61, %v2324_v43  ;;  %v2548_v44 = vpop.f32.mrb[74].mxu0  ;;  %v4241_v23 = vpop.f32.mrb[69].mxu1 }
0x1ad1   :  { %v4274_v45 = vpop.f32.mrb[75].mxu0 }
0x1ad2   :  { %v5519_v62 = vadd.f32 %v3758_v24, %v2397_v1 }
0x1ad7   :  { %v2478_v22 = vpop.f32.mrb[70].mxu1 }
0x1ad8   :  { %v2549_v11 = vadd.f32 %v2548_v44, %v2478_v22  ;;  %v2694_v0 = vpop.f32.mrb[76].mxu0  ;;  %v4263_v34 = vpop.f32.mrb[71].mxu1 }
0x1ad9   :  { %v4296_v3 = vpop.f32.mrb[77].mxu0 }
0x1ada   :  { %v5521_v63 = vadd.f32 %v3758_v24, %v2549_v11 }
0x1adc   :  { %v3304_v48 = vadd.f32 %v5521_v63, %v5519_v62 }
0x1adf   :  { %v2624_v50 = vpop.f32.mrb[72].mxu1 }
0x1ae0   :  { %v2695_v51 = vadd.f32 %v2694_v0, %v2624_v50  ;;  %v2837_v52 = vpop.f32.mrb[78].mxu0  ;;  %v4285_v53 = vpop.f32.mrb[73].mxu1 }
0x1ae1   :  { %v4318_v54 = vpop.f32.mrb[79].mxu0 }
0x1ae2   :  { %v5525_v55 = vadd.f32 %v3758_v24, %v2695_v51 }
0x1ae4   :  { %v3305_v56 = vadd.f32 %v3304_v48, %v5525_v55 }
0x1ae7   :  { %v2767_v58 = vpop.f32.mrb[74].mxu1 }
0x1ae8   :  { %v2838_v60 = vadd.f32 %v2837_v52, %v2767_v58  ;;  %v2985_v61 = vpop.f32.mrb[80].mxu0  ;;  %v4307_v32 = vpop.f32.mrb[75].mxu1 }
0x1ae9   :  { %v4340_v47 = vpop.f32.mrb[81].mxu0 }
0x1aea   :  { %v5528_v2 = vadd.f32 %v3758_v24, %v2838_v60 }
0x1aec   :  { %v3306_v4 = vadd.f32 %v3305_v56, %v5528_v2 }
0x1aef   :  { %v2915_v10 = vpop.f32.mrb[76].mxu1 }
0x1af0   :  { %v2986_v13 = vadd.f32 %v2985_v61, %v2915_v10  ;;  %v3131_v36 = vpop.f32.mrb[82].mxu0  ;;  %v4329_v5 = vpop.f32.mrb[77].mxu1 }
0x1af1   :  { %v4362_v12 = vpop.f32.mrb[83].mxu0 }
0x1af2   :  { %v2989_v14 = vadd.f32 %v3758_v24, %v2986_v13 }
0x1af4   :  { %v3307_v6 = vadd.f32 %v3306_v4, %v2989_v14 }
0x1af7   :  { %v3061_v8 = vpop.f32.mrb[78].mxu1 }
0x1af8   :  { %v3132_v16 = vadd.f32 %v3131_v36, %v3061_v8  ;;  %v3277_v17 = vpop.f32.mrb[84].mxu0  ;;  %v4351_v19 = vpop.f32.mrb[79].mxu1 }
0x1af9   :  { %v4384_v20 = vpop.f32.mrb[85].mxu0 }
0x1afa   :  { %v3135_v25 = vadd.f32 %v3758_v24, %v3132_v16 }
0x1afc   :  { %v3308_v59 = vadd.f32 %v3307_v6, %v3135_v25 }
0x1b42   :  { %v3207_v41 = vpop.f32.mrb[80].mxu1 }
0x1b43   :  { %v3278_v26 = vadd.f32 %v3277_v17, %v3207_v41  ;;  %v4373_v35 = vpop.f32.mrb[81].mxu1 }
0x1b45   :  { %v3281_v33 = vadd.f32 %v3758_v24, %v3278_v26 }
0x1b47   :  { %v3309_v37 = vadd.f32 %v3308_v59, %v3281_v33 }
0x1b49   :  { %v3310_v38 = vsel %vm694_vm5, %v3309_v37, 0.0  ;;  %v3493_v57 = vrot.slane %v3309_v37, 2 }
0x1b4a   :  { %v3311_v7 = vrot.slane %v3310_v38, 4 }
0x1b4b   :  { %v3495_v42 = vsel %vm694_vm5, %v3493_v57, 0.0 }
0x1b4c   :  { %v3312_v15 = vadd.f32 %v3311_v7, %v3310_v38  ;;  %v3496_v21 = vrot.slane %v3495_v42, 4 }
0x1b4e   :  { %v3313_v40 = vrot.slane %v3312_v15, 2  ;;  %v3497_v43 = vadd.f32 %v3496_v21, %v3495_v42 }
0x1b50   :  { %v3314_v1 = vadd.f32 %v3313_v40, %v3312_v15  ;;  %v3498_v18 = vrot.slane %v3497_v43, 2 }
0x1b52   :  { %v3315_v44 = vrot.slane %v3314_v1, 1  ;;  %v3499_v23 = vadd.f32 %v3498_v18, %v3497_v43 }
0x1b54   :  { %v3316_v45 = vadd.f32 %v3315_v44, %v3314_v1  ;;  %v3500_v22 = vrot.slane %v3499_v23, 1 }
0x1b56   :  { %v3317_v11 = vmul.f32 0.071428575, %v3316_v45  ;;  %v3501_v0 = vadd.f32 %v3500_v22, %v3499_v23 }
0x1b58   :  { %v5548_v24 = vsub.f32 %v5519_v62, %v3317_v11  ;;  %v5551_v34 = vsub.f32 %v5521_v63, %v3317_v11  ;;  %v5554_v3 = vsub.f32 %v5525_v55, %v3317_v11  ;;  %v5557_v48 = vsub.f32 %v5528_v2, %v3317_v11 }
0x1b59   :  { %v5559_v50 = vsub.f32 %v2989_v14, %v3317_v11  ;;  %v5561_v51 = vsub.f32 %v3135_v25, %v3317_v11  ;;  %v5563_v52 = vsub.f32 %v3281_v33, %v3317_v11  ;;  %v3502_v53 = vmul.f32 0.071428575, %v3501_v0 }
0x1b5a   :  { %v3319_v54 = vmul.f32 %v5548_v24, %v5548_v24  ;;  %v3321_v56 = vmul.f32 %v5551_v34, %v5551_v34  ;;  %v3324_v58 = vmul.f32 %v5554_v3, %v5554_v3 }
0x1b5b   :  { %v5572_v60 = vsub.f32 %v5519_v62, %v3502_v53  ;;  %v5575_v32 = vsub.f32 %v5521_v63, %v3502_v53  ;;  %v5578_v47 = vsub.f32 %v5525_v55, %v3502_v53  ;;  %v5581_v4 = vsub.f32 %v5528_v2, %v3502_v53 }
0x1b5c   :  { %v3322_v61 = vadd.f32 %v3321_v56, %v3319_v54  ;;  %v5585_v13 = vsub.f32 %v2989_v14, %v3502_v53  ;;  %v5587_v36 = vsub.f32 %v3135_v25, %v3502_v53  ;;  %v5589_v5 = vsub.f32 %v3281_v33, %v3502_v53 }
0x1b5d   :  { %v3504_v10 = vmul.f32 %v5572_v60, %v5572_v60  ;;  %v3327_v63 = vmul.f32 %v5557_v48, %v5557_v48  ;;  %v3506_v55 = vmul.f32 %v5575_v32, %v5575_v32  ;;  %v3330_v2 = vmul.f32 %v5559_v50, %v5559_v50 }
0x1b5e   :  { %v3325_v62 = vadd.f32 %v3324_v58, %v3322_v61  ;;  %v3509_v14 = vmul.f32 %v5578_v47, %v5578_v47  ;;  %v3333_v16 = vmul.f32 %v5561_v51, %v5561_v51  ;;  %v3512_v19 = vmul.f32 %v5581_v4, %v5581_v4 }
0x1b5f   :  { %v3507_v6 = vadd.f32 %v3506_v55, %v3504_v10  ;;  %v3336_v25 = vmul.f32 %v5563_v52, %v5563_v52  ;;  %v3515_v27 = vmul.f32 %v5585_v13, %v5585_v13  ;;  %v3518_v28 = vmul.f32 %v5587_v36, %v5587_v36 }
0x1b60   :  { %v3328_v12 = vadd.f32 %v3327_v63, %v3325_v62  ;;  %v3521_v41 = vmul.f32 %v5589_v5, %v5589_v5 }
0x1b61   :  { %v3510_v17 = vadd.f32 %v3509_v14, %v3507_v6 }
0x1b62   :  { %v3331_v8 = vadd.f32 %v3330_v2, %v3328_v12 }
0x1b63   :  { %v3513_v59 = vadd.f32 %v3512_v19, %v3510_v17 }
0x1b64   :  { %v3334_v20 = vadd.f32 %v3333_v16, %v3331_v8 }
0x1b65   :  { %v3516_v29 = vadd.f32 %v3515_v27, %v3513_v59 }
0x1b66   :  { %v3337_v39 = vadd.f32 %v3336_v25, %v3334_v20 }
0x1b67   :  { %v3519_v9 = vadd.f32 %v3518_v28, %v3516_v29 }
0x1b68   :  { %v3338_v30 = vsel %vm694_vm5, %v3337_v39, 0.0 }
0x1b69   :  { %v3339_v26 = vrot.slane %v3338_v30, 4  ;;  %v3522_v35 = vadd.f32 %v3521_v41, %v3519_v9 }
0x1b6b   :  { %v3340_v33 = vadd.f32 %v3339_v26, %v3338_v30  ;;  %v3524_v37 = vrot.slane %v3522_v35, 2 }
0x1b6d   :  { %v3341_v38 = vrot.slane %v3340_v33, 2  ;;  %v3526_v57 = vsel %vm694_vm5, %v3524_v37, 0.0 }
0x1b6e   :  { %v3527_v42 = vrot.slane %v3526_v57, 4 }
0x1b6f   :  { %v3342_v7 = vadd.f32 %v3341_v38, %v3340_v33 }
0x1b70   :  { %v3528_v21 = vadd.f32 %v3527_v42, %v3526_v57 }
0x1b71   :  { %v3343_v15 = vrot.slane %v3342_v7, 1 }
0x1b72   :  { %v3529_v43 = vrot.slane %v3528_v21, 2 }
0x1b73   :  { %v3344_v40 = vadd.f32 %v3343_v15, %v3342_v7 }
0x1b74   :  { %v3530_v18 = vadd.f32 %v3529_v43, %v3528_v21  ;;  %v20_v21 = vstv %s5680_s11 }
0x1b75   :  { %v3345_v1 = vmul.f32 0.071428575, %v3344_v40  ;;  %21 = vst [vmem:[#allocation2] sm:$0x1] %v20_v21  ;;  %v3772_v40 = vld [vmem:[%s5681_s9] ss:$0 sm:$0xff] }
0x1b76   :  { %v3531_v23 = vrot.slane %v3530_v18, 1 }
0x1b77   :  { %v3346_v44 = vadd.f32 1e-05, %v3345_v1 }
0x1b78   :  { %v3532_v45 = vadd.f32 %v3531_v23, %v3530_v18 }
0x1b79   :  { %4709 = vrsqrt.f32 %v3346_v44 }
0x1b7a   :  { %v3533_v22 = vmul.f32 0.071428575, %v3532_v45 }
0x1b7c   :  { %v3534_v11 = vadd.f32 1e-05, %v3533_v22 }
0x1b7e   :  { %4711 = vrsqrt.f32 %v3534_v11 }
0x1b83   :  { %v4710_v0 = vpop.eup %4709 }
0x1b84   :  { %v3348_v53 = vmul.f32 %v4710_v0, %v5548_v24  ;;  %v3350_v54 = vmul.f32 %v4710_v0, %v5551_v34  ;;  %v3353_v56 = vmul.f32 %v4710_v0, %v5554_v3  ;;  %v3356_v58 = vmul.f32 %v4710_v0, %v5557_v48  ;;  %v3282_v24 = vld [vmem:[%s5678_s12] sm:$0x3] }
0x1b85   :  { %v3359_v61 = vmul.f32 %v4710_v0, %v5559_v50  ;;  %v3362_v10 = vmul.f32 %v4710_v0, %v5561_v51  ;;  %v3365_v62 = vmul.f32 %v4710_v0, %v5563_v52  ;;  %v3288_v59 = vadd.f32 %v5392_v46, %v3282_v24 }
0x1b86   :  { %v3349_v63 = vmax.f32 %v3348_v53, 0.0  ;;  %v3351_v55 = vmax.f32 %v3350_v54, 0.0  ;;  %v3354_v2 = vmax.f32 %v3353_v56, 0.0  ;;  %v3357_v14 = vmax.f32 %v3356_v58, 0.0 }
0x1b87   :  { %v3360_v19 = vmax.f32 %v3359_v61, 0.0 }
0x1b88   :  { %v3352_v12 = vmax.f32 %v3349_v63, %v3351_v55  ;;  %v4712_v6 = vpop.eup %4711 }
0x1b89   :  { %v3536_v3 = vmul.f32 %v4712_v6, %v5572_v60  ;;  %v3538_v48 = vmul.f32 %v4712_v6, %v5575_v32  ;;  %v3541_v50 = vmul.f32 %v4712_v6, %v5578_v47  ;;  %v3544_v51 = vmul.f32 %v4712_v6, %v5581_v4  ;;  %v3771_v47 = vld [vmem:[%s5679_s7] ss:$0 sm:$0xff] }
0x1b8a   :  { %v3355_v34 = vmax.f32 %v3352_v12, %v3354_v2  ;;  %v3547_v52 = vmul.f32 %v4712_v6, %v5585_v13  ;;  %v3550_v8 = vmul.f32 %v4712_v6, %v5587_v36  ;;  %v3553_v16 = vmul.f32 %v4712_v6, %v5589_v5 }
0x1b8b   :  { %v3537_v20 = vmax.f32 %v3536_v3, 0.0  ;;  %v3539_v25 = vmax.f32 %v3538_v48, 0.0  ;;  %v3363_v60 = vmax.f32 %v3362_v10, 0.0  ;;  %v3542_v32 = vmax.f32 %v3541_v50, 0.0 }
0x1b8c   :  { %v3358_v17 = vmax.f32 %v3355_v34, %v3357_v14  ;;  %v3366_v13 = vmax.f32 %v3365_v62, 0.0  ;;  %v3545_v36 = vmax.f32 %v3544_v51, 0.0  ;;  %v3296_v28 = vadd.f32 %v3771_v47, %v3288_v59 }
0x1b8d   :  { %v3540_v39 = vmax.f32 %v3537_v20, %v3539_v25  ;;  %v3548_v9 = vmax.f32 %v3547_v52, 0.0  ;;  %v3551_v26 = vmax.f32 %v3550_v8, 0.0  ;;  %v3554_v33 = vmax.f32 %v3553_v16, 0.0 }
0x1b8e   :  { %v3361_v27 = vmax.f32 %v3358_v17, %v3360_v19  ;;  %v3557_v38 = vrot.slane %v3296_v28, 6 }
0x1b8f   :  { %v3543_v29 = vmax.f32 %v3540_v39, %v3542_v32 }
0x1b90   :  { %v3364_v4 = vmax.f32 %v3361_v27, %v3363_v60 }
0x1b91   :  { %v3546_v30 = vmax.f32 %v3543_v29, %v3545_v36 }
0x1b92   :  { %v3367_v5 = vmax.f32 %v3364_v4, %v3366_v13 }
0x1b93   :  { %v3549_v41 = vmax.f32 %v3546_v30, %v3548_v9  ;;  %v3774_v30 = vld [vmem:[%s5682_s10] ss:$0 sm:$0xff] }
0x1b94   :  { %v3368_v35 = vadd.f32 %v3367_v5, %v3296_v28 }
0x1b95   :  { %v3552_v46 = vmax.f32 %v3549_v41, %v3551_v26 }
0x1b96   :  { %v3369_v37 = vmax.f32 %v3368_v35, 0.0 }
0x1b97   :  { %v3555_v57 = vmax.f32 %v3552_v46, %v3554_v33 }
0x1b98   :  { %4394 = vmatmul.mubr.msk.f32.vlgmr.msra.gmra.mrb[82].mxu1 %vm93_vm1, %v3369_v37 }
0x1b99   :  { %v3559_v7 = vadd.f32 %v3557_v38, %v3555_v57  ;;  %v3775_v38 = vld [vmem:[#allocation2] ss:$0 sm:$0xff] }
0x1b9b   :  { %v3560_v42 = vmax.f32 %v3559_v7, 0.0 }
0x1b9d   :  { %v3562_v15 = vrot.slane %v3560_v42, 2 }
0x1b9f   :  { %4405 = vmatmul.mubr.msk.f32.vlgmr.msra.gmra.mrb[86].mxu0 %vm93_vm1, %v3562_v15 }
0x1c6b   :  { %v3445_v43 = vpop.f32.mrb[82].mxu1 }
0x1c6c   :  { %v3446_v1 = vadd.f32 %v3772_v40, %v3445_v43  ;;  %v4395_v18 = vpop.f32.mrb[83].mxu1 }
0x1c6e   :  { %v3449_v44 = vmax.f32 %v3446_v1, 0.0 }
0x1c70   :  { %v3451_v23 = vsel %vm3450_vm9, %v3449_v44, 0.0 }
0x1c71   :  { %v3452_v45 = vrot.slane %v3451_v23, 4 }
0x1c72   :  { %v3631_v11 = vpop.f32.mrb[86].mxu0 }
0x1c73   :  { %v3453_v22 = vadd.f32 %v3452_v45, %v3451_v23  ;;  %v3632_v0 = vadd.f32 %v3772_v40, %v3631_v11  ;;  %v4406_v53 = vpop.f32.mrb[87].mxu0 }
0x1c75   :  { %v3454_v54 = vrot.slane %v3453_v22, 2  ;;  %v3635_v56 = vmax.f32 %v3632_v0, 0.0 }
0x1c77   :  { %v3455_v58 = vadd.f32 %v3454_v54, %v3453_v22  ;;  %v3636_v61 = vsel %vm3450_vm9, %v3635_v56, 0.0 }
0x1c78   :  { %v3637_v62 = vrot.slane %v3636_v61, 4 }
0x1c79   :  { %v3456_v10 = vrot.slane %v3455_v58, 1 }
0x1c7a   :  { %v3638_v55 = vadd.f32 %v3637_v62, %v3636_v61 }
0x1c7b   :  { %v3457_v63 = vadd.f32 %v3456_v10, %v3455_v58 }
0x1c7c   :  { %v3639_v2 = vrot.slane %v3638_v55, 2 }
0x1c7d   :  { %v3459_v12 = vmul.f32 0.5, %v3457_v63 }
0x1c7e   :  { %v3640_v14 = vadd.f32 %v3639_v2, %v3638_v55 }
0x1c7f   :  { %v3460_v6 = vsub.f32 %v3449_v44, %v3459_v12 }
0x1c80   :  { %v3641_v34 = vrot.slane %v3640_v14, 1 }
0x1c81   :  { %v3461_v24 = vmul.f32 %v3460_v6, %v3460_v6 }
0x1c82   :  { %v3642_v48 = vadd.f32 %v3641_v34, %v3640_v14 }
0x1c83   :  { %v3462_v3 = vsel %vm3450_vm9, %v3461_v24, 0.0 }
0x1c84   :  { %v3463_v50 = vrot.slane %v3462_v3, 4  ;;  %v3643_v51 = vmul.f32 0.5, %v3642_v48 }
0x1c86   :  { %v3464_v52 = vadd.f32 %v3463_v50, %v3462_v3  ;;  %v3644_v8 = vsub.f32 %v3635_v56, %v3643_v51 }
0x1c88   :  { %v3465_v16 = vrot.slane %v3464_v52, 2  ;;  %v3645_v17 = vmul.f32 %v3644_v8, %v3644_v8 }
0x1c8a   :  { %v3466_v19 = vadd.f32 %v3465_v16, %v3464_v52  ;;  %v3646_v20 = vsel %vm3450_vm9, %v3645_v17, 0.0 }
0x1c8b   :  { %v3647_v59 = vrot.slane %v3646_v20, 4 }
0x1c8c   :  { %v3467_v25 = vrot.slane %v3466_v19, 1 }
0x1c8d   :  { %v3648_v60 = vadd.f32 %v3647_v59, %v3646_v20 }
0x1c8e   :  { %v3468_v27 = vadd.f32 %v3467_v25, %v3466_v19 }
0x1c8f   :  { %v3649_v32 = vrot.slane %v3648_v60, 2 }
0x1c90   :  { %v3469_v39 = vmul.f32 0.5, %v3468_v27 }
0x1c91   :  { %v3650_v4 = vadd.f32 %v3649_v32, %v3648_v60 }
0x1c92   :  { %v3470_v47 = vadd.f32 1e-05, %v3469_v39 }
0x1c93   :  { %v3651_v13 = vrot.slane %v3650_v4, 1 }
0x1c94   :  { %4713 = vrsqrt.f32 %v3470_v47 }
0x1c95   :  { %v3652_v29 = vadd.f32 %v3651_v13, %v3650_v4 }
0x1c97   :  { %v3653_v36 = vmul.f32 0.5, %v3652_v29 }
0x1c99   :  { %v3654_v28 = vadd.f32 1e-05, %v3653_v36 }
0x1c9b   :  { %4715 = vrsqrt.f32 %v3654_v28 }
0x1c9e   :  { %v4714_v5 = vpop.eup %4713 }
0x1c9f   :  { %v3472_v9 = vmul.f32 %v4714_v5, %v3460_v6 }
0x1ca1   :  { %v3479_v41 = vmul.f32 %v3774_v30, %v3472_v9 }
0x1ca3   :  { %v3480_v26 = vsel %vm3450_vm9, %v3479_v41, 0.0 }
0x1ca4   :  { %3481 = vadd.xlane.f32.xlu0 %v3480_v26 }
0x1ca5   :  { %v4716_v35 = vpop.eup %4715 }
0x1ca6   :  { %v3656_v46 = vmul.f32 %v4716_v35, %v3644_v8 }
0x1ca8   :  { %v3657_v33 = vmul.f32 %v3774_v30, %v3656_v46 }
0x1caa   :  { %v3658_v37 = vsel %vm3450_vm9, %v3657_v33, 0.0 }
0x1cab   :  { %3659 = vadd.xlane.f32.xlu1 %v3658_v37 }
0x1cba   :  { %1998 = vrot.lane.b32.xlu0 %v5266_v49, %s4723_s25 }
0x1cbc   :  { %2236 = vrot.lane.b32.xlu1 %v5402_v31, %s4723_s25 }
0x1d31   :  { %v3482_v57 = vpop.xlane.xlu0 %3481 }
0x1d32   :  { %v3489_v7 = vadd.f32 %v3775_v38, %v3482_v57 }
0x1d34   :  { %3491 = vst.msk [vmem:[%s5683_s14] sm:$0x3] %vm3490_vm10, %v3489_v7 }
0x1d35   :  { %v1999_v42 = vpop.permute.xlu0 %1998 }
0x1d36   :  { %3747 = vst.msk [vmem:[%s5674_s13 + $0x14] sm:$0xf0] %vm975_vm8, %v1999_v42 }
0x1d38   :  { %v3660_v15 = vpop.xlane.xlu1 %3659 }
0x1d39   :  { %v3661_v21 = vadd.f32 %v3775_v38, %v3660_v15 }
0x1d3b   :  { %3777 = vst.msk [vmem:[%s5683_s14 + $0x2] sm:$0x3] %vm3490_vm10, %v3661_v21 }
0x1d3c   :  { %v2237_v49 = vpop.permute.xlu1 %2236 }
0x1d3d   :  { %3755 = vst.msk [vmem:[%s5674_s13 + $0x1a] sm:$0x3c] %vm1214_vm6, %v2237_v49 }

</bundles_post_ra>
